<compile_context>
chip_gen: v7x
topology: tpu7x:2x2x1
jax: 0.10.0
libtpu: 0.0.40
codegen_flags: <defaults>
</compile_context>

<pallas_src>
import functools

import jax
import jax.numpy as jnp
import numpy as np
from jax.experimental import pallas as pl
from jax.experimental.pallas import tpu as pltpu

_K = 4
_BN_EPS = 1e-5
_VMEM_LIMIT = 32 * 1024 * 1024


# ------------------------------ Pallas kernels ------------------------------ #
def _dot_bn_relu_kernel(p_ref, w_ref, gamma_ref, beta_ref, o_ref,
                        sum_ref, sq_ref, *, num_channels, eps):
    """One M-tile: single deep-K MXU matmul; cross-grid BN stat accumulation;
    on the last grid step apply global training-mode BatchNorm + ReLU in place
    over the full VMEM-resident output.

    p_ref:     (tm, Kc)  bf16 folded im2col patches for this tile
    w_ref:     (Kc, L0)  bf16 matmul weights (resident across the grid)
    gamma_ref: (1, C) f32 BN scale;  beta_ref: (1, C) f32 BN shift
    o_ref:     (M, L0) f32 full output, resident across the whole grid
    sum_ref/sq_ref: (1, C) f32 VMEM scratch: per-channel sum / sum-of-squares
    """
    i = pl.program_id(0)
    nsteps = pl.num_programs(0)
    tm = p_ref.shape[0]
    c = num_channels

    @pl.when(i == 0)
    def _():
        sum_ref[...] = jnp.zeros_like(sum_ref)
        sq_ref[...] = jnp.zeros_like(sq_ref)

    # Folded-contraction matmul for this M tile (one MXU dot, K = 9*Ci / z_dim).
    acc = jnp.dot(p_ref[...], w_ref[...], preferred_element_type=jnp.float32)
    l0 = acc.shape[-1]
    ng = l0 // c                       # lanes are (group, channel), channel fastest

    # Cross-grid accumulation of per-channel batch statistics.
    lane_sum = jnp.sum(acc, axis=0, keepdims=True)            # (1, L0)
    lane_sq = jnp.sum(acc * acc, axis=0, keepdims=True)       # (1, L0)
    ch_sum = jnp.zeros((1, c), jnp.float32)
    ch_sq = jnp.zeros((1, c), jnp.float32)
    for g in range(ng):                                        # static, ng in {4, 16}
        ch_sum = ch_sum + lane_sum[:, g * c:(g + 1) * c]
        ch_sq = ch_sq + lane_sq[:, g * c:(g + 1) * c]
    sum_ref[...] += ch_sum
    sq_ref[...] += ch_sq

    # Stage the pre-BN tile into the (VMEM-resident) full output.
    r0 = pl.multiple_of(i * tm, tm)
    o_ref[pl.ds(r0, tm), :] = acc

    # Last tile: finalize global BN stats, normalize + ReLU the whole output.
    @pl.when(i == nsteps - 1)
    def _():
        count = (tm * nsteps) * ng                             # N * H_out * W_out
        mean = sum_ref[...] / count
        var = sq_ref[...] / count - mean * mean                # biased (training BN)
        scale = gamma_ref[...] * jax.lax.rsqrt(var + eps)      # fold gamma into rsqrt
        shift = beta_ref[...] - mean * scale
        scale_l = jnp.concatenate([scale] * ng, axis=1)        # (1, L0)
        shift_l = jnp.concatenate([shift] * ng, axis=1)

        def norm_tile(t, carry):
            rs = pl.multiple_of(t * tm, tm)
            blk = o_ref[pl.ds(rs, tm), :]
            o_ref[pl.ds(rs, tm), :] = jnp.maximum(blk * scale_l + shift_l, 0.0)
            return carry

        jax.lax.fori_loop(0, nsteps, norm_tile, 0)


def _dot_bias_tanh_kernel(wt_ref, pt_ref, bias_ref, o_ref):
    """Final ConvT layer in transposed layout so stores are lane-dense even for
    nc=1:  out^T[(py,px,co), m] = tanh(W9^T @ patches^T + bias)."""
    acc = jnp.dot(wt_ref[...], pt_ref[...], preferred_element_type=jnp.float32)
    o_ref[...] = jnp.tanh(acc + bias_ref[...])


# ------------------------------- glue helpers ------------------------------- #
def _pick_tile(total, target, align):
    """Largest divisor of `total` that is <= target and a multiple of `align`."""
    if total <= target:
        return total
    for cand in range(min(target, total), 0, -1):
        if total % cand == 0 and cand % align == 0:
            return cand
    return total


def _window_patches(x_bf16):
    """(N,H,W,Ci) -> (N*H*W, 9*Ci): 3x3 windows of the 1-padded input
    (sub-pixel im2col; 9 taps instead of 16 taps on a zero-dilated image)."""
    n, h, w, ci = x_bf16.shape
    xp = jnp.pad(x_bf16, ((0, 0), (1, 1), (1, 1), (0, 0)))
    m = n * h * w
    taps = [xp[:, oy:oy + h, ox:ox + w, :].reshape(m, ci)
            for oy in range(3) for ox in range(3)]
    return jnp.concatenate(taps, axis=-1)


def _window_patches_t(x_bf16):
    """Transposed variant: (N,H,W,Ci) -> (9*Ci, N*H*W), for the final layer."""
    n, h, w, ci = x_bf16.shape
    xp = jnp.pad(x_bf16, ((0, 0), (1, 1), (1, 1), (0, 0)))
    m = n * h * w
    taps = [jnp.transpose(xp[:, oy:oy + h, ox:ox + w, :], (3, 0, 1, 2)).reshape(ci, m)
            for oy in range(3) for ox in range(3)]
    return jnp.concatenate(taps, axis=0)


def _subpixel_weight9(w):
    """(Ci, Co, 4, 4) ConvTranspose2d weight -> (9*Ci, 4*Co) matmul weight for
    the sub-pixel (stride=2, pad=1, k=4) formulation.  Row = (oy,ox,ci) window
    tap of the 1-padded input; column = (py,px,co) output parity & channel."""
    ci, co, _, _ = w.shape
    blocks = []
    for oy in range(3):
        for ox in range(3):
            cols = []
            for py in range(2):
                for px in range(2):
                    kh = 3 + py - 2 * oy
                    kw = 3 + px - 2 * ox
                    if 0 <= kh <= 3 and 0 <= kw <= 3:
                        cols.append(w[:, :, kh, kw])            # (Ci, Co)
                    else:
                        cols.append(jnp.zeros((ci, co), w.dtype))
            blocks.append(jnp.concatenate(cols, axis=1))         # (Ci, 4*Co)
    return jnp.concatenate(blocks, axis=0)                       # (9*Ci, 4*Co)


def _pixel_shuffle(out2d, n, h, w, co):
    """(M, 4*Co) with rows (n,a,b), lanes (py,px,co)  ->  (N, 2H, 2W, Co)."""
    y = out2d.reshape(n, h, w, 2, 2, co)
    return jnp.transpose(y, (0, 1, 3, 2, 4, 5)).reshape(n, 2 * h, 2 * w, co)


# ------------------------------ layer wrappers ------------------------------ #
def _projection_bn_layer(z, w_mat, gamma, beta, *, eps=_BN_EPS):
    """Layer 1: ConvT(z_dim, Co, 4, 1, 0) on a 1x1 input == one matmul, fused
    with training-mode BatchNorm + ReLU.  Output (N, 4, 4, Co) in NHWC."""
    n, zdim = z.shape
    co = gamma.shape[-1]
    l0 = w_mat.shape[-1]                       # 16 * Co, lane-dense
    kernel = functools.partial(_dot_bn_relu_kernel, num_channels=co, eps=eps)
    out = pl.pallas_call(
        kernel,
        out_shape=jax.ShapeDtypeStruct((n, l0), jnp.float32),
        grid=(1,),
        in_specs=[pl.BlockSpec((n, zdim), lambda i: (0, 0)),
                  pl.BlockSpec((zdim, l0), lambda i: (0, 0)),
                  pl.BlockSpec((1, co), lambda i: (0, 0)),
                  pl.BlockSpec((1, co), lambda i: (0, 0))],
        out_specs=pl.BlockSpec((n, l0), lambda i: (0, 0)),
        scratch_shapes=[pltpu.VMEM((1, co), jnp.float32),
                        pltpu.VMEM((1, co), jnp.float32)],
        compiler_params=pltpu.CompilerParams(
            dimension_semantics=("arbitrary",),
            vmem_limit_bytes=_VMEM_LIMIT),
    )(z.astype(jnp.bfloat16), w_mat, gamma, beta)
    return out.reshape(n, _K, _K, co)


def _upsample_bn_layer(x_f32, w9, gamma, beta, *, tile_rows=256, eps=_BN_EPS):
    """ConvT(Ci, Co, 4, 2, 1) + BN + ReLU via sub-pixel matmul.
    x_f32: (N, H, W, Ci) NHWC  ->  (N, 2H, 2W, Co)."""
    n, h, w, ci = x_f32.shape
    co = gamma.shape[-1]
    patches = _window_patches(x_f32.astype(jnp.bfloat16))     # (M, 9*Ci) bf16
    m = n * h * w
    kc = 9 * ci
    l0 = 4 * co
    # ~256-row tiles keep the small test multi-tile (exercising the cross-grid
    # BN path); for production sizes pick ~512-1024 rows (1-2 MiB per tile).
    tm = _pick_tile(m, tile_rows, 8)
    kernel = functools.partial(_dot_bn_relu_kernel, num_channels=co, eps=eps)
    out2d = pl.pallas_call(
        kernel,
        out_shape=jax.ShapeDtypeStruct((m, l0), jnp.float32),
        grid=(m // tm,),
        in_specs=[pl.BlockSpec((tm, kc), lambda i: (i, 0)),   # streamed M tiles
                  pl.BlockSpec((kc, l0), lambda i: (0, 0)),   # weights resident
                  pl.BlockSpec((1, co), lambda i: (0, 0)),
                  pl.BlockSpec((1, co), lambda i: (0, 0))],
        out_specs=pl.BlockSpec((m, l0), lambda i: (0, 0)),    # full, VMEM-resident
        scratch_shapes=[pltpu.VMEM((1, co), jnp.float32),
                        pltpu.VMEM((1, co), jnp.float32)],
        compiler_params=pltpu.CompilerParams(
            dimension_semantics=("arbitrary",),               # global BN stats
            vmem_limit_bytes=_VMEM_LIMIT),
    )(patches, w9, gamma, beta)
    return _pixel_shuffle(out2d, n, h, w, co)


def _final_tanh_layer(x_f32, wt, bias_col, *, tile_lanes=256):
    """Final ConvT(Ci, nc, 4, 2, 1) + bias + Tanh in transposed layout so the
    stores are lane-dense even with nc=1.  Grid axis is parallel (megacore)."""
    n, h, w, ci = x_f32.shape
    l0 = bias_col.shape[0]                     # 4 * Co
    co = l0 // 4
    pt = _window_patches_t(x_f32.astype(jnp.bfloat16))        # (9*Ci, M) bf16
    m = n * h * w
    kc = 9 * ci
    tl = _pick_tile(m, tile_lanes, 128)
    out_t = pl.pallas_call(
        _dot_bias_tanh_kernel,
        out_shape=jax.ShapeDtypeStruct((l0, m), jnp.float32),
        grid=(m // tl,),
        in_specs=[pl.BlockSpec((l0, kc), lambda i: (0, 0)),
                  pl.BlockSpec((kc, tl), lambda i: (0, i)),
                  pl.BlockSpec((l0, 1), lambda i: (0, 0))],
        out_specs=pl.BlockSpec((l0, tl), lambda i: (0, i)),
        compiler_params=pltpu.CompilerParams(
            dimension_semantics=("parallel",),
            vmem_limit_bytes=_VMEM_LIMIT),
    )(wt, pt, bias_col)
    # rows are (py, px, co), columns are (n, a, b): pixel-shuffle back to NHWC.
    y = out_t.reshape(2, 2, co, n, h, w)
    return jnp.transpose(y, (3, 4, 0, 5, 1, 2)).reshape(n, 2 * h, 2 * w, co)


# --------------------------- parameters & forward --------------------------- #
def init_params(key, z_dim, nc=1, hidden_channels=64):
    """Raw parameters, mirroring the PyTorch module layout."""
    hc = hidden_channels
    dims = [(z_dim, hc * 8), (hc * 8, hc * 4), (hc * 4, hc * 2), (hc * 2, hc), (hc, nc)]
    params = []
    for idx, (ci, co) in enumerate(dims):
        key, kw, kg, kb = jax.random.split(key, 4)
        w = 0.05 * jax.random.normal(kw, (ci, co, _K, _K), jnp.float32)
        if idx < 4:     # ConvT(bias=False) + BatchNorm2d + ReLU
            gamma = 1.0 + 0.1 * jax.random.normal(kg, (co,), jnp.float32)
            beta = 0.1 * jax.random.normal(kb, (co,), jnp.float32)
            params.append((w, gamma, beta))
        else:           # final ConvT (has bias) + Tanh
            bias = 0.1 * jax.random.normal(kb, (co,), jnp.float32)
            params.append((w, bias))
    return params


def prepare_params(raw_params):
    """One-time conversion (hoisted out of the forward pass) of the PyTorch
    ConvTranspose2d weights into bf16 matmul-form kernel weights."""
    (w1, g1, b1) = raw_params[0]
    zd, c1 = w1.shape[0], w1.shape[1]
    w1_mat = jnp.transpose(w1, (0, 2, 3, 1)).reshape(zd, _K * _K * c1)
    kp = [(w1_mat.astype(jnp.bfloat16), g1.reshape(1, c1), b1.reshape(1, c1))]
    for (w, g, b) in raw_params[1:4]:
        co = w.shape[1]
        kp.append((_subpixel_weight9(w).astype(jnp.bfloat16),
                   g.reshape(1, co), b.reshape(1, co)))
    (w5, bias5) = raw_params[4]
    co5 = w5.shape[1]
    wt5 = jnp.transpose(_subpixel_weight9(w5)).astype(jnp.bfloat16)   # (4*Co, 9*Ci)
    bias_col = jnp.tile(bias5, 4).reshape(4 * co5, 1).astype(jnp.float32)
    kp.append((wt5, bias_col))
    return kp


def generator_forward(z, kparams):
    """z: (N, z_dim) -> (N, nc, 64, 64), matching the PyTorch Generator."""
    (w1, g1, b1) = kparams[0]
    x = _projection_bn_layer(z, w1, g1, b1)            # (N, 4, 4, 8*hc)
    for (w9, g, b) in kparams[1:4]:
        x = _upsample_bn_layer(x, w9, g, b)            # spatial x2 each layer
    (wt5, bias_col) = kparams[4]
    x = _final_tanh_layer(x, wt5, bias_col)            # (N, 64, 64, nc)
    return jnp.transpose(x, (0, 3, 1, 2))              # back to NCHW


# -------------------------------- pure-JAX ref ------------------------------- #
def ref_forward(z, raw_params):
    """Reference with matching mixed precision (bf16 matmul inputs, f32 acc)."""
    cfgs = [(1, 0), (2, 1), (2, 1), (2, 1), (2, 1)]
    x = z.reshape(z.shape[0], 1, 1, z.shape[1])
    for idx, (p, (s, pad)) in enumerate(zip(raw_params, cfgs)):
        w = p[0]
        k = w.shape[-1]
        wf = jnp.transpose(w[:, :, ::-1, ::-1], (2, 3, 0, 1))   # HWIO direct-conv form
        q = k - 1 - pad
        y = jax.lax.conv_general_dilated(
            x.astype(jnp.bfloat16), wf.astype(jnp.bfloat16),
            window_strides=(1, 1), padding=[(q, q), (q, q)],
            lhs_dilation=(s, s),
            dimension_numbers=("NHWC", "HWIO", "NHWC"),
            preferred_element_type=jnp.float32)
        if idx < 4:
            gamma, beta = p[1], p[2]
            mean = jnp.mean(y, axis=(0, 1, 2), keepdims=True)
            var = jnp.mean(jnp.square(y - mean), axis=(0, 1, 2), keepdims=True)
            y = (y - mean) * jax.lax.rsqrt(var + _BN_EPS) * gamma + beta
            y = jnp.maximum(y, 0.0)
        else:
            y = jnp.tanh(y + p[1])
        x = y
    return jnp.transpose(x, (0, 3, 1, 2))


# ----------------------------------- main ------------------------------------ #
if __name__ == "__main__":
    Z_DIM, NC, HC, BATCH = 32, 1, 16, 2   # small shapes consistent with the module

    key = jax.random.PRNGKey(0)
    key, kp_, kz = jax.random.split(key, 3)
    raw = init_params(kp_, Z_DIM, nc=NC, hidden_channels=HC)
    kparams = prepare_params(raw)
    z = jax.random.normal(kz, (BATCH, Z_DIM), jnp.float32)

    fwd = jax.jit(generator_forward)
    out = jax.block_until_ready(fwd(z, kparams))
    assert out.shape == (BATCH, NC, 64, 64), out.shape

    ref = jax.block_until_ready(ref_forward(z, raw))
    max_err = float(jnp.max(jnp.abs(out - ref)))
    assert np.isfinite(max_err) and max_err < 2e-2, f"max abs err {max_err}"

    print("KERNEL_OK")
</pallas_src>

<mosaic_0001>
module attributes {stable_mosaic.version = 11 : i64} {
  func.func @_dot_bn_relu_kernel(%arg0: i32, %arg1: memref<2x32xbf16, #tpu.memory_space<vmem>>, %arg2: memref<32x2048xbf16, #tpu.memory_space<vmem>>, %arg3: memref<1x128xf32, #tpu.memory_space<vmem>>, %arg4: memref<1x128xf32, #tpu.memory_space<vmem>>, %arg5: memref<2x2048xf32, #tpu.memory_space<vmem>>, %arg6: memref<1x128xf32, #tpu.memory_space<vmem>>, %arg7: memref<1x128xf32, #tpu.memory_space<vmem>>) attributes {dimension_semantics = [#tpu.dimension_semantics<arbitrary>], iteration_bounds = array<i64: 1>, scalar_prefetch = 0 : i64, scratch_operands = 2 : i64, tpu.core_type = #tpu.core_type<tc>, window_params = [{pipeline_mode = #tpu.pipeline_mode<synchronous>, transform_indices = @transform_0, window_bounds = array<i64: 2, 32>}, {pipeline_mode = #tpu.pipeline_mode<synchronous>, transform_indices = @transform_1, window_bounds = array<i64: 32, 2048>}, {pipeline_mode = #tpu.pipeline_mode<synchronous>, transform_indices = @transform_2, window_bounds = array<i64: 1, 128>}, {pipeline_mode = #tpu.pipeline_mode<synchronous>, transform_indices = @transform_3, window_bounds = array<i64: 1, 128>}, {pipeline_mode = #tpu.pipeline_mode<synchronous>, transform_indices = @transform_4, window_bounds = array<i64: 2, 2048>}]} {
    %c0_i32 = arith.constant 0 : i32
    %0 = arith.cmpi eq, %arg0, %c0_i32 : i32
    %1 = arith.extui %0 : i1 to i32
    %c0_i32_0 = arith.constant 0 : i32
    %2 = arith.cmpi ne, %1, %c0_i32_0 : i32
    scf.if %2 {
      %cst_19 = arith.constant 0.000000e+00 : f32
      %90 = vector.broadcast %cst_19 : f32 to vector<1x128xf32>
      %c0_20 = arith.constant 0 : index
      %c0_21 = arith.constant 0 : index
      %91 = vector.load %arg6[%c0_20, %c0_21] : memref<1x128xf32, #tpu.memory_space<vmem>>, vector<1x128xf32>
      tpu.vector_store %arg6[%c0_20, %c0_21], %90 {strides = array<i32>} : memref<1x128xf32, #tpu.memory_space<vmem>>, vector<1x128xf32>,
      %cst_22 = arith.constant 0.000000e+00 : f32
      %92 = vector.broadcast %cst_22 : f32 to vector<1x128xf32>
      %c0_23 = arith.constant 0 : index
      %c0_24 = arith.constant 0 : index
      %93 = vector.load %arg7[%c0_23, %c0_24] : memref<1x128xf32, #tpu.memory_space<vmem>>, vector<1x128xf32>
      tpu.vector_store %arg7[%c0_23, %c0_24], %92 {strides = array<i32>} : memref<1x128xf32, #tpu.memory_space<vmem>>, vector<1x128xf32>,
    } else {
    }
    %c0 = arith.constant 0 : index
    %c0_1 = arith.constant 0 : index
    %3 = vector.load %arg1[%c0, %c0_1] : memref<2x32xbf16, #tpu.memory_space<vmem>>, vector<2x32xbf16>
    %c0_2 = arith.constant 0 : index
    %c0_3 = arith.constant 0 : index
    %4 = vector.load %arg2[%c0_2, %c0_3] : memref<32x2048xbf16, #tpu.memory_space<vmem>>, vector<32x2048xbf16>
    %cst = arith.constant dense<0.000000e+00> : vector<2x2048xf32>
    %5 = tpu.matmul %3, %4, %cst {dimension_numbers = #tpu.dot_dimension_numbers<[1], [0], [0], [1], [0, 0, 1, 1], [], []>} : vector<2x32xbf16>, vector<32x2048xbf16>, vector<2x2048xf32> -> vector<2x2048xf32>
    %cst_4 = arith.constant dense<0.000000e+00> : vector<2048xf32>
    %6 = vector.multi_reduction <add>, %5, %cst_4 [0] : vector<2x2048xf32> to vector<2048xf32>
    %7 = vector.shape_cast %6 : vector<2048xf32> to vector<1x2048xf32>
    %8 = arith.mulf %5, %5 : vector<2x2048xf32>
    %cst_5 = arith.constant dense<0.000000e+00> : vector<2048xf32>
    %9 = vector.multi_reduction <add>, %8, %cst_5 [0] : vector<2x2048xf32> to vector<2048xf32>
    %10 = vector.shape_cast %9 : vector<2048xf32> to vector<1x2048xf32>
    %cst_6 = arith.constant 0.000000e+00 : f32
    %11 = vector.broadcast %cst_6 : f32 to vector<1x128xf32>
    %cst_7 = arith.constant 0.000000e+00 : f32
    %12 = vector.broadcast %cst_7 : f32 to vector<1x128xf32>
    %13 = vector.extract_strided_slice %7 {offsets = [0, 0], sizes = [1, 128], strides = [1, 1]} : vector<1x2048xf32> to vector<1x128xf32>
    %14 = arith.addf %11, %13 : vector<1x128xf32>
    %15 = vector.extract_strided_slice %10 {offsets = [0, 0], sizes = [1, 128], strides = [1, 1]} : vector<1x2048xf32> to vector<1x128xf32>
    %16 = arith.addf %12, %15 : vector<1x128xf32>
    %17 = vector.extract_strided_slice %7 {offsets = [0, 128], sizes = [1, 128], strides = [1, 1]} : vector<1x2048xf32> to vector<1x128xf32>
    %18 = arith.addf %14, %17 : vector<1x128xf32>
    %19 = vector.extract_strided_slice %10 {offsets = [0, 128], sizes = [1, 128], strides = [1, 1]} : vector<1x2048xf32> to vector<1x128xf32>
    %20 = arith.addf %16, %19 : vector<1x128xf32>
    %21 = vector.extract_strided_slice %7 {offsets = [0, 256], sizes = [1, 128], strides = [1, 1]} : vector<1x2048xf32> to vector<1x128xf32>
    %22 = arith.addf %18, %21 : vector<1x128xf32>
    %23 = vector.extract_strided_slice %10 {offsets = [0, 256], sizes = [1, 128], strides = [1, 1]} : vector<1x2048xf32> to vector<1x128xf32>
    %24 = arith.addf %20, %23 : vector<1x128xf32>
    %25 = vector.extract_strided_slice %7 {offsets = [0, 384], sizes = [1, 128], strides = [1, 1]} : vector<1x2048xf32> to vector<1x128xf32>
    %26 = arith.addf %22, %25 : vector<1x128xf32>
    %27 = vector.extract_strided_slice %10 {offsets = [0, 384], sizes = [1, 128], strides = [1, 1]} : vector<1x2048xf32> to vector<1x128xf32>
    %28 = arith.addf %24, %27 : vector<1x128xf32>
    %29 = vector.extract_strided_slice %7 {offsets = [0, 512], sizes = [1, 128], strides = [1, 1]} : vector<1x2048xf32> to vector<1x128xf32>
    %30 = arith.addf %26, %29 : vector<1x128xf32>
    %31 = vector.extract_strided_slice %10 {offsets = [0, 512], sizes = [1, 128], strides = [1, 1]} : vector<1x2048xf32> to vector<1x128xf32>
    %32 = arith.addf %28, %31 : vector<1x128xf32>
    %33 = vector.extract_strided_slice %7 {offsets = [0, 640], sizes = [1, 128], strides = [1, 1]} : vector<1x2048xf32> to vector<1x128xf32>
    %34 = arith.addf %30, %33 : vector<1x128xf32>
    %35 = vector.extract_strided_slice %10 {offsets = [0, 640], sizes = [1, 128], strides = [1, 1]} : vector<1x2048xf32> to vector<1x128xf32>
    %36 = arith.addf %32, %35 : vector<1x128xf32>
    %37 = vector.extract_strided_slice %7 {offsets = [0, 768], sizes = [1, 128], strides = [1, 1]} : vector<1x2048xf32> to vector<1x128xf32>
    %38 = arith.addf %34, %37 : vector<1x128xf32>
    %39 = vector.extract_strided_slice %10 {offsets = [0, 768], sizes = [1, 128], strides = [1, 1]} : vector<1x2048xf32> to vector<1x128xf32>
    %40 = arith.addf %36, %39 : vector<1x128xf32>
    %41 = vector.extract_strided_slice %7 {offsets = [0, 896], sizes = [1, 128], strides = [1, 1]} : vector<1x2048xf32> to vector<1x128xf32>
    %42 = arith.addf %38, %41 : vector<1x128xf32>
    %43 = vector.extract_strided_slice %10 {offsets = [0, 896], sizes = [1, 128], strides = [1, 1]} : vector<1x2048xf32> to vector<1x128xf32>
    %44 = arith.addf %40, %43 : vector<1x128xf32>
    %45 = vector.extract_strided_slice %7 {offsets = [0, 1024], sizes = [1, 128], strides = [1, 1]} : vector<1x2048xf32> to vector<1x128xf32>
    %46 = arith.addf %42, %45 : vector<1x128xf32>
    %47 = vector.extract_strided_slice %10 {offsets = [0, 1024], sizes = [1, 128], strides = [1, 1]} : vector<1x2048xf32> to vector<1x128xf32>
    %48 = arith.addf %44, %47 : vector<1x128xf32>
    %49 = vector.extract_strided_slice %7 {offsets = [0, 1152], sizes = [1, 128], strides = [1, 1]} : vector<1x2048xf32> to vector<1x128xf32>
    %50 = arith.addf %46, %49 : vector<1x128xf32>
    %51 = vector.extract_strided_slice %10 {offsets = [0, 1152], sizes = [1, 128], strides = [1, 1]} : vector<1x2048xf32> to vector<1x128xf32>
    %52 = arith.addf %48, %51 : vector<1x128xf32>
    %53 = vector.extract_strided_slice %7 {offsets = [0, 1280], sizes = [1, 128], strides = [1, 1]} : vector<1x2048xf32> to vector<1x128xf32>
    %54 = arith.addf %50, %53 : vector<1x128xf32>
    %55 = vector.extract_strided_slice %10 {offsets = [0, 1280], sizes = [1, 128], strides = [1, 1]} : vector<1x2048xf32> to vector<1x128xf32>
    %56 = arith.addf %52, %55 : vector<1x128xf32>
    %57 = vector.extract_strided_slice %7 {offsets = [0, 1408], sizes = [1, 128], strides = [1, 1]} : vector<1x2048xf32> to vector<1x128xf32>
    %58 = arith.addf %54, %57 : vector<1x128xf32>
    %59 = vector.extract_strided_slice %10 {offsets = [0, 1408], sizes = [1, 128], strides = [1, 1]} : vector<1x2048xf32> to vector<1x128xf32>
    %60 = arith.addf %56, %59 : vector<1x128xf32>
    %61 = vector.extract_strided_slice %7 {offsets = [0, 1536], sizes = [1, 128], strides = [1, 1]} : vector<1x2048xf32> to vector<1x128xf32>
    %62 = arith.addf %58, %61 : vector<1x128xf32>
    %63 = vector.extract_strided_slice %10 {offsets = [0, 1536], sizes = [1, 128], strides = [1, 1]} : vector<1x2048xf32> to vector<1x128xf32>
    %64 = arith.addf %60, %63 : vector<1x128xf32>
    %65 = vector.extract_strided_slice %7 {offsets = [0, 1664], sizes = [1, 128], strides = [1, 1]} : vector<1x2048xf32> to vector<1x128xf32>
    %66 = arith.addf %62, %65 : vector<1x128xf32>
    %67 = vector.extract_strided_slice %10 {offsets = [0, 1664], sizes = [1, 128], strides = [1, 1]} : vector<1x2048xf32> to vector<1x128xf32>
    %68 = arith.addf %64, %67 : vector<1x128xf32>
    %69 = vector.extract_strided_slice %7 {offsets = [0, 1792], sizes = [1, 128], strides = [1, 1]} : vector<1x2048xf32> to vector<1x128xf32>
    %70 = arith.addf %66, %69 : vector<1x128xf32>
    %71 = vector.extract_strided_slice %10 {offsets = [0, 1792], sizes = [1, 128], strides = [1, 1]} : vector<1x2048xf32> to vector<1x128xf32>
    %72 = arith.addf %68, %71 : vector<1x128xf32>
    %73 = vector.extract_strided_slice %7 {offsets = [0, 1920], sizes = [1, 128], strides = [1, 1]} : vector<1x2048xf32> to vector<1x128xf32>
    %74 = arith.addf %70, %73 : vector<1x128xf32>
    %75 = vector.extract_strided_slice %10 {offsets = [0, 1920], sizes = [1, 128], strides = [1, 1]} : vector<1x2048xf32> to vector<1x128xf32>
    %76 = arith.addf %72, %75 : vector<1x128xf32>
    %c0_8 = arith.constant 0 : index
    %c0_9 = arith.constant 0 : index
    %77 = vector.load %arg6[%c0_8, %c0_9] : memref<1x128xf32, #tpu.memory_space<vmem>>, vector<1x128xf32>
    %78 = arith.addf %77, %74 : vector<1x128xf32>
    %c0_10 = arith.constant 0 : index
    %c0_11 = arith.constant 0 : index
    %79 = vector.load %arg6[%c0_10, %c0_11] : memref<1x128xf32, #tpu.memory_space<vmem>>, vector<1x128xf32>
    tpu.vector_store %arg6[%c0_10, %c0_11], %78 {strides = array<i32>} : memref<1x128xf32, #tpu.memory_space<vmem>>, vector<1x128xf32>,
    %c0_12 = arith.constant 0 : index
    %c0_13 = arith.constant 0 : index
    %80 = vector.load %arg7[%c0_12, %c0_13] : memref<1x128xf32, #tpu.memory_space<vmem>>, vector<1x128xf32>
    %81 = arith.addf %80, %76 : vector<1x128xf32>
    %c0_14 = arith.constant 0 : index
    %c0_15 = arith.constant 0 : index
    %82 = vector.load %arg7[%c0_14, %c0_15] : memref<1x128xf32, #tpu.memory_space<vmem>>, vector<1x128xf32>
    tpu.vector_store %arg7[%c0_14, %c0_15], %81 {strides = array<i32>} : memref<1x128xf32, #tpu.memory_space<vmem>>, vector<1x128xf32>,
    %c2_i32 = arith.constant 2 : i32
    %83 = arith.muli %arg0, %c2_i32 : i32
    %84 = tpu.assume_multiple %83, 2 : i32
    %85 = arith.index_cast %84 : i32 to index
    %c0_16 = arith.constant 0 : index
    %86 = vector.load %arg5[%85, %c0_16] : memref<2x2048xf32, #tpu.memory_space<vmem>>, vector<2x2048xf32>
    tpu.vector_store %arg5[%85, %c0_16], %5 {strides = array<i32>} : memref<2x2048xf32, #tpu.memory_space<vmem>>, vector<2x2048xf32>,
    %c0_i32_17 = arith.constant 0 : i32
    %87 = arith.cmpi eq, %arg0, %c0_i32_17 : i32
    %88 = arith.extui %87 : i1 to i32
    %c0_i32_18 = arith.constant 0 : i32
    %89 = arith.cmpi ne, %88, %c0_i32_18 : i32
    scf.if %89 {
      %c0_19 = arith.constant 0 : index
      %c0_20 = arith.constant 0 : index
      %90 = vector.load %arg6[%c0_19, %c0_20] : memref<1x128xf32, #tpu.memory_space<vmem>>, vector<1x128xf32>
      %cst_21 = arith.constant 3.200000e+01 : f32
      %91 = vector.broadcast %cst_21 : f32 to vector<1x128xf32>
      %92 = arith.divf %90, %91 : vector<1x128xf32>
      %c0_22 = arith.constant 0 : index
      %c0_23 = arith.constant 0 : index
      %93 = vector.load %arg7[%c0_22, %c0_23] : memref<1x128xf32, #tpu.memory_space<vmem>>, vector<1x128xf32>
      %cst_24 = arith.constant 3.200000e+01 : f32
      %94 = vector.broadcast %cst_24 : f32 to vector<1x128xf32>
      %95 = arith.divf %93, %94 : vector<1x128xf32>
      %96 = arith.mulf %92, %92 : vector<1x128xf32>
      %97 = arith.subf %95, %96 : vector<1x128xf32>
      %c0_25 = arith.constant 0 : index
      %c0_26 = arith.constant 0 : index
      %98 = vector.load %arg3[%c0_25, %c0_26] : memref<1x128xf32, #tpu.memory_space<vmem>>, vector<1x128xf32>
      %cst_27 = arith.constant 9.99999974E-6 : f32
      %99 = vector.broadcast %cst_27 : f32 to vector<1x128xf32>
      %100 = arith.addf %97, %99 : vector<1x128xf32>
      %101 = math.rsqrt %100 : vector<1x128xf32>
      %102 = arith.mulf %98, %101 : vector<1x128xf32>
      %c0_28 = arith.constant 0 : index
      %c0_29 = arith.constant 0 : index
      %103 = vector.load %arg4[%c0_28, %c0_29] : memref<1x128xf32, #tpu.memory_space<vmem>>, vector<1x128xf32>
      %104 = arith.mulf %92, %102 : vector<1x128xf32>
      %105 = arith.subf %103, %104 : vector<1x128xf32>
      %106 = tpu.concatenate %102, %102, %102, %102, %102, %102, %102, %102, %102, %102, %102, %102, %102, %102, %102, %102 in 1 : vector<1x128xf32>, vector<1x128xf32>, vector<1x128xf32>, vector<1x128xf32>, vector<1x128xf32>, vector<1x128xf32>, vector<1x128xf32>, vector<1x128xf32>, vector<1x128xf32>, vector<1x128xf32>, vector<1x128xf32>, vector<1x128xf32>, vector<1x128xf32>, vector<1x128xf32>, vector<1x128xf32>, vector<1x128xf32> -> vector<1x2048xf32>
      %107 = tpu.concatenate %105, %105, %105, %105, %105, %105, %105, %105, %105, %105, %105, %105, %105, %105, %105, %105 in 1 : vector<1x128xf32>, vector<1x128xf32>, vector<1x128xf32>, vector<1x128xf32>, vector<1x128xf32>, vector<1x128xf32>, vector<1x128xf32>, vector<1x128xf32>, vector<1x128xf32>, vector<1x128xf32>, vector<1x128xf32>, vector<1x128xf32>, vector<1x128xf32>, vector<1x128xf32>, vector<1x128xf32>, vector<1x128xf32> -> vector<1x2048xf32>
      %c0_i32_30 = arith.constant 0 : i32
      %c2_i32_31 = arith.constant 2 : i32
      %108 = arith.muli %c0_i32_30, %c2_i32_31 : i32
      %109 = tpu.assume_multiple %108, 2 : i32
      %110 = arith.index_cast %109 : i32 to index
      %c0_32 = arith.constant 0 : index
      %111 = vector.load %arg5[%110, %c0_32] : memref<2x2048xf32, #tpu.memory_space<vmem>>, vector<2x2048xf32>
      %112 = vector.broadcast %106 : vector<1x2048xf32> to vector<2x2048xf32>
      %113 = arith.mulf %111, %112 : vector<2x2048xf32>
      %114 = vector.broadcast %107 : vector<1x2048xf32> to vector<2x2048xf32>
      %115 = arith.addf %113, %114 : vector<2x2048xf32>
      %cst_33 = arith.constant 0.000000e+00 : f32
      %116 = vector.broadcast %cst_33 : f32 to vector<2x2048xf32>
      %117 = arith.maximumf %115, %116 : vector<2x2048xf32>
      %118 = arith.index_cast %109 : i32 to index
      %c0_34 = arith.constant 0 : index
      %119 = vector.load %arg5[%118, %c0_34] : memref<2x2048xf32, #tpu.memory_space<vmem>>, vector<2x2048xf32>
      tpu.vector_store %arg5[%118, %c0_34], %117 {strides = array<i32>} : memref<2x2048xf32, #tpu.memory_space<vmem>>, vector<2x2048xf32>,
      %c1_i32 = arith.constant 1 : i32
    } else {
    }
    return
  }
  func.func @transform_0(%arg0: i32) -> (i32, i32) {
    %c0_i32 = arith.constant 0 : i32
    %c0_i32_0 = arith.constant 0 : i32
    %c0_i32_1 = arith.constant 0 : i32
    return %c0_i32, %c0_i32_0 : i32, i32
  }
  func.func @transform_1(%arg0: i32) -> (i32, i32) {
    %c0_i32 = arith.constant 0 : i32
    %c0_i32_0 = arith.constant 0 : i32
    %c0_i32_1 = arith.constant 0 : i32
    return %c0_i32, %c0_i32_0 : i32, i32
  }
  func.func @transform_2(%arg0: i32) -> (i32, i32) {
    %c0_i32 = arith.constant 0 : i32
    %c0_i32_0 = arith.constant 0 : i32
    %c0_i32_1 = arith.constant 0 : i32
    return %c0_i32, %c0_i32_0 : i32, i32
  }
  func.func @transform_3(%arg0: i32) -> (i32, i32) {
    %c0_i32 = arith.constant 0 : i32
    %c0_i32_0 = arith.constant 0 : i32
    %c0_i32_1 = arith.constant 0 : i32
    return %c0_i32, %c0_i32_0 : i32, i32
  }
  func.func @transform_4(%arg0: i32) -> (i32, i32) {
    %c0_i32 = arith.constant 0 : i32
    %c0_i32_0 = arith.constant 0 : i32
    %c0_i32_1 = arith.constant 0 : i32
    return %c0_i32, %c0_i32_0 : i32, i32
  }
}

module attributes {stable_mosaic.version = 11 : i64} {
  func.func @_dot_bn_relu_kernel(%arg0: i32, %arg1: memref<32x1152xbf16, #tpu.memory_space<vmem>>, %arg2: memref<1152x256xbf16, #tpu.memory_space<vmem>>, %arg3: memref<1x64xf32, #tpu.memory_space<vmem>>, %arg4: memref<1x64xf32, #tpu.memory_space<vmem>>, %arg5: memref<32x256xf32, #tpu.memory_space<vmem>>, %arg6: memref<1x64xf32, #tpu.memory_space<vmem>>, %arg7: memref<1x64xf32, #tpu.memory_space<vmem>>) attributes {dimension_semantics = [#tpu.dimension_semantics<arbitrary>], iteration_bounds = array<i64: 1>, scalar_prefetch = 0 : i64, scratch_operands = 2 : i64, tpu.core_type = #tpu.core_type<tc>, window_params = [{transform_indices = @transform_0, window_bounds = array<i64: 32, 1152>}, {pipeline_mode = #tpu.pipeline_mode<synchronous>, transform_indices = @transform_1, window_bounds = array<i64: 1152, 256>}, {pipeline_mode = #tpu.pipeline_mode<synchronous>, transform_indices = @transform_2, window_bounds = array<i64: 1, 64>}, {pipeline_mode = #tpu.pipeline_mode<synchronous>, transform_indices = @transform_3, window_bounds = array<i64: 1, 64>}, {pipeline_mode = #tpu.pipeline_mode<synchronous>, transform_indices = @transform_4, window_bounds = array<i64: 32, 256>}]} {
    %c0_i32 = arith.constant 0 : i32
    %0 = arith.cmpi eq, %arg0, %c0_i32 : i32
    %1 = arith.extui %0 : i1 to i32
    %c0_i32_0 = arith.constant 0 : i32
    %2 = arith.cmpi ne, %1, %c0_i32_0 : i32
    scf.if %2 {
      %cst_19 = arith.constant 0.000000e+00 : f32
      %42 = vector.broadcast %cst_19 : f32 to vector<1x64xf32>
      %c0_20 = arith.constant 0 : index
      %c0_21 = arith.constant 0 : index
      %43 = vector.load %arg6[%c0_20, %c0_21] : memref<1x64xf32, #tpu.memory_space<vmem>>, vector<1x64xf32>
      tpu.vector_store %arg6[%c0_20, %c0_21], %42 {strides = array<i32>} : memref<1x64xf32, #tpu.memory_space<vmem>>, vector<1x64xf32>,
      %cst_22 = arith.constant 0.000000e+00 : f32
      %44 = vector.broadcast %cst_22 : f32 to vector<1x64xf32>
      %c0_23 = arith.constant 0 : index
      %c0_24 = arith.constant 0 : index
      %45 = vector.load %arg7[%c0_23, %c0_24] : memref<1x64xf32, #tpu.memory_space<vmem>>, vector<1x64xf32>
      tpu.vector_store %arg7[%c0_23, %c0_24], %44 {strides = array<i32>} : memref<1x64xf32, #tpu.memory_space<vmem>>, vector<1x64xf32>,
    } else {
    }
    %c0 = arith.constant 0 : index
    %c0_1 = arith.constant 0 : index
    %3 = vector.load %arg1[%c0, %c0_1] : memref<32x1152xbf16, #tpu.memory_space<vmem>>, vector<32x1152xbf16>
    %c0_2 = arith.constant 0 : index
    %c0_3 = arith.constant 0 : index
    %4 = vector.load %arg2[%c0_2, %c0_3] : memref<1152x256xbf16, #tpu.memory_space<vmem>>, vector<1152x256xbf16>
    %cst = arith.constant dense<0.000000e+00> : vector<32x256xf32>
    %5 = tpu.matmul %3, %4, %cst {dimension_numbers = #tpu.dot_dimension_numbers<[1], [0], [0], [1], [0, 0, 1, 1], [], []>} : vector<32x1152xbf16>, vector<1152x256xbf16>, vector<32x256xf32> -> vector<32x256xf32>
    %cst_4 = arith.constant dense<0.000000e+00> : vector<256xf32>
    %6 = vector.multi_reduction <add>, %5, %cst_4 [0] : vector<32x256xf32> to vector<256xf32>
    %7 = vector.shape_cast %6 : vector<256xf32> to vector<1x256xf32>
    %8 = arith.mulf %5, %5 : vector<32x256xf32>
    %cst_5 = arith.constant dense<0.000000e+00> : vector<256xf32>
    %9 = vector.multi_reduction <add>, %8, %cst_5 [0] : vector<32x256xf32> to vector<256xf32>
    %10 = vector.shape_cast %9 : vector<256xf32> to vector<1x256xf32>
    %cst_6 = arith.constant 0.000000e+00 : f32
    %11 = vector.broadcast %cst_6 : f32 to vector<1x64xf32>
    %cst_7 = arith.constant 0.000000e+00 : f32
    %12 = vector.broadcast %cst_7 : f32 to vector<1x64xf32>
    %13 = vector.extract_strided_slice %7 {offsets = [0, 0], sizes = [1, 64], strides = [1, 1]} : vector<1x256xf32> to vector<1x64xf32>
    %14 = arith.addf %11, %13 : vector<1x64xf32>
    %15 = vector.extract_strided_slice %10 {offsets = [0, 0], sizes = [1, 64], strides = [1, 1]} : vector<1x256xf32> to vector<1x64xf32>
    %16 = arith.addf %12, %15 : vector<1x64xf32>
    %17 = vector.extract_strided_slice %7 {offsets = [0, 64], sizes = [1, 64], strides = [1, 1]} : vector<1x256xf32> to vector<1x64xf32>
    %18 = arith.addf %14, %17 : vector<1x64xf32>
    %19 = vector.extract_strided_slice %10 {offsets = [0, 64], sizes = [1, 64], strides = [1, 1]} : vector<1x256xf32> to vector<1x64xf32>
    %20 = arith.addf %16, %19 : vector<1x64xf32>
    %21 = vector.extract_strided_slice %7 {offsets = [0, 128], sizes = [1, 64], strides = [1, 1]} : vector<1x256xf32> to vector<1x64xf32>
    %22 = arith.addf %18, %21 : vector<1x64xf32>
    %23 = vector.extract_strided_slice %10 {offsets = [0, 128], sizes = [1, 64], strides = [1, 1]} : vector<1x256xf32> to vector<1x64xf32>
    %24 = arith.addf %20, %23 : vector<1x64xf32>
    %25 = vector.extract_strided_slice %7 {offsets = [0, 192], sizes = [1, 64], strides = [1, 1]} : vector<1x256xf32> to vector<1x64xf32>
    %26 = arith.addf %22, %25 : vector<1x64xf32>
    %27 = vector.extract_strided_slice %10 {offsets = [0, 192], sizes = [1, 64], strides = [1, 1]} : vector<1x256xf32> to vector<1x64xf32>
    %28 = arith.addf %24, %27 : vector<1x64xf32>
    %c0_8 = arith.constant 0 : index
    %c0_9 = arith.constant 0 : index
    %29 = vector.load %arg6[%c0_8, %c0_9] : memref<1x64xf32, #tpu.memory_space<vmem>>, vector<1x64xf32>
    %30 = arith.addf %29, %26 : vector<1x64xf32>
    %c0_10 = arith.constant 0 : index
    %c0_11 = arith.constant 0 : index
    %31 = vector.load %arg6[%c0_10, %c0_11] : memref<1x64xf32, #tpu.memory_space<vmem>>, vector<1x64xf32>
    tpu.vector_store %arg6[%c0_10, %c0_11], %30 {strides = array<i32>} : memref<1x64xf32, #tpu.memory_space<vmem>>, vector<1x64xf32>,
    %c0_12 = arith.constant 0 : index
    %c0_13 = arith.constant 0 : index
    %32 = vector.load %arg7[%c0_12, %c0_13] : memref<1x64xf32, #tpu.memory_space<vmem>>, vector<1x64xf32>
    %33 = arith.addf %32, %28 : vector<1x64xf32>
    %c0_14 = arith.constant 0 : index
    %c0_15 = arith.constant 0 : index
    %34 = vector.load %arg7[%c0_14, %c0_15] : memref<1x64xf32, #tpu.memory_space<vmem>>, vector<1x64xf32>
    tpu.vector_store %arg7[%c0_14, %c0_15], %33 {strides = array<i32>} : memref<1x64xf32, #tpu.memory_space<vmem>>, vector<1x64xf32>,
    %c32_i32 = arith.constant 32 : i32
    %35 = arith.muli %arg0, %c32_i32 : i32
    %36 = tpu.assume_multiple %35, 32 : i32
    %37 = arith.index_cast %36 : i32 to index
    %c0_16 = arith.constant 0 : index
    %38 = vector.load %arg5[%37, %c0_16] : memref<32x256xf32, #tpu.memory_space<vmem>>, vector<32x256xf32>
    tpu.vector_store %arg5[%37, %c0_16], %5 {strides = array<i32>} : memref<32x256xf32, #tpu.memory_space<vmem>>, vector<32x256xf32>,
    %c0_i32_17 = arith.constant 0 : i32
    %39 = arith.cmpi eq, %arg0, %c0_i32_17 : i32
    %40 = arith.extui %39 : i1 to i32
    %c0_i32_18 = arith.constant 0 : i32
    %41 = arith.cmpi ne, %40, %c0_i32_18 : i32
    scf.if %41 {
      %c0_19 = arith.constant 0 : index
      %c0_20 = arith.constant 0 : index
      %42 = vector.load %arg6[%c0_19, %c0_20] : memref<1x64xf32, #tpu.memory_space<vmem>>, vector<1x64xf32>
      %cst_21 = arith.constant 1.280000e+02 : f32
      %43 = vector.broadcast %cst_21 : f32 to vector<1x64xf32>
      %44 = arith.divf %42, %43 : vector<1x64xf32>
      %c0_22 = arith.constant 0 : index
      %c0_23 = arith.constant 0 : index
      %45 = vector.load %arg7[%c0_22, %c0_23] : memref<1x64xf32, #tpu.memory_space<vmem>>, vector<1x64xf32>
      %cst_24 = arith.constant 1.280000e+02 : f32
      %46 = vector.broadcast %cst_24 : f32 to vector<1x64xf32>
      %47 = arith.divf %45, %46 : vector<1x64xf32>
      %48 = arith.mulf %44, %44 : vector<1x64xf32>
      %49 = arith.subf %47, %48 : vector<1x64xf32>
      %c0_25 = arith.constant 0 : index
      %c0_26 = arith.constant 0 : index
      %50 = vector.load %arg3[%c0_25, %c0_26] : memref<1x64xf32, #tpu.memory_space<vmem>>, vector<1x64xf32>
      %cst_27 = arith.constant 9.99999974E-6 : f32
      %51 = vector.broadcast %cst_27 : f32 to vector<1x64xf32>
      %52 = arith.addf %49, %51 : vector<1x64xf32>
      %53 = math.rsqrt %52 : vector<1x64xf32>
      %54 = arith.mulf %50, %53 : vector<1x64xf32>
      %c0_28 = arith.constant 0 : index
      %c0_29 = arith.constant 0 : index
      %55 = vector.load %arg4[%c0_28, %c0_29] : memref<1x64xf32, #tpu.memory_space<vmem>>, vector<1x64xf32>
      %56 = arith.mulf %44, %54 : vector<1x64xf32>
      %57 = arith.subf %55, %56 : vector<1x64xf32>
      %58 = tpu.concatenate %54, %54, %54, %54 in 1 : vector<1x64xf32>, vector<1x64xf32>, vector<1x64xf32>, vector<1x64xf32> -> vector<1x256xf32>
      %59 = tpu.concatenate %57, %57, %57, %57 in 1 : vector<1x64xf32>, vector<1x64xf32>, vector<1x64xf32>, vector<1x64xf32> -> vector<1x256xf32>
      %c0_i32_30 = arith.constant 0 : i32
      %c32_i32_31 = arith.constant 32 : i32
      %60 = arith.muli %c0_i32_30, %c32_i32_31 : i32
      %61 = tpu.assume_multiple %60, 32 : i32
      %62 = arith.index_cast %61 : i32 to index
      %c0_32 = arith.constant 0 : index
      %63 = vector.load %arg5[%62, %c0_32] : memref<32x256xf32, #tpu.memory_space<vmem>>, vector<32x256xf32>
      %64 = vector.broadcast %58 : vector<1x256xf32> to vector<32x256xf32>
      %65 = arith.mulf %63, %64 : vector<32x256xf32>
      %66 = vector.broadcast %59 : vector<1x256xf32> to vector<32x256xf32>
      %67 = arith.addf %65, %66 : vector<32x256xf32>
      %cst_33 = arith.constant 0.000000e+00 : f32
      %68 = vector.broadcast %cst_33 : f32 to vector<32x256xf32>
      %69 = arith.maximumf %67, %68 : vector<32x256xf32>
      %70 = arith.index_cast %61 : i32 to index
      %c0_34 = arith.constant 0 : index
      %71 = vector.load %arg5[%70, %c0_34] : memref<32x256xf32, #tpu.memory_space<vmem>>, vector<32x256xf32>
      tpu.vector_store %arg5[%70, %c0_34], %69 {strides = array<i32>} : memref<32x256xf32, #tpu.memory_space<vmem>>, vector<32x256xf32>,
      %c1_i32 = arith.constant 1 : i32
    } else {
    }
    return
  }
  func.func @transform_0(%arg0: i32) -> (i32, i32) {
    %c0_i32 = arith.constant 0 : i32
    %c0_i32_0 = arith.constant 0 : i32
    return %arg0, %c0_i32 : i32, i32
  }
  func.func @transform_1(%arg0: i32) -> (i32, i32) {
    %c0_i32 = arith.constant 0 : i32
    %c0_i32_0 = arith.constant 0 : i32
    %c0_i32_1 = arith.constant 0 : i32
    return %c0_i32, %c0_i32_0 : i32, i32
  }
  func.func @transform_2(%arg0: i32) -> (i32, i32) {
    %c0_i32 = arith.constant 0 : i32
    %c0_i32_0 = arith.constant 0 : i32
    %c0_i32_1 = arith.constant 0 : i32
    return %c0_i32, %c0_i32_0 : i32, i32
  }
  func.func @transform_3(%arg0: i32) -> (i32, i32) {
    %c0_i32 = arith.constant 0 : i32
    %c0_i32_0 = arith.constant 0 : i32
    %c0_i32_1 = arith.constant 0 : i32
    return %c0_i32, %c0_i32_0 : i32, i32
  }
  func.func @transform_4(%arg0: i32) -> (i32, i32) {
    %c0_i32 = arith.constant 0 : i32
    %c0_i32_0 = arith.constant 0 : i32
    %c0_i32_1 = arith.constant 0 : i32
    return %c0_i32, %c0_i32_0 : i32, i32
  }
}

module attributes {stable_mosaic.version = 11 : i64} {
  func.func @_dot_bn_relu_kernel(%arg0: i32, %arg1: memref<128x576xbf16, #tpu.memory_space<vmem>>, %arg2: memref<576x128xbf16, #tpu.memory_space<vmem>>, %arg3: memref<1x32xf32, #tpu.memory_space<vmem>>, %arg4: memref<1x32xf32, #tpu.memory_space<vmem>>, %arg5: memref<128x128xf32, #tpu.memory_space<vmem>>, %arg6: memref<1x32xf32, #tpu.memory_space<vmem>>, %arg7: memref<1x32xf32, #tpu.memory_space<vmem>>) attributes {dimension_semantics = [#tpu.dimension_semantics<arbitrary>], iteration_bounds = array<i64: 1>, scalar_prefetch = 0 : i64, scratch_operands = 2 : i64, tpu.core_type = #tpu.core_type<tc>, window_params = [{transform_indices = @transform_0, window_bounds = array<i64: 128, 576>}, {pipeline_mode = #tpu.pipeline_mode<synchronous>, transform_indices = @transform_1, window_bounds = array<i64: 576, 128>}, {pipeline_mode = #tpu.pipeline_mode<synchronous>, transform_indices = @transform_2, window_bounds = array<i64: 1, 32>}, {pipeline_mode = #tpu.pipeline_mode<synchronous>, transform_indices = @transform_3, window_bounds = array<i64: 1, 32>}, {pipeline_mode = #tpu.pipeline_mode<synchronous>, transform_indices = @transform_4, window_bounds = array<i64: 128, 128>}]} {
    %c0_i32 = arith.constant 0 : i32
    %0 = arith.cmpi eq, %arg0, %c0_i32 : i32
    %1 = arith.extui %0 : i1 to i32
    %c0_i32_0 = arith.constant 0 : i32
    %2 = arith.cmpi ne, %1, %c0_i32_0 : i32
    scf.if %2 {
      %cst_19 = arith.constant 0.000000e+00 : f32
      %42 = vector.broadcast %cst_19 : f32 to vector<1x32xf32>
      %c0_20 = arith.constant 0 : index
      %c0_21 = arith.constant 0 : index
      %43 = vector.load %arg6[%c0_20, %c0_21] : memref<1x32xf32, #tpu.memory_space<vmem>>, vector<1x32xf32>
      tpu.vector_store %arg6[%c0_20, %c0_21], %42 {strides = array<i32>} : memref<1x32xf32, #tpu.memory_space<vmem>>, vector<1x32xf32>,
      %cst_22 = arith.constant 0.000000e+00 : f32
      %44 = vector.broadcast %cst_22 : f32 to vector<1x32xf32>
      %c0_23 = arith.constant 0 : index
      %c0_24 = arith.constant 0 : index
      %45 = vector.load %arg7[%c0_23, %c0_24] : memref<1x32xf32, #tpu.memory_space<vmem>>, vector<1x32xf32>
      tpu.vector_store %arg7[%c0_23, %c0_24], %44 {strides = array<i32>} : memref<1x32xf32, #tpu.memory_space<vmem>>, vector<1x32xf32>,
    } else {
    }
    %c0 = arith.constant 0 : index
    %c0_1 = arith.constant 0 : index
    %3 = vector.load %arg1[%c0, %c0_1] : memref<128x576xbf16, #tpu.memory_space<vmem>>, vector<128x576xbf16>
    %c0_2 = arith.constant 0 : index
    %c0_3 = arith.constant 0 : index
    %4 = vector.load %arg2[%c0_2, %c0_3] : memref<576x128xbf16, #tpu.memory_space<vmem>>, vector<576x128xbf16>
    %cst = arith.constant dense<0.000000e+00> : vector<128x128xf32>
    %5 = tpu.matmul %3, %4, %cst {dimension_numbers = #tpu.dot_dimension_numbers<[1], [0], [0], [1], [0, 0, 1, 1], [], []>} : vector<128x576xbf16>, vector<576x128xbf16>, vector<128x128xf32> -> vector<128x128xf32>
    %cst_4 = arith.constant dense<0.000000e+00> : vector<128xf32>
    %6 = vector.multi_reduction <add>, %5, %cst_4 [0] : vector<128x128xf32> to vector<128xf32>
    %7 = vector.shape_cast %6 : vector<128xf32> to vector<1x128xf32>
    %8 = arith.mulf %5, %5 : vector<128x128xf32>
    %cst_5 = arith.constant dense<0.000000e+00> : vector<128xf32>
    %9 = vector.multi_reduction <add>, %8, %cst_5 [0] : vector<128x128xf32> to vector<128xf32>
    %10 = vector.shape_cast %9 : vector<128xf32> to vector<1x128xf32>
    %cst_6 = arith.constant 0.000000e+00 : f32
    %11 = vector.broadcast %cst_6 : f32 to vector<1x32xf32>
    %cst_7 = arith.constant 0.000000e+00 : f32
    %12 = vector.broadcast %cst_7 : f32 to vector<1x32xf32>
    %13 = vector.extract_strided_slice %7 {offsets = [0, 0], sizes = [1, 32], strides = [1, 1]} : vector<1x128xf32> to vector<1x32xf32>
    %14 = arith.addf %11, %13 : vector<1x32xf32>
    %15 = vector.extract_strided_slice %10 {offsets = [0, 0], sizes = [1, 32], strides = [1, 1]} : vector<1x128xf32> to vector<1x32xf32>
    %16 = arith.addf %12, %15 : vector<1x32xf32>
    %17 = vector.extract_strided_slice %7 {offsets = [0, 32], sizes = [1, 32], strides = [1, 1]} : vector<1x128xf32> to vector<1x32xf32>
    %18 = arith.addf %14, %17 : vector<1x32xf32>
    %19 = vector.extract_strided_slice %10 {offsets = [0, 32], sizes = [1, 32], strides = [1, 1]} : vector<1x128xf32> to vector<1x32xf32>
    %20 = arith.addf %16, %19 : vector<1x32xf32>
    %21 = vector.extract_strided_slice %7 {offsets = [0, 64], sizes = [1, 32], strides = [1, 1]} : vector<1x128xf32> to vector<1x32xf32>
    %22 = arith.addf %18, %21 : vector<1x32xf32>
    %23 = vector.extract_strided_slice %10 {offsets = [0, 64], sizes = [1, 32], strides = [1, 1]} : vector<1x128xf32> to vector<1x32xf32>
    %24 = arith.addf %20, %23 : vector<1x32xf32>
    %25 = vector.extract_strided_slice %7 {offsets = [0, 96], sizes = [1, 32], strides = [1, 1]} : vector<1x128xf32> to vector<1x32xf32>
    %26 = arith.addf %22, %25 : vector<1x32xf32>
    %27 = vector.extract_strided_slice %10 {offsets = [0, 96], sizes = [1, 32], strides = [1, 1]} : vector<1x128xf32> to vector<1x32xf32>
    %28 = arith.addf %24, %27 : vector<1x32xf32>
    %c0_8 = arith.constant 0 : index
    %c0_9 = arith.constant 0 : index
    %29 = vector.load %arg6[%c0_8, %c0_9] : memref<1x32xf32, #tpu.memory_space<vmem>>, vector<1x32xf32>
    %30 = arith.addf %29, %26 : vector<1x32xf32>
    %c0_10 = arith.constant 0 : index
    %c0_11 = arith.constant 0 : index
    %31 = vector.load %arg6[%c0_10, %c0_11] : memref<1x32xf32, #tpu.memory_space<vmem>>, vector<1x32xf32>
    tpu.vector_store %arg6[%c0_10, %c0_11], %30 {strides = array<i32>} : memref<1x32xf32, #tpu.memory_space<vmem>>, vector<1x32xf32>,
    %c0_12 = arith.constant 0 : index
    %c0_13 = arith.constant 0 : index
    %32 = vector.load %arg7[%c0_12, %c0_13] : memref<1x32xf32, #tpu.memory_space<vmem>>, vector<1x32xf32>
    %33 = arith.addf %32, %28 : vector<1x32xf32>
    %c0_14 = arith.constant 0 : index
    %c0_15 = arith.constant 0 : index
    %34 = vector.load %arg7[%c0_14, %c0_15] : memref<1x32xf32, #tpu.memory_space<vmem>>, vector<1x32xf32>
    tpu.vector_store %arg7[%c0_14, %c0_15], %33 {strides = array<i32>} : memref<1x32xf32, #tpu.memory_space<vmem>>, vector<1x32xf32>,
    %c128_i32 = arith.constant 128 : i32
    %35 = arith.muli %arg0, %c128_i32 : i32
    %36 = tpu.assume_multiple %35, 128 : i32
    %37 = arith.index_cast %36 : i32 to index
    %c0_16 = arith.constant 0 : index
    %38 = vector.load %arg5[%37, %c0_16] : memref<128x128xf32, #tpu.memory_space<vmem>>, vector<128x128xf32>
    tpu.vector_store %arg5[%37, %c0_16], %5 {strides = array<i32>} : memref<128x128xf32, #tpu.memory_space<vmem>>, vector<128x128xf32>,
    %c0_i32_17 = arith.constant 0 : i32
    %39 = arith.cmpi eq, %arg0, %c0_i32_17 : i32
    %40 = arith.extui %39 : i1 to i32
    %c0_i32_18 = arith.constant 0 : i32
    %41 = arith.cmpi ne, %40, %c0_i32_18 : i32
    scf.if %41 {
      %c0_19 = arith.constant 0 : index
      %c0_20 = arith.constant 0 : index
      %42 = vector.load %arg6[%c0_19, %c0_20] : memref<1x32xf32, #tpu.memory_space<vmem>>, vector<1x32xf32>
      %cst_21 = arith.constant 5.120000e+02 : f32
      %43 = vector.broadcast %cst_21 : f32 to vector<1x32xf32>
      %44 = arith.divf %42, %43 : vector<1x32xf32>
      %c0_22 = arith.constant 0 : index
      %c0_23 = arith.constant 0 : index
      %45 = vector.load %arg7[%c0_22, %c0_23] : memref<1x32xf32, #tpu.memory_space<vmem>>, vector<1x32xf32>
      %cst_24 = arith.constant 5.120000e+02 : f32
      %46 = vector.broadcast %cst_24 : f32 to vector<1x32xf32>
      %47 = arith.divf %45, %46 : vector<1x32xf32>
      %48 = arith.mulf %44, %44 : vector<1x32xf32>
      %49 = arith.subf %47, %48 : vector<1x32xf32>
      %c0_25 = arith.constant 0 : index
      %c0_26 = arith.constant 0 : index
      %50 = vector.load %arg3[%c0_25, %c0_26] : memref<1x32xf32, #tpu.memory_space<vmem>>, vector<1x32xf32>
      %cst_27 = arith.constant 9.99999974E-6 : f32
      %51 = vector.broadcast %cst_27 : f32 to vector<1x32xf32>
      %52 = arith.addf %49, %51 : vector<1x32xf32>
      %53 = math.rsqrt %52 : vector<1x32xf32>
      %54 = arith.mulf %50, %53 : vector<1x32xf32>
      %c0_28 = arith.constant 0 : index
      %c0_29 = arith.constant 0 : index
      %55 = vector.load %arg4[%c0_28, %c0_29] : memref<1x32xf32, #tpu.memory_space<vmem>>, vector<1x32xf32>
      %56 = arith.mulf %44, %54 : vector<1x32xf32>
      %57 = arith.subf %55, %56 : vector<1x32xf32>
      %58 = tpu.concatenate %54, %54, %54, %54 in 1 : vector<1x32xf32>, vector<1x32xf32>, vector<1x32xf32>, vector<1x32xf32> -> vector<1x128xf32>
      %59 = tpu.concatenate %57, %57, %57, %57 in 1 : vector<1x32xf32>, vector<1x32xf32>, vector<1x32xf32>, vector<1x32xf32> -> vector<1x128xf32>
      %c0_i32_30 = arith.constant 0 : i32
      %c128_i32_31 = arith.constant 128 : i32
      %60 = arith.muli %c0_i32_30, %c128_i32_31 : i32
      %61 = tpu.assume_multiple %60, 128 : i32
      %62 = arith.index_cast %61 : i32 to index
      %c0_32 = arith.constant 0 : index
      %63 = vector.load %arg5[%62, %c0_32] : memref<128x128xf32, #tpu.memory_space<vmem>>, vector<128x128xf32>
      %64 = vector.broadcast %58 : vector<1x128xf32> to vector<128x128xf32>
      %65 = arith.mulf %63, %64 : vector<128x128xf32>
      %66 = vector.broadcast %59 : vector<1x128xf32> to vector<128x128xf32>
      %67 = arith.addf %65, %66 : vector<128x128xf32>
      %cst_33 = arith.constant 0.000000e+00 : f32
      %68 = vector.broadcast %cst_33 : f32 to vector<128x128xf32>
      %69 = arith.maximumf %67, %68 : vector<128x128xf32>
      %70 = arith.index_cast %61 : i32 to index
      %c0_34 = arith.constant 0 : index
      %71 = vector.load %arg5[%70, %c0_34] : memref<128x128xf32, #tpu.memory_space<vmem>>, vector<128x128xf32>
      tpu.vector_store %arg5[%70, %c0_34], %69 {strides = array<i32>} : memref<128x128xf32, #tpu.memory_space<vmem>>, vector<128x128xf32>,
      %c1_i32 = arith.constant 1 : i32
    } else {
    }
    return
  }
  func.func @transform_0(%arg0: i32) -> (i32, i32) {
    %c0_i32 = arith.constant 0 : i32
    %c0_i32_0 = arith.constant 0 : i32
    return %arg0, %c0_i32 : i32, i32
  }
  func.func @transform_1(%arg0: i32) -> (i32, i32) {
    %c0_i32 = arith.constant 0 : i32
    %c0_i32_0 = arith.constant 0 : i32
    %c0_i32_1 = arith.constant 0 : i32
    return %c0_i32, %c0_i32_0 : i32, i32
  }
  func.func @transform_2(%arg0: i32) -> (i32, i32) {
    %c0_i32 = arith.constant 0 : i32
    %c0_i32_0 = arith.constant 0 : i32
    %c0_i32_1 = arith.constant 0 : i32
    return %c0_i32, %c0_i32_0 : i32, i32
  }
  func.func @transform_3(%arg0: i32) -> (i32, i32) {
    %c0_i32 = arith.constant 0 : i32
    %c0_i32_0 = arith.constant 0 : i32
    %c0_i32_1 = arith.constant 0 : i32
    return %c0_i32, %c0_i32_0 : i32, i32
  }
  func.func @transform_4(%arg0: i32) -> (i32, i32) {
    %c0_i32 = arith.constant 0 : i32
    %c0_i32_0 = arith.constant 0 : i32
    %c0_i32_1 = arith.constant 0 : i32
    return %c0_i32, %c0_i32_0 : i32, i32
  }
}

module attributes {stable_mosaic.version = 11 : i64} {
  func.func @_dot_bn_relu_kernel(%arg0: i32, %arg1: memref<256x288xbf16, #tpu.memory_space<vmem>>, %arg2: memref<288x64xbf16, #tpu.memory_space<vmem>>, %arg3: memref<1x16xf32, #tpu.memory_space<vmem>>, %arg4: memref<1x16xf32, #tpu.memory_space<vmem>>, %arg5: memref<512x64xf32, #tpu.memory_space<vmem>>, %arg6: memref<1x16xf32, #tpu.memory_space<vmem>>, %arg7: memref<1x16xf32, #tpu.memory_space<vmem>>) attributes {dimension_semantics = [#tpu.dimension_semantics<arbitrary>], iteration_bounds = array<i64: 2>, scalar_prefetch = 0 : i64, scratch_operands = 2 : i64, tpu.core_type = #tpu.core_type<tc>, window_params = [{transform_indices = @transform_0, window_bounds = array<i64: 256, 288>}, {pipeline_mode = #tpu.pipeline_mode<synchronous>, transform_indices = @transform_1, window_bounds = array<i64: 288, 64>}, {pipeline_mode = #tpu.pipeline_mode<synchronous>, transform_indices = @transform_2, window_bounds = array<i64: 1, 16>}, {pipeline_mode = #tpu.pipeline_mode<synchronous>, transform_indices = @transform_3, window_bounds = array<i64: 1, 16>}, {pipeline_mode = #tpu.pipeline_mode<synchronous>, transform_indices = @transform_4, window_bounds = array<i64: 512, 64>}]} {
    %c0_i32 = arith.constant 0 : i32
    %0 = arith.cmpi eq, %arg0, %c0_i32 : i32
    %1 = arith.extui %0 : i1 to i32
    %c0_i32_0 = arith.constant 0 : i32
    %2 = arith.cmpi ne, %1, %c0_i32_0 : i32
    scf.if %2 {
      %cst_18 = arith.constant 0.000000e+00 : f32
      %42 = vector.broadcast %cst_18 : f32 to vector<1x16xf32>
      %c0_19 = arith.constant 0 : index
      %c0_20 = arith.constant 0 : index
      %43 = vector.load %arg6[%c0_19, %c0_20] : memref<1x16xf32, #tpu.memory_space<vmem>>, vector<1x16xf32>
      tpu.vector_store %arg6[%c0_19, %c0_20], %42 {strides = array<i32>} : memref<1x16xf32, #tpu.memory_space<vmem>>, vector<1x16xf32>,
      %cst_21 = arith.constant 0.000000e+00 : f32
      %44 = vector.broadcast %cst_21 : f32 to vector<1x16xf32>
      %c0_22 = arith.constant 0 : index
      %c0_23 = arith.constant 0 : index
      %45 = vector.load %arg7[%c0_22, %c0_23] : memref<1x16xf32, #tpu.memory_space<vmem>>, vector<1x16xf32>
      tpu.vector_store %arg7[%c0_22, %c0_23], %44 {strides = array<i32>} : memref<1x16xf32, #tpu.memory_space<vmem>>, vector<1x16xf32>,
    } else {
    }
    %c0 = arith.constant 0 : index
    %c0_1 = arith.constant 0 : index
    %3 = vector.load %arg1[%c0, %c0_1] : memref<256x288xbf16, #tpu.memory_space<vmem>>, vector<256x288xbf16>
    %c0_2 = arith.constant 0 : index
    %c0_3 = arith.constant 0 : index
    %4 = vector.load %arg2[%c0_2, %c0_3] : memref<288x64xbf16, #tpu.memory_space<vmem>>, vector<288x64xbf16>
    %cst = arith.constant dense<0.000000e+00> : vector<256x64xf32>
    %5 = tpu.matmul %3, %4, %cst {dimension_numbers = #tpu.dot_dimension_numbers<[1], [0], [0], [1], [0, 0, 1, 1], [], []>} : vector<256x288xbf16>, vector<288x64xbf16>, vector<256x64xf32> -> vector<256x64xf32>
    %cst_4 = arith.constant dense<0.000000e+00> : vector<64xf32>
    %6 = vector.multi_reduction <add>, %5, %cst_4 [0] : vector<256x64xf32> to vector<64xf32>
    %7 = vector.shape_cast %6 : vector<64xf32> to vector<1x64xf32>
    %8 = arith.mulf %5, %5 : vector<256x64xf32>
    %cst_5 = arith.constant dense<0.000000e+00> : vector<64xf32>
    %9 = vector.multi_reduction <add>, %8, %cst_5 [0] : vector<256x64xf32> to vector<64xf32>
    %10 = vector.shape_cast %9 : vector<64xf32> to vector<1x64xf32>
    %cst_6 = arith.constant 0.000000e+00 : f32
    %11 = vector.broadcast %cst_6 : f32 to vector<1x16xf32>
    %cst_7 = arith.constant 0.000000e+00 : f32
    %12 = vector.broadcast %cst_7 : f32 to vector<1x16xf32>
    %13 = vector.extract_strided_slice %7 {offsets = [0, 0], sizes = [1, 16], strides = [1, 1]} : vector<1x64xf32> to vector<1x16xf32>
    %14 = arith.addf %11, %13 : vector<1x16xf32>
    %15 = vector.extract_strided_slice %10 {offsets = [0, 0], sizes = [1, 16], strides = [1, 1]} : vector<1x64xf32> to vector<1x16xf32>
    %16 = arith.addf %12, %15 : vector<1x16xf32>
    %17 = vector.extract_strided_slice %7 {offsets = [0, 16], sizes = [1, 16], strides = [1, 1]} : vector<1x64xf32> to vector<1x16xf32>
    %18 = arith.addf %14, %17 : vector<1x16xf32>
    %19 = vector.extract_strided_slice %10 {offsets = [0, 16], sizes = [1, 16], strides = [1, 1]} : vector<1x64xf32> to vector<1x16xf32>
    %20 = arith.addf %16, %19 : vector<1x16xf32>
    %21 = vector.extract_strided_slice %7 {offsets = [0, 32], sizes = [1, 16], strides = [1, 1]} : vector<1x64xf32> to vector<1x16xf32>
    %22 = arith.addf %18, %21 : vector<1x16xf32>
    %23 = vector.extract_strided_slice %10 {offsets = [0, 32], sizes = [1, 16], strides = [1, 1]} : vector<1x64xf32> to vector<1x16xf32>
    %24 = arith.addf %20, %23 : vector<1x16xf32>
    %25 = vector.extract_strided_slice %7 {offsets = [0, 48], sizes = [1, 16], strides = [1, 1]} : vector<1x64xf32> to vector<1x16xf32>
    %26 = arith.addf %22, %25 : vector<1x16xf32>
    %27 = vector.extract_strided_slice %10 {offsets = [0, 48], sizes = [1, 16], strides = [1, 1]} : vector<1x64xf32> to vector<1x16xf32>
    %28 = arith.addf %24, %27 : vector<1x16xf32>
    %c0_8 = arith.constant 0 : index
    %c0_9 = arith.constant 0 : index
    %29 = vector.load %arg6[%c0_8, %c0_9] : memref<1x16xf32, #tpu.memory_space<vmem>>, vector<1x16xf32>
    %30 = arith.addf %29, %26 : vector<1x16xf32>
    %c0_10 = arith.constant 0 : index
    %c0_11 = arith.constant 0 : index
    %31 = vector.load %arg6[%c0_10, %c0_11] : memref<1x16xf32, #tpu.memory_space<vmem>>, vector<1x16xf32>
    tpu.vector_store %arg6[%c0_10, %c0_11], %30 {strides = array<i32>} : memref<1x16xf32, #tpu.memory_space<vmem>>, vector<1x16xf32>,
    %c0_12 = arith.constant 0 : index
    %c0_13 = arith.constant 0 : index
    %32 = vector.load %arg7[%c0_12, %c0_13] : memref<1x16xf32, #tpu.memory_space<vmem>>, vector<1x16xf32>
    %33 = arith.addf %32, %28 : vector<1x16xf32>
    %c0_14 = arith.constant 0 : index
    %c0_15 = arith.constant 0 : index
    %34 = vector.load %arg7[%c0_14, %c0_15] : memref<1x16xf32, #tpu.memory_space<vmem>>, vector<1x16xf32>
    tpu.vector_store %arg7[%c0_14, %c0_15], %33 {strides = array<i32>} : memref<1x16xf32, #tpu.memory_space<vmem>>, vector<1x16xf32>,
    %c256_i32 = arith.constant 256 : i32
    %35 = arith.muli %arg0, %c256_i32 : i32
    %36 = tpu.assume_multiple %35, 256 : i32
    %37 = arith.index_cast %36 : i32 to index
    %c0_16 = arith.constant 0 : index
    %38 = vector.load %arg5[%37, %c0_16] : memref<512x64xf32, #tpu.memory_space<vmem>>, vector<256x64xf32>
    tpu.vector_store %arg5[%37, %c0_16], %5 {strides = array<i32>} : memref<512x64xf32, #tpu.memory_space<vmem>>, vector<256x64xf32>,
    %c1_i32 = arith.constant 1 : i32
    %39 = arith.cmpi eq, %arg0, %c1_i32 : i32
    %40 = arith.extui %39 : i1 to i32
    %c0_i32_17 = arith.constant 0 : i32
    %41 = arith.cmpi ne, %40, %c0_i32_17 : i32
    scf.if %41 {
      %c0_18 = arith.constant 0 : index
      %c0_19 = arith.constant 0 : index
      %42 = vector.load %arg6[%c0_18, %c0_19] : memref<1x16xf32, #tpu.memory_space<vmem>>, vector<1x16xf32>
      %cst_20 = arith.constant 2.048000e+03 : f32
      %43 = vector.broadcast %cst_20 : f32 to vector<1x16xf32>
      %44 = arith.divf %42, %43 : vector<1x16xf32>
      %c0_21 = arith.constant 0 : index
      %c0_22 = arith.constant 0 : index
      %45 = vector.load %arg7[%c0_21, %c0_22] : memref<1x16xf32, #tpu.memory_space<vmem>>, vector<1x16xf32>
      %cst_23 = arith.constant 2.048000e+03 : f32
      %46 = vector.broadcast %cst_23 : f32 to vector<1x16xf32>
      %47 = arith.divf %45, %46 : vector<1x16xf32>
      %48 = arith.mulf %44, %44 : vector<1x16xf32>
      %49 = arith.subf %47, %48 : vector<1x16xf32>
      %c0_24 = arith.constant 0 : index
      %c0_25 = arith.constant 0 : index
      %50 = vector.load %arg3[%c0_24, %c0_25] : memref<1x16xf32, #tpu.memory_space<vmem>>, vector<1x16xf32>
      %cst_26 = arith.constant 9.99999974E-6 : f32
      %51 = vector.broadcast %cst_26 : f32 to vector<1x16xf32>
      %52 = arith.addf %49, %51 : vector<1x16xf32>
      %53 = math.rsqrt %52 : vector<1x16xf32>
      %54 = arith.mulf %50, %53 : vector<1x16xf32>
      %c0_27 = arith.constant 0 : index
      %c0_28 = arith.constant 0 : index
      %55 = vector.load %arg4[%c0_27, %c0_28] : memref<1x16xf32, #tpu.memory_space<vmem>>, vector<1x16xf32>
      %56 = arith.mulf %44, %54 : vector<1x16xf32>
      %57 = arith.subf %55, %56 : vector<1x16xf32>
      %58 = tpu.concatenate %54, %54, %54, %54 in 1 : vector<1x16xf32>, vector<1x16xf32>, vector<1x16xf32>, vector<1x16xf32> -> vector<1x64xf32>
      %59 = tpu.concatenate %57, %57, %57, %57 in 1 : vector<1x16xf32>, vector<1x16xf32>, vector<1x16xf32>, vector<1x16xf32> -> vector<1x64xf32>
      %c0_i32_29 = arith.constant 0 : i32
      %c2_i32 = arith.constant 2 : i32
      %60 = arith.addi %c0_i32_29, %c2_i32 : i32
      %c1_i32_30 = arith.constant 1 : i32
      scf.for %arg8 = %c0_i32_29 to %60 step %c1_i32_30  : i32 {
        %c256_i32_32 = arith.constant 256 : i32
        %61 = arith.muli %arg8, %c256_i32_32 : i32
        %62 = tpu.assume_multiple %61, 256 : i32
        %63 = arith.index_cast %62 : i32 to index
        %c0_33 = arith.constant 0 : index
        %64 = vector.load %arg5[%63, %c0_33] : memref<512x64xf32, #tpu.memory_space<vmem>>, vector<256x64xf32>
        %65 = vector.broadcast %58 : vector<1x64xf32> to vector<256x64xf32>
        %66 = arith.mulf %64, %65 : vector<256x64xf32>
        %67 = vector.broadcast %59 : vector<1x64xf32> to vector<256x64xf32>
        %68 = arith.addf %66, %67 : vector<256x64xf32>
        %cst_34 = arith.constant 0.000000e+00 : f32
        %69 = vector.broadcast %cst_34 : f32 to vector<256x64xf32>
        %70 = arith.maximumf %68, %69 : vector<256x64xf32>
        %71 = arith.index_cast %62 : i32 to index
        %c0_35 = arith.constant 0 : index
        %72 = vector.load %arg5[%71, %c0_35] : memref<512x64xf32, #tpu.memory_space<vmem>>, vector<256x64xf32>
        tpu.vector_store %arg5[%71, %c0_35], %70 {strides = array<i32>} : memref<512x64xf32, #tpu.memory_space<vmem>>, vector<256x64xf32>,
      }
      %c2_i32_31 = arith.constant 2 : i32
    } else {
    }
    return
  }
  func.func @transform_0(%arg0: i32) -> (i32, i32) {
    %c0_i32 = arith.constant 0 : i32
    %c0_i32_0 = arith.constant 0 : i32
    return %arg0, %c0_i32 : i32, i32
  }
  func.func @transform_1(%arg0: i32) -> (i32, i32) {
    %c0_i32 = arith.constant 0 : i32
    %c0_i32_0 = arith.constant 0 : i32
    %c0_i32_1 = arith.constant 0 : i32
    return %c0_i32, %c0_i32_0 : i32, i32
  }
  func.func @transform_2(%arg0: i32) -> (i32, i32) {
    %c0_i32 = arith.constant 0 : i32
    %c0_i32_0 = arith.constant 0 : i32
    %c0_i32_1 = arith.constant 0 : i32
    return %c0_i32, %c0_i32_0 : i32, i32
  }
  func.func @transform_3(%arg0: i32) -> (i32, i32) {
    %c0_i32 = arith.constant 0 : i32
    %c0_i32_0 = arith.constant 0 : i32
    %c0_i32_1 = arith.constant 0 : i32
    return %c0_i32, %c0_i32_0 : i32, i32
  }
  func.func @transform_4(%arg0: i32) -> (i32, i32) {
    %c0_i32 = arith.constant 0 : i32
    %c0_i32_0 = arith.constant 0 : i32
    %c0_i32_1 = arith.constant 0 : i32
    return %c0_i32, %c0_i32_0 : i32, i32
  }
}

module attributes {stable_mosaic.version = 11 : i64} {
  func.func @_dot_bias_tanh_kernel(%arg0: i32, %arg1: memref<4x144xbf16, #tpu.memory_space<vmem>>, %arg2: memref<144x256xbf16, #tpu.memory_space<vmem>>, %arg3: memref<4x1xf32, #tpu.memory_space<vmem>>, %arg4: memref<4x256xf32, #tpu.memory_space<vmem>>) attributes {dimension_semantics = [#tpu.dimension_semantics<parallel>], iteration_bounds = array<i64: 8>, scalar_prefetch = 0 : i64, scratch_operands = 0 : i64, tpu.core_type = #tpu.core_type<tc>, window_params = [{pipeline_mode = #tpu.pipeline_mode<synchronous>, transform_indices = @transform_0, window_bounds = array<i64: 4, 144>}, {transform_indices = @transform_1, window_bounds = array<i64: 144, 256>}, {pipeline_mode = #tpu.pipeline_mode<synchronous>, transform_indices = @transform_2, window_bounds = array<i64: 4, 1>}, {transform_indices = @transform_3, window_bounds = array<i64: 4, 256>}]} {
    %c0 = arith.constant 0 : index
    %c0_0 = arith.constant 0 : index
    %0 = vector.load %arg1[%c0, %c0_0] : memref<4x144xbf16, #tpu.memory_space<vmem>>, vector<4x144xbf16>
    %c0_1 = arith.constant 0 : index
    %c0_2 = arith.constant 0 : index
    %1 = vector.load %arg2[%c0_1, %c0_2] : memref<144x256xbf16, #tpu.memory_space<vmem>>, vector<144x256xbf16>
    %cst = arith.constant dense<0.000000e+00> : vector<4x256xf32>
    %2 = tpu.matmul %0, %1, %cst {dimension_numbers = #tpu.dot_dimension_numbers<[1], [0], [0], [1], [0, 0, 1, 1], [], []>} : vector<4x144xbf16>, vector<144x256xbf16>, vector<4x256xf32> -> vector<4x256xf32>
    %c0_3 = arith.constant 0 : index
    %c0_4 = arith.constant 0 : index
    %3 = vector.load %arg3[%c0_3, %c0_4] : memref<4x1xf32, #tpu.memory_space<vmem>>, vector<4x1xf32>
    %4 = vector.broadcast %3 : vector<4x1xf32> to vector<4x256xf32>
    %5 = arith.addf %2, %4 : vector<4x256xf32>
    %6 = math.tanh %5 : vector<4x256xf32>
    %c0_5 = arith.constant 0 : index
    %c0_6 = arith.constant 0 : index
    %7 = vector.load %arg4[%c0_5, %c0_6] : memref<4x256xf32, #tpu.memory_space<vmem>>, vector<4x256xf32>
    tpu.vector_store %arg4[%c0_5, %c0_6], %6 {strides = array<i32>} : memref<4x256xf32, #tpu.memory_space<vmem>>, vector<4x256xf32>,
    return
  }
  func.func @transform_0(%arg0: i32) -> (i32, i32) {
    %c0_i32 = arith.constant 0 : i32
    %c0_i32_0 = arith.constant 0 : i32
    %c0_i32_1 = arith.constant 0 : i32
    return %c0_i32, %c0_i32_0 : i32, i32
  }
  func.func @transform_1(%arg0: i32) -> (i32, i32) {
    %c0_i32 = arith.constant 0 : i32
    %c0_i32_0 = arith.constant 0 : i32
    return %c0_i32, %arg0 : i32, i32
  }
  func.func @transform_2(%arg0: i32) -> (i32, i32) {
    %c0_i32 = arith.constant 0 : i32
    %c0_i32_0 = arith.constant 0 : i32
    %c0_i32_1 = arith.constant 0 : i32
    return %c0_i32, %c0_i32_0 : i32, i32
  }
  func.func @transform_3(%arg0: i32) -> (i32, i32) {
    %c0_i32 = arith.constant 0 : i32
    %c0_i32_0 = arith.constant 0 : i32
    return %c0_i32, %arg0 : i32, i32
  }
}

</mosaic_0001>

<bundles_post_ra>
// kernel: generator_forward.5
= control target key start
LH: loop header
LB: loop body
LE: loop exit
PB: predicated region body
PF: predicated region fallthrough
CT: control target
= control target key end

     0   :  { %9 = vsyncpa [#allocation5], 0  ;;  %s1440_s0 = inlined_call_operand.vmem [shape: bf16[2,32], index: 0, kind: input, shape index: {}]   ;;  %s1441_s1 = inlined_call_operand.hbm [shape: bf16[32,2048], index: 1, kind: input, shape index: {}]   ;;  %s1442_s2 = inlined_call_operand.hbm [shape: f32[1,128], index: 2, kind: input, shape index: {}]   ;;  %s1443_s3 = inlined_call_operand.hbm [shape: f32[1,128], index: 3, kind: input, shape index: {}]   ;;  %s1444_s4 = inlined_call_operand.vmem [shape: f32[2,2048], index: 4, kind: output, shape index: {}]  }
   0x1   :  { %10 = vsyncpa [#allocation7], 0  ;;  %s1161_s15 = smov [#allocation6]   ;;  %s1162_s17 = smov [#allocation4]  }
   0x2   :  { %s31_s16 = sshll.u32 %s1161_s15, 4  ;;  %s18_s18 = sshll.u32 %s1162_s17, 4  ;;  %s32_s16 = int_to_ptr.vmem [resolvable:$true] %s31_s16  ;;  %s1194_s18 = int_to_ptr.vmem [resolvable:$true] %s18_s18 }
   0x3   :  { %s1091_s21 = scalar_lea.hbm %s1442_s2, 16 }
   0x4   :  { %p1092_p0 = scmp.ne.s32.totalorder %s1442_s2, %s1091_s21  ;;  %p1095_p1 = scmp.lt.u32.totalorder %s1091_s21, %s1442_s2 }
   0x6   :  { %p1097_p2 = pnand %p1095_p1, %p1092_p0 }
   0x8   :  { %1100 = shalt.err (!%p1097_p2)
}
   0x9   :  { %s1101_s26 = scalar_lea.vmem %s32_s16, 16  ;;  %s1105_s27 = scalar_lea.vmem %s32_s16, 32 }
   0xa   :  { %p1102_p3 = scmp.ne.s32.totalorder %s32_s16, %s1101_s26  ;;  %p1106_p4 = scmp.lt.s32.totalorder %s32_s16, %s32_s16 }
   0xb   :  { %p1107_p5 = scmp.lt.s32.totalorder %s1105_s27, %s1101_s26 }
   0xd   :  { %p1108_p6 = por %p1107_p5, %p1106_p4 }
   0xf   :  { %p1109_p7 = pnand %p1108_p6, %p1102_p3 }
  0x11   :  { %1112 = shalt.err (!%p1109_p7)
}
  0x12   :  { %34 = dma.hbm_to_vmem [thread:$0]  %s1442_s2, 16, %s32_s16, [#allocation7]  }
  0x13   :  { %s1113_s6 = scalar_lea.hbm %s1441_s1, 4096 }
  0x14   :  { %p1114_p8 = scmp.ne.s32.totalorder %s1441_s1, %s1113_s6  ;;  %p1117_p9 = scmp.lt.u32.totalorder %s1113_s6, %s1441_s1 }
  0x16   :  { %p1119_p10 = pnand %p1117_p9, %p1114_p8 }
  0x18   :  { %1122 = shalt.err (!%p1119_p10)
}
  0x19   :  { %s1123_s11 = scalar_lea.vmem %s1194_s18, 4096  ;;  %p1128_p12 = scmp.lt.s32.totalorder %s1194_s18, %s1194_s18 }
  0x1a   :  { %p1124_p11 = scmp.ne.s32.totalorder %s1194_s18, %s1123_s11  ;;  %p1129_p13 = scmp.lt.s32.totalorder %s1123_s11, %s1123_s11 }
  0x1c   :  { %p1130_p0 = por %p1129_p13, %p1128_p12 }
  0x1e   :  { %p1131_p1 = pnand %p1130_p0, %p1124_p11 }
  0x20   :  { %1134 = shalt.err (!%p1131_p1)
}
  0x21   :  { %s1163_s2 = smov 1024   ;;  %s1164_s12 = smov 64  }
  0x22   :  { %24 = dma.hbm_to_vmem [thread:$0]  %s1441_s1, 4096, %s1194_s18, [#allocation5], %s1163_s2, %s1163_s2, %s1164_s12  }
  0x23   :  { %s1165_s15 = smov [#allocation8]   ;;  %s1135_s20 = scalar_lea.hbm %s1443_s3, 16 }
  0x24   :  { %s41_s16 = sshll.u32 %s1165_s15, 4  ;;  %p1136_p2 = scmp.ne.s32.totalorder %s1443_s3, %s1135_s20  ;;  %s42_s16 = int_to_ptr.vmem [resolvable:$true] %s41_s16 }
  0x25   :  { %p1139_p3 = scmp.lt.u32.totalorder %s1135_s20, %s1443_s3 }
  0x27   :  { %p1141_p4 = pnand %p1139_p3, %p1136_p2 }
  0x29   :  { %1144 = shalt.err (!%p1141_p4)
}
  0x2a   :  { %s1145_s25 = scalar_lea.vmem %s42_s16, 16  ;;  %s1149_s1 = scalar_lea.vmem %s42_s16, 32 }
  0x2b   :  { %p1146_p5 = scmp.ne.s32.totalorder %s42_s16, %s1145_s25  ;;  %p1150_p6 = scmp.lt.s32.totalorder %s42_s16, %s42_s16 }
  0x2c   :  { %p1151_p7 = scmp.lt.s32.totalorder %s1149_s1, %s1145_s25 }
  0x2e   :  { %p1152_p8 = por %p1151_p7, %p1150_p6 }
  0x30   :  { %p1153_p9 = pnand %p1152_p8, %p1146_p5 }
  0x32   :  { %1156 = shalt.err (!%p1153_p9)
}
  0x33   :  { %44 = dma.hbm_to_vmem [thread:$0]  %s1443_s3, 16, %s42_s16, [#allocation7]  }
  0x34   :  { %1157 = dma.done.wait [#allocation5], 4096  }
  0x35   :  { %1158 = vsyncadd [#allocation5], 4294963200 }
  0x36   :  { %1159 = dma.done.wait [#allocation7], 32  }
  0x37   :  { %1160 = vsyncadd [#allocation7], 4294967264  ;;  %v1166_v0 = vmov 0   ;;  %v62_v1 = vld [vmem:[#allocation4] sm:$0xff]  ;;  %v63_v3 = vld [vmem:[#allocation4 + $0x8] sm:$0xff]  ;;  %vm254_vm0 = vcmask 261120  }
  0x38   :  { %290 = vmatprep.mubr.bf16.mxu0 %v1166_v0  ;;  %331 = vmatprep.mubr.bf16.mxu1 %v1166_v0  ;;  %v70_v2 = vld [vmem:[#allocation4 + $0x40] sm:$0xff]  ;;  %v71_v5 = vld [vmem:[#allocation4 + $0x48] sm:$0xff]  ;;  %v64_v15 = vld [vmem:[#allocation4 + $0x10] sm:$0xff]  ;;  %vm586_vm1 = vcmask 1041408  }
  0x39   :  { %v1042_v4 = vcombine.high %v62_v1, %v70_v2  ;;  %v1041_v6 = vcombine.low %v62_v1, %v70_v2  ;;  %v78_v7 = vld [vmem:[#allocation4 + $0x80] sm:$0xff]  ;;  %v1044_v9 = vcombine.high %v63_v3, %v71_v5  ;;  %v1043_v10 = vcombine.low %v63_v3, %v71_v5  ;;  %v79_v12 = vld [vmem:[#allocation4 + $0x88] sm:$0xff]  ;;  %v72_v16 = vld [vmem:[#allocation4 + $0x50] sm:$0xff] }
  0x3a   :  { %v86_v8 = vld [vmem:[#allocation4 + $0xc0] sm:$0xff]  ;;  %v87_v13 = vld [vmem:[#allocation4 + $0xc8] sm:$0xff]  ;;  %v65_v17 = vld [vmem:[#allocation4 + $0x18] sm:$0xff]  ;;  %v1046_v21 = vcombine.high %v64_v15, %v72_v16  ;;  %v1045_v28 = vcombine.low %v64_v15, %v72_v16  ;;  %v1167_v3 = vmov 0.0  }
  0x3b   :  { %v1058_v11 = vcombine.high %v78_v7, %v86_v8  ;;  %258 = vmatprep.subr.bf16.mxu0 %v1042_v4  ;;  %v1060_v14 = vcombine.high %v79_v12, %v87_v13  ;;  %299 = vmatprep.subr.bf16.mxu1 %v1044_v9  ;;  %v1057_v18 = vcombine.low %v78_v7, %v86_v8  ;;  %v73_v19 = vld [vmem:[#allocation4 + $0x58] sm:$0xff]  ;;  %v80_v23 = vld [vmem:[#allocation4 + $0x90] sm:$0xff]  ;;  %v66_v32 = vld [vmem:[#allocation4 + $0x20] sm:$0xff]  ;;  %v1168_v4 = vmov 1983009808  }
  0x3c   :  { %259 = vmatpush1.bf16.msra.mxu0 %v1041_v6  ;;  %300 = vmatpush1.bf16.msra.mxu1 %v1043_v10  ;;  %v1059_v20 = vcombine.low %v79_v12, %v87_v13  ;;  %v1048_v22 = vcombine.high %v65_v17, %v73_v19  ;;  %v88_v24 = vld [vmem:[#allocation4 + $0xd0] sm:$0xff]  ;;  %v81_v25 = vld [vmem:[#allocation4 + $0x98] sm:$0xff]  ;;  %v1047_v29 = vcombine.low %v65_v17, %v73_v19  ;;  %v74_v33 = vld [vmem:[#allocation4 + $0x60] sm:$0xff]  ;;  %v885_v5 = vunpack.c.l.s4 %v1168_v4 }
  0x3d   :  { %260 = vmatprep.subr.bf16.mxu0 %v1058_v11  ;;  %301 = vmatprep.subr.bf16.mxu1 %v1060_v14  ;;  %v89_v26 = vld [vmem:[#allocation4 + $0xd8] sm:$0xff]  ;;  %v1242_v27 = vld [vmem:[%s1440_s0] sm:$0x1]  ;;  %v1062_v30 = vcombine.high %v80_v23, %v88_v24  ;;  %v67_v34 = vld [vmem:[#allocation4 + $0x28] sm:$0xff]  ;;  %v1061_v36 = vcombine.low %v80_v23, %v88_v24  ;;  %v1050_v38 = vcombine.high %v66_v32, %v74_v33  ;;  %v887_v6 = vlaneseq }
  0x3e   :  { %v1064_v31 = vcombine.high %v81_v25, %v89_v26  ;;  %v75_v35 = vld [vmem:[#allocation4 + $0x68] sm:$0xff]  ;;  %v1063_v37 = vcombine.low %v81_v25, %v89_v26  ;;  %v82_v40 = vld [vmem:[#allocation4 + $0xa0] sm:$0xff]  ;;  %v1049_v44 = vcombine.low %v66_v32, %v74_v33  ;;  %v68_v48 = vld [vmem:[#allocation4 + $0x30] sm:$0xff]  ;;  %59 = vst [vmem:[#allocation2] sm:$0x1] %v1167_v3  ;;  %v886_v7 = vunpack.c.0.s8 %v885_v5 }
  0x3f   :  { %v1052_v39 = vcombine.high %v67_v34, %v75_v35  ;;  %v90_v41 = vld [vmem:[#allocation4 + $0xe0] sm:$0xff]  ;;  %v83_v42 = vld [vmem:[#allocation4 + $0xa8] sm:$0xff]  ;;  %v1051_v45 = vcombine.low %v67_v34, %v75_v35  ;;  %v76_v49 = vld [vmem:[#allocation4 + $0x70] sm:$0xff]  ;;  %60 = vst [vmem:[#allocation3] sm:$0x1] %v1167_v3  ;;  %v1266_v8 = vshrl.u32 %v887_v6, 7 }
  0x40   :  { %261 = vmatpush1.bf16.msra.mxu0 %v1057_v18  ;;  %302 = vmatpush1.bf16.msra.mxu1 %v1059_v20  ;;  %v91_v43 = vld [vmem:[#allocation4 + $0xe8] sm:$0xff]  ;;  %v1066_v46 = vcombine.high %v82_v40, %v90_v41  ;;  %v69_v50 = vld [vmem:[#allocation4 + $0x38] sm:$0xff]  ;;  %v1065_v52 = vcombine.low %v82_v40, %v90_v41  ;;  %v1054_v54 = vcombine.high %v68_v48, %v76_v49  ;;  %v84_v56 = vld [vmem:[#allocation4 + $0xb0] sm:$0xff] }
  0x41   :  { %340 = vmatprep.subr.bf16.mxu0 %v1046_v21  ;;  %381 = vmatprep.subr.bf16.mxu1 %v1048_v22  ;;  %v1068_v47 = vcombine.high %v83_v42, %v91_v43  ;;  %v77_v51 = vld [vmem:[#allocation4 + $0x78] sm:$0xff]  ;;  %v1067_v53 = vcombine.low %v83_v42, %v91_v43  ;;  %v92_v57 = vld [vmem:[#allocation4 + $0xf0] sm:$0xff]  ;;  %v1053_v60 = vcombine.low %v68_v48, %v76_v49 }
  0x42   :  { %v1056_v55 = vcombine.high %v69_v50, %v77_v51  ;;  %v85_v58 = vld [vmem:[#allocation4 + $0xb8] sm:$0xff]  ;;  %v1055_v61 = vcombine.low %v69_v50, %v77_v51  ;;  %v1070_v62 = vcombine.high %v84_v56, %v92_v57  ;;  %v1069_v1 = vcombine.low %v84_v56, %v92_v57 }
  0x43   :  { %1073 = vmatmul.mubr.msk.bf16.vlgmr.msra.gmra.mrb[0].mxu0 %vm254_vm0, %v1242_v27  ;;  %1074 = vmatmul.mubr.msk.bf16.vlgmr.msra.gmra.mrb[0].mxu1 %vm254_vm0, %v1242_v27  ;;  %v93_v59 = vld [vmem:[#allocation4 + $0xf8] sm:$0xff]  ;;  %v1272_v13 = vsub.s32 %v886_v7, %v1266_v8 }
  0x44   :  { %341 = vmatpush1.bf16.msra.mxu0 %v1045_v28  ;;  %382 = vmatpush1.bf16.msra.mxu1 %v1047_v29  ;;  %v1072_v63 = vcombine.high %v85_v58, %v93_v59  ;;  %v1071_v2 = vcombine.low %v85_v58, %v93_v59 }
  0x45   :  { %342 = vmatprep.subr.bf16.mxu0 %v1062_v30  ;;  %383 = vmatprep.subr.bf16.mxu1 %v1064_v31 }
  0x46   :  { %372 = vmatprep.mubr.bf16.mxu0 %v1166_v0  ;;  %413 = vmatprep.mubr.bf16.mxu1 %v1166_v0 }
  0x48   :  { %343 = vmatpush1.bf16.msra.mxu0 %v1061_v36  ;;  %384 = vmatpush1.bf16.msra.mxu1 %v1063_v37 }
  0x49   :  { %422 = vmatprep.subr.bf16.mxu0 %v1050_v38  ;;  %463 = vmatprep.subr.bf16.mxu1 %v1052_v39 }
  0x4b   :  { %1075 = vmatmul.mubr.msk.bf16.vlgmr.msra.gmra.mrb[4].mxu0 %vm254_vm0, %v1242_v27  ;;  %1076 = vmatmul.mubr.msk.bf16.vlgmr.msra.gmra.mrb[4].mxu1 %vm254_vm0, %v1242_v27 }
  0x4c   :  { %423 = vmatpush1.bf16.msra.mxu0 %v1049_v44  ;;  %464 = vmatpush1.bf16.msra.mxu1 %v1051_v45 }
  0x4d   :  { %424 = vmatprep.subr.bf16.mxu0 %v1066_v46  ;;  %465 = vmatprep.subr.bf16.mxu1 %v1068_v47 }
  0x4e   :  { %454 = vmatprep.mubr.bf16.mxu0 %v1166_v0  ;;  %495 = vmatprep.mubr.bf16.mxu1 %v1166_v0 }
  0x50   :  { %425 = vmatpush1.bf16.msra.mxu0 %v1065_v52  ;;  %466 = vmatpush1.bf16.msra.mxu1 %v1067_v53 }
  0x51   :  { %504 = vmatprep.subr.bf16.mxu0 %v1054_v54  ;;  %545 = vmatprep.subr.bf16.mxu1 %v1056_v55 }
  0x53   :  { %1077 = vmatmul.mubr.msk.bf16.vlgmr.msra.gmra.mrb[8].mxu0 %vm254_vm0, %v1242_v27  ;;  %1078 = vmatmul.mubr.msk.bf16.vlgmr.msra.gmra.mrb[8].mxu1 %vm254_vm0, %v1242_v27 }
  0x54   :  { %505 = vmatpush1.bf16.msra.mxu0 %v1053_v60  ;;  %546 = vmatpush1.bf16.msra.mxu1 %v1055_v61 }
  0x55   :  { %506 = vmatprep.subr.bf16.mxu0 %v1070_v62  ;;  %547 = vmatprep.subr.bf16.mxu1 %v1072_v63 }
  0x56   :  { %536 = vmatprep.mubr.bf16.mxu0 %v1166_v0  ;;  %577 = vmatprep.mubr.bf16.mxu1 %v1166_v0 }
  0x58   :  { %507 = vmatpush1.bf16.msra.mxu0 %v1069_v1  ;;  %548 = vmatpush1.bf16.msra.mxu1 %v1071_v2 }
  0x5b   :  { %1079 = vmatmul.mubr.msk.bf16.vlgmr.msra.gmra.mrb[12].mxu0 %vm254_vm0, %v1242_v27  ;;  %1080 = vmatmul.mubr.msk.bf16.vlgmr.msra.gmra.mrb[12].mxu1 %vm254_vm0, %v1242_v27 }
 0x116   :  { %v292_v9 = vpop.f32.mrb[0].mxu0  ;;  %v1269_v11 = vpop.f32.mrb[0].mxu1 }
 0x117   :  { %v587_v0 = vsel %vm586_vm1, %v292_v9, 0.0  ;;  %v699_v10 = vmul.f32 %v292_v9, %v292_v9  ;;  %v294_v12 = vpop.f32.mrb[1].mxu0  ;;  %v601_v15 = vsel %vm586_vm1, %v1269_v11, 0.0  ;;  %v701_v16 = vmul.f32 %v1269_v11, %v1269_v11  ;;  %v1279_v18 = vpop.f32.mrb[1].mxu1 }
 0x118   :  { %v588_v14 = vrot.slane %v587_v0, 4  ;;  %v594_v17 = vsel %vm586_vm1, %v294_v12, 0.0  ;;  %v296_v19 = vpop.f32.mrb[2].mxu0  ;;  %v602_v21 = vrot.slane %v601_v15, 4  ;;  %v700_v23 = vmul.f32 %v294_v12, %v294_v12  ;;  %v337_v25 = vpop.f32.mrb[2].mxu1 }
 0x119   :  { %v715_v20 = vsel %vm586_vm1, %v699_v10, 0.0  ;;  %v595_v22 = vrot.slane %v594_v17, 4  ;;  %v297_v24 = vpop.f32.mrb[3].mxu0  ;;  %v729_v28 = vsel %vm586_vm1, %v701_v16, 0.0  ;;  %v882_v29 = vcombine.low %v292_v9, %v294_v12  ;;  %v338_v30 = vpop.f32.mrb[3].mxu1 }
 0x11a   :  { %v589_v26 = vadd.f32 %v588_v14, %v587_v0  ;;  %v716_v27 = vrot.slane %v715_v20, 4  ;;  %v603_v31 = vadd.f32 %v602_v21, %v601_v15  ;;  %v730_v32 = vrot.slane %v729_v28, 4 }
 0x11b   :  { %v596_v33 = vadd.f32 %v595_v22, %v594_v17  ;;  %v722_v34 = vsel %vm586_vm1, %v700_v23, 0.0  ;;  %v1285_v38 = vrot.slane %v882_v29, %v1272_v13  ;;  %v608_v42 = vsel %vm586_vm1, %v1279_v18, 0.0 }
 0x11c   :  { %v590_v35 = vrot.slane %v589_v26, 2  ;;  %v717_v36 = vadd.f32 %v716_v27, %v715_v20  ;;  %v723_v37 = vrot.slane %v722_v34, 4  ;;  %v604_v39 = vrot.slane %v603_v31, 2 }
 0x11d   :  { %v731_v40 = vadd.f32 %v730_v32, %v729_v28  ;;  %v597_v41 = vrot.slane %v596_v33, 2  ;;  %v609_v46 = vrot.slane %v608_v42, 4  ;;  %v702_v51 = vmul.f32 %v1279_v18, %v1279_v18 }
 0x11e   :  { %v591_v43 = vadd.f32 %v590_v35, %v589_v26  ;;  %v718_v44 = vrot.slane %v717_v36, 2  ;;  %v724_v45 = vadd.f32 %v723_v37, %v722_v34  ;;  %v1289_v47 = vpop.f32.mrb[4].mxu0  ;;  %v605_v48 = vadd.f32 %v604_v39, %v603_v31  ;;  %v1293_v52 = vpop.f32.mrb[4].mxu1 }
 0x11f   :  { %v732_v49 = vrot.slane %v731_v40, 2  ;;  %v598_v50 = vadd.f32 %v597_v41, %v596_v33  ;;  %v1295_v53 = vpop.f32.mrb[5].mxu0  ;;  %v610_v57 = vadd.f32 %v609_v46, %v608_v42  ;;  %v1297_v58 = vpop.f32.mrb[5].mxu1  ;;  %v736_v63 = vsel %vm586_vm1, %v702_v51, 0.0 }
 0x120   :  { %v592_v54 = vrot.slane %v591_v43, 1  ;;  %v719_v55 = vadd.f32 %v718_v44, %v717_v36  ;;  %v725_v56 = vrot.slane %v724_v45, 2  ;;  %v378_v59 = vpop.f32.mrb[6].mxu0  ;;  %v606_v60 = vrot.slane %v605_v48, 1  ;;  %v419_v2 = vpop.f32.mrb[6].mxu1 }
 0x121   :  { %v733_v61 = vadd.f32 %v732_v49, %v731_v40  ;;  %v599_v62 = vrot.slane %v598_v50, 1  ;;  %v379_v1 = vpop.f32.mrb[7].mxu0  ;;  %v611_v6 = vrot.slane %v610_v57, 2  ;;  %v420_v7 = vpop.f32.mrb[7].mxu1  ;;  %v737_v12 = vrot.slane %v736_v63, 4 }
 0x122   :  { %v593_v3 = vadd.f32 %v592_v54, %v591_v43  ;;  %v720_v4 = vrot.slane %v719_v55, 1  ;;  %v726_v5 = vadd.f32 %v725_v56, %v724_v45  ;;  %v607_v9 = vadd.f32 %v606_v60, %v605_v48 }
 0x123   :  { %v734_v0 = vrot.slane %v733_v61, 1  ;;  %v600_v10 = vadd.f32 %v599_v62, %v598_v50  ;;  %v612_v16 = vadd.f32 %v611_v6, %v610_v57  ;;  %v883_v17 = vcombine.low %v1269_v11, %v1279_v18 }
 0x124   :  { %v721_v14 = vadd.f32 %v720_v4, %v719_v55  ;;  %v727_v15 = vrot.slane %v726_v5, 1  ;;  %v738_v21 = vadd.f32 %v737_v12, %v736_v63  ;;  %v615_v22 = vsel %vm586_vm1, %v1289_v47, 0.0 }
 0x125   :  { %v735_v19 = vadd.f32 %v734_v0, %v733_v61  ;;  %v829_v20 = vadd.f32 %v600_v10, %v593_v3  ;;  %v613_v24 = vrot.slane %v612_v16, 1  ;;  %v1305_v25 = vrot.slane %v883_v17, %v1272_v13 }
 0x126   :  { %v728_v23 = vadd.f32 %v727_v15, %v726_v5  ;;  %v616_v26 = vrot.slane %v615_v22, 4  ;;  %v1307_v27 = vpop.f32.mrb[8].mxu0  ;;  %v739_v28 = vrot.slane %v738_v21, 2  ;;  %v703_v30 = vmul.f32 %v1289_v47, %v1289_v47  ;;  %v1313_v18 = vpop.f32.mrb[8].mxu1 }
 0x127   :  { %v831_v29 = vadd.f32 %v829_v20, %v607_v9  ;;  %v629_v11 = vsel %vm586_vm1, %v1293_v52, 0.0  ;;  %v1315_v31 = vpop.f32.mrb[9].mxu0  ;;  %v614_v33 = vadd.f32 %v613_v24, %v612_v16  ;;  %v898_v34 = vcombine.low %v1285_v38, %v1305_v25  ;;  %v1319_v36 = vpop.f32.mrb[9].mxu1 }
 0x128   :  { %v830_v32 = vadd.f32 %v728_v23, %v721_v14  ;;  %v617_v35 = vadd.f32 %v616_v26, %v615_v22  ;;  %v460_v37 = vpop.f32.mrb[10].mxu0  ;;  %v740_v39 = vadd.f32 %v739_v28, %v738_v21  ;;  %v743_v40 = vsel %vm586_vm1, %v703_v30, 0.0  ;;  %v501_v44 = vpop.f32.mrb[10].mxu1 }
 0x129   :  { %v630_v41 = vrot.slane %v629_v11, 4  ;;  %v705_v42 = vmul.f32 %v1293_v52, %v1293_v52  ;;  %v461_v43 = vpop.f32.mrb[11].mxu0  ;;  %v833_v46 = vadd.f32 %v831_v29, %v614_v33  ;;  %v744_v49 = vrot.slane %v743_v40, 4  ;;  %v502_v50 = vpop.f32.mrb[11].mxu1 }
 0x12a   :  { %v832_v45 = vadd.f32 %v830_v32, %v735_v19  ;;  %v618_v48 = vrot.slane %v617_v35, 2  ;;  %v741_v51 = vrot.slane %v740_v39, 1  ;;  %v622_v56 = vsel %vm586_vm1, %v1295_v53, 0.0 }
 0x12b   :  { %v631_v54 = vadd.f32 %v630_v41, %v629_v11  ;;  %v757_v55 = vsel %vm586_vm1, %v705_v42, 0.0  ;;  %v745_v59 = vadd.f32 %v744_v49, %v743_v40  ;;  %v623_v61 = vrot.slane %v622_v56, 4 }
 0x12c   :  { %v619_v57 = vadd.f32 %v618_v48, %v617_v35  ;;  %v758_v60 = vrot.slane %v757_v55, 4  ;;  %v742_v62 = vadd.f32 %v741_v51, %v740_v39  ;;  %v704_v1 = vmul.f32 %v1295_v53, %v1295_v53 }
 0x12d   :  { %v632_v63 = vrot.slane %v631_v54, 2  ;;  %v899_v2 = vcombine.low %v1289_v47, %v1295_v53  ;;  %v746_v4 = vrot.slane %v745_v59, 2  ;;  %v624_v6 = vadd.f32 %v623_v61, %v622_v56 }
 0x12e   :  { %v620_v3 = vrot.slane %v619_v57, 1  ;;  %v759_v5 = vadd.f32 %v758_v60, %v757_v55  ;;  %v1331_v7 = vpop.f32.mrb[12].mxu0  ;;  %v834_v9 = vadd.f32 %v832_v45, %v742_v62  ;;  %v750_v10 = vsel %vm586_vm1, %v704_v1, 0.0  ;;  %v1337_v14 = vpop.f32.mrb[12].mxu1 }
 0x12f   :  { %v633_v0 = vadd.f32 %v632_v63, %v631_v54  ;;  %v1335_v12 = vrot.slane %v899_v2, %v1272_v13  ;;  %v1339_v15 = vpop.f32.mrb[13].mxu0  ;;  %v747_v17 = vadd.f32 %v746_v4, %v745_v59  ;;  %v625_v53 = vrot.slane %v624_v6, 2  ;;  %v1341_v19 = vpop.f32.mrb[13].mxu1 }
 0x130   :  { %v621_v16 = vadd.f32 %v620_v3, %v619_v57  ;;  %v760_v47 = vrot.slane %v759_v5, 2  ;;  %v542_v20 = vpop.f32.mrb[14].mxu0  ;;  %v751_v22 = vrot.slane %v750_v10, 4  ;;  %v636_v23 = vsel %vm586_vm1, %v1297_v58, 0.0  ;;  %v583_v28 = vpop.f32.mrb[14].mxu1 }
 0x131   :  { %v634_v21 = vrot.slane %v633_v0, 1  ;;  %v706_v24 = vmul.f32 %v1297_v58, %v1297_v58  ;;  %v543_v26 = vpop.f32.mrb[15].mxu0  ;;  %v748_v29 = vrot.slane %v747_v17, 1  ;;  %v626_v32 = vadd.f32 %v625_v53, %v624_v6  ;;  %v584_v33 = vpop.f32.mrb[15].mxu1 }
 0x132   :  { %v835_v30 = vadd.f32 %v833_v46, %v621_v16  ;;  %v761_v11 = vadd.f32 %v760_v47, %v759_v5  ;;  %v752_v37 = vadd.f32 %v751_v22, %v750_v10  ;;  %v637_v39 = vrot.slane %v636_v23, 4 }
 0x133   :  { %v635_v35 = vadd.f32 %v634_v21, %v633_v0  ;;  %v764_v40 = vsel %vm586_vm1, %v706_v24, 0.0  ;;  %v749_v41 = vadd.f32 %v748_v29, %v747_v17  ;;  %v627_v43 = vrot.slane %v626_v32, 1 }
 0x134   :  { %v762_v42 = vrot.slane %v761_v11, 1  ;;  %v765_v44 = vrot.slane %v764_v40, 4  ;;  %v753_v45 = vrot.slane %v752_v37, 2  ;;  %v638_v48 = vadd.f32 %v637_v39, %v636_v23 }
 0x135   :  { %v900_v49 = vcombine.low %v1293_v52, %v1297_v58  ;;  %v643_v46 = vsel %vm586_vm1, %v1307_v27, 0.0  ;;  %v836_v50 = vadd.f32 %v834_v9, %v749_v41  ;;  %v628_v54 = vadd.f32 %v627_v43, %v626_v32 }
 0x136   :  { %v763_v51 = vadd.f32 %v762_v42, %v761_v11  ;;  %v766_v55 = vadd.f32 %v765_v44, %v764_v40  ;;  %v754_v56 = vadd.f32 %v753_v45, %v752_v37  ;;  %v639_v57 = vrot.slane %v638_v48, 2 }
 0x137   :  { %v1353_v59 = vrot.slane %v900_v49, %v1272_v13  ;;  %v644_v60 = vrot.slane %v643_v46, 4  ;;  %v837_v61 = vadd.f32 %v835_v30, %v628_v54  ;;  %v707_v63 = vmul.f32 %v1307_v27, %v1307_v27 }
 0x138   :  { %v767_v62 = vrot.slane %v766_v55, 2  ;;  %v657_v52 = vsel %vm586_vm1, %v1313_v18, 0.0  ;;  %v755_v58 = vrot.slane %v754_v56, 1  ;;  %v640_v1 = vadd.f32 %v639_v57, %v638_v48 }
 0x139   :  { %v915_v2 = vcombine.low %v1335_v12, %v1353_v59  ;;  %v645_v3 = vadd.f32 %v644_v60, %v643_v46  ;;  %v839_v5 = vadd.f32 %v837_v61, %v635_v35  ;;  %v771_v6 = vsel %vm586_vm1, %v707_v63, 0.0 }
 0x13a   :  { %v768_v4 = vadd.f32 %v767_v62, %v766_v55  ;;  %v658_v9 = vrot.slane %v657_v52, 4  ;;  %v756_v0 = vadd.f32 %v755_v58, %v754_v56  ;;  %v641_v10 = vrot.slane %v640_v1, 1 }
 0x13b   :  { %v646_v16 = vrot.slane %v645_v3, 2  ;;  %v772_v17 = vrot.slane %v771_v6, 4  ;;  %v709_v20 = vmul.f32 %v1313_v18, %v1313_v18  ;;  %v650_v21 = vsel %vm586_vm1, %v1315_v31, 0.0 }
 0x13c   :  { %v769_v47 = vrot.slane %v768_v4, 1  ;;  %v659_v53 = vadd.f32 %v658_v9, %v657_v52  ;;  %v838_v22 = vadd.f32 %v836_v50, %v756_v0  ;;  %v642_v23 = vadd.f32 %v641_v10, %v640_v1 }
 0x13d   :  { %v647_v24 = vadd.f32 %v646_v16, %v645_v3  ;;  %v773_v26 = vadd.f32 %v772_v17, %v771_v6  ;;  %v785_v30 = vsel %vm586_vm1, %v709_v20, 0.0  ;;  %v651_v11 = vrot.slane %v650_v21, 4 }
 0x13e   :  { %v770_v28 = vadd.f32 %v769_v47, %v768_v4  ;;  %v660_v29 = vrot.slane %v659_v53, 2  ;;  %v840_v32 = vadd.f32 %v838_v22, %v763_v51  ;;  %v841_v33 = vadd.f32 %v839_v5, %v642_v23 }
 0x13f   :  { %v648_v35 = vrot.slane %v647_v24, 1  ;;  %v774_v37 = vrot.slane %v773_v26, 2  ;;  %v786_v40 = vrot.slane %v785_v30, 4  ;;  %v652_v41 = vadd.f32 %v651_v11, %v650_v21 }
 0x140   :  { %v661_v39 = vadd.f32 %v660_v29, %v659_v53  ;;  %v708_v42 = vmul.f32 %v1315_v31, %v1315_v31  ;;  %v842_v43 = vadd.f32 %v840_v32, %v770_v28  ;;  %v916_v48 = vcombine.low %v1307_v27, %v1315_v31 }
 0x141   :  { %v649_v44 = vadd.f32 %v648_v35, %v647_v24  ;;  %v775_v45 = vadd.f32 %v774_v37, %v773_v26  ;;  %v787_v46 = vadd.f32 %v786_v40, %v785_v30  ;;  %v653_v50 = vrot.slane %v652_v41, 2 }
 0x142   :  { %v662_v49 = vrot.slane %v661_v39, 1  ;;  %v778_v51 = vsel %vm586_vm1, %v708_v42, 0.0  ;;  %v1373_v57 = vrot.slane %v916_v48, %v1272_v13  ;;  %v664_v63 = vsel %vm586_vm1, %v1319_v36, 0.0 }
 0x143   :  { %v776_v54 = vrot.slane %v775_v45, 1  ;;  %v843_v55 = vadd.f32 %v841_v33, %v649_v44  ;;  %v779_v56 = vrot.slane %v778_v51, 4  ;;  %v788_v61 = vrot.slane %v787_v46, 2 }
 0x144   :  { %v663_v60 = vadd.f32 %v662_v49, %v661_v39  ;;  %v654_v62 = vadd.f32 %v653_v50, %v652_v41  ;;  %v665_v27 = vrot.slane %v664_v63, 4  ;;  %v710_v31 = vmul.f32 %v1319_v36, %v1319_v36 }
 0x145   :  { %v777_v52 = vadd.f32 %v776_v54, %v775_v45  ;;  %v780_v58 = vadd.f32 %v779_v56, %v778_v51  ;;  %v789_v1 = vadd.f32 %v788_v61, %v787_v46  ;;  %v917_v4 = vcombine.low %v1313_v18, %v1319_v36 }
 0x146   :  { %v655_v3 = vrot.slane %v654_v62, 1  ;;  %v671_v5 = vsel %vm586_vm1, %v1331_v7, 0.0  ;;  %v666_v0 = vadd.f32 %v665_v27, %v664_v63  ;;  %v792_v10 = vsel %vm586_vm1, %v710_v31, 0.0 }
 0x147   :  { %v844_v6 = vadd.f32 %v842_v43, %v777_v52  ;;  %v781_v9 = vrot.slane %v780_v58, 2  ;;  %v790_v16 = vrot.slane %v789_v1, 1  ;;  %v793_v47 = vrot.slane %v792_v10, 4 }
 0x148   :  { %v656_v17 = vadd.f32 %v655_v3, %v654_v62  ;;  %v1385_v53 = vrot.slane %v917_v4, %v1272_v13  ;;  %v667_v21 = vrot.slane %v666_v0, 2  ;;  %v672_v22 = vrot.slane %v671_v5, 4 }
 0x149   :  { %v782_v20 = vadd.f32 %v781_v9, %v780_v58  ;;  %v711_v18 = vmul.f32 %v1331_v7, %v1331_v7  ;;  %v791_v36 = vadd.f32 %v790_v16, %v789_v1  ;;  %v794_v24 = vadd.f32 %v793_v47, %v792_v10 }
 0x14a   :  { %v845_v23 = vadd.f32 %v843_v55, %v656_v17  ;;  %v932_v26 = vcombine.low %v1373_v57, %v1385_v53  ;;  %v668_v29 = vadd.f32 %v667_v21, %v666_v0  ;;  %v673_v30 = vadd.f32 %v672_v22, %v671_v5 }
 0x14b   :  { %v783_v28 = vrot.slane %v782_v20, 1  ;;  %v799_v11 = vsel %vm586_vm1, %v711_v18, 0.0  ;;  %v795_v32 = vrot.slane %v794_v24, 2  ;;  %v685_v37 = vsel %vm586_vm1, %v1337_v14, 0.0 }
 0x14c   :  { %v847_v33 = vadd.f32 %v845_v23, %v663_v60  ;;  %v800_v35 = vrot.slane %v799_v11, 4  ;;  %v669_v40 = vrot.slane %v668_v29, 1  ;;  %v674_v41 = vrot.slane %v673_v30, 2 }
 0x14d   :  { %v784_v39 = vadd.f32 %v783_v28, %v782_v20  ;;  %v686_v42 = vrot.slane %v685_v37, 4  ;;  %v796_v43 = vadd.f32 %v795_v32, %v794_v24  ;;  %v713_v45 = vmul.f32 %v1337_v14, %v1337_v14 }
 0x14e   :  { %v801_v44 = vadd.f32 %v800_v35, %v799_v11  ;;  %v678_v48 = vsel %vm586_vm1, %v1339_v15, 0.0  ;;  %v670_v46 = vadd.f32 %v669_v40, %v668_v29  ;;  %v675_v50 = vadd.f32 %v674_v41, %v673_v30 }
 0x14f   :  { %v846_v49 = vadd.f32 %v844_v6, %v784_v39  ;;  %v687_v51 = vadd.f32 %v686_v42, %v685_v37  ;;  %v797_v54 = vrot.slane %v796_v43, 1  ;;  %v813_v56 = vsel %vm586_vm1, %v713_v45, 0.0 }
 0x150   :  { %v802_v55 = vrot.slane %v801_v44, 2  ;;  %v679_v60 = vrot.slane %v678_v48, 4  ;;  %v849_v62 = vadd.f32 %v847_v33, %v670_v46  ;;  %v676_v63 = vrot.slane %v675_v50, 1 }
 0x151   :  { %v848_v61 = vadd.f32 %v846_v49, %v791_v36  ;;  %v688_v52 = vrot.slane %v687_v51, 2  ;;  %v798_v58 = vadd.f32 %v797_v54, %v796_v43  ;;  %v814_v31 = vrot.slane %v813_v56, 4 }
 0x152   :  { %v803_v27 = vadd.f32 %v802_v55, %v801_v44  ;;  %v680_v1 = vadd.f32 %v679_v60, %v678_v48  ;;  %v677_v3 = vadd.f32 %v676_v63, %v675_v50  ;;  %v712_v5 = vmul.f32 %v1339_v15, %v1339_v15 }
 0x153   :  { %v689_v4 = vadd.f32 %v688_v52, %v687_v51  ;;  %v933_v6 = vcombine.low %v1331_v7, %v1339_v15  ;;  %v850_v9 = vadd.f32 %v848_v61, %v798_v58  ;;  %v815_v10 = vadd.f32 %v814_v31, %v813_v56 }
 0x154   :  { %v804_v0 = vrot.slane %v803_v27, 1  ;;  %v681_v16 = vrot.slane %v680_v1, 2  ;;  %v851_v17 = vadd.f32 %v849_v62, %v677_v3  ;;  %v806_v47 = vsel %vm586_vm1, %v712_v5, 0.0 }
 0x155   :  { %v816_v21 = vrot.slane %v815_v10, 2  ;;  %v807_v18 = vrot.slane %v806_v47, 4  ;;  %v1405_v36 = vrot.slane %v933_v6, %v1272_v13  ;;  %v692_v23 = vsel %vm586_vm1, %v1341_v19, 0.0 }
 0x156   :  { %v805_v20 = vadd.f32 %v804_v0, %v803_v27  ;;  %v682_v22 = vadd.f32 %v681_v16, %v680_v1  ;;  %v714_v7 = vmul.f32 %v1341_v19, %v1341_v19  ;;  %v934_v15 = vcombine.low %v1337_v14, %v1341_v19  ;;  %v859_v27 = vld [vmem:[#allocation2] sm:$0x1]  ;;  %v862_v1 = vld [vmem:[#allocation3] sm:$0x1] }
 0x157   :  { %v690_v28 = vrot.slane %v689_v4, 1  ;;  %v808_v30 = vadd.f32 %v807_v18, %v806_v47  ;;  %v693_v11 = vrot.slane %v692_v23, 4  ;;  %v817_v35 = vadd.f32 %v816_v21, %v815_v10 }
 0x158   :  { %v852_v24 = vadd.f32 %v850_v9, %v805_v20  ;;  %v683_v29 = vrot.slane %v682_v22, 1  ;;  %v820_v32 = vsel %vm586_vm1, %v714_v7, 0.0  ;;  %v948_v33 = vrot.slane %v934_v15, %v1272_v13  ;;  %v973_v20 = vld [vmem:[#allocation6] sm:$0x1] }
 0x159   :  { %v809_v39 = vrot.slane %v808_v30, 2  ;;  %v821_v40 = vrot.slane %v820_v32, 4  ;;  %v694_v41 = vadd.f32 %v693_v11, %v692_v23  ;;  %v691_v43 = vadd.f32 %v690_v28, %v689_v4 }
 0x15a   :  { %v684_v37 = vadd.f32 %v683_v29, %v682_v22  ;;  %v949_v42 = vcombine.low %v1405_v36, %v948_v33  ;;  %v818_v48 = vrot.slane %v817_v35, 1  ;;  %v989_v21 = vsub.s32 0, %v1266_v8  ;;  %v977_v36 = vld [vmem:[#allocation8] sm:$0x1] }
 0x15b   :  { %v810_v44 = vadd.f32 %v809_v39, %v808_v30  ;;  %v822_v14 = vadd.f32 %v821_v40, %v820_v32  ;;  %v695_v19 = vrot.slane %v694_v41, 2 }
 0x15c   :  { %v853_v45 = vadd.f32 %v851_v17, %v684_v37  ;;  %v819_v60 = vadd.f32 %v818_v48, %v817_v35 }
 0x15d   :  { %v811_v49 = vrot.slane %v810_v44, 1  ;;  %v823_v46 = vrot.slane %v822_v14, 2  ;;  %v696_v51 = vadd.f32 %v695_v19, %v694_v41 }
 0x15e   :  { %v855_v50 = vadd.f32 %v853_v45, %v691_v43 }
 0x15f   :  { %v812_v54 = vadd.f32 %v811_v49, %v810_v44  ;;  %v824_v55 = vadd.f32 %v823_v46, %v822_v14  ;;  %v697_v56 = vrot.slane %v696_v51, 1 }
 0x161   :  { %v854_v61 = vadd.f32 %v852_v24, %v812_v54  ;;  %v825_v62 = vrot.slane %v824_v55, 1  ;;  %v698_v63 = vadd.f32 %v697_v56, %v696_v51 }
 0x163   :  { %v826_v52 = vadd.f32 %v825_v62, %v824_v55  ;;  %v856_v58 = vadd.f32 %v854_v61, %v819_v60  ;;  %v857_v31 = vadd.f32 %v855_v50, %v698_v63 }
 0x165   :  { %v858_v3 = vadd.f32 %v856_v58, %v826_v52  ;;  %v860_v4 = vadd.f32 %v859_v27, %v857_v31 }
 0x167   :  { %v863_v5 = vadd.f32 %v862_v1, %v858_v3  ;;  %861 = vst [vmem:[#allocation2] sm:$0x1] %v860_v4 }
 0x169   :  { %864 = vst [vmem:[#allocation3] sm:$0x1] %v863_v5 }
 0x16e   :  { %v966_v6 = vld [vmem:[#allocation2] sm:$0x1] }
 0x16f   :  { %v968_v9 = vmul.f32 0.03125, %v966_v6 }
 0x170   :  { %v969_v0 = vld [vmem:[#allocation3] sm:$0x1] }
 0x171   :  { %v970_v10 = vmul.f32 0.03125, %v969_v0  ;;  %v971_v16 = vmul.f32 %v968_v9, %v968_v9 }
 0x173   :  { %v972_v17 = vsub.f32 %v970_v10, %v971_v16 }
 0x175   :  { %v974_v47 = vadd.f32 1e-05, %v972_v17 }
 0x177   :  { %1089 = vrsqrt.f32 %v974_v47 }
 0x181   :  { %v1090_v22 = vpop.eup %1089 }
 0x182   :  { %v976_v18 = vmul.f32 %v1090_v22, %v973_v20 }
 0x184   :  { %v978_v23 = vmul.f32 %v976_v18, %v968_v9  ;;  %v990_v7 = vrot.slane %v976_v18, %v989_v21 }
 0x186   :  { %v979_v15 = vsub.f32 %v977_v36, %v978_v23  ;;  %v992_v24 = vcombine.low %v990_v7, %v990_v7 }
 0x188   :  { %v999_v28 = vrot.slane %v992_v24, %v1272_v13  ;;  %v1009_v29 = vrot.slane %v979_v15, %v989_v21 }
 0x18a   :  { %v1000_v30 = vcombine.low %v999_v28, %v999_v28  ;;  %v1011_v11 = vcombine.low %v1009_v29, %v1009_v29 }
 0x18c   :  { %v1018_v32 = vrot.slane %v1011_v11, %v1272_v13  ;;  %v1002_v33 = vmul.f32 %v1000_v30, %v898_v34  ;;  %v1003_v8 = vmul.f32 %v1000_v30, %v915_v2  ;;  %v1004_v35 = vmul.f32 %v1000_v30, %v932_v26 }
 0x18d   :  { %v1005_v37 = vmul.f32 %v1000_v30, %v949_v42 }
 0x18e   :  { %v1019_v39 = vcombine.low %v1018_v32, %v1018_v32 }
 0x190   :  { %v1021_v40 = vadd.f32 %v1019_v39, %v1002_v33  ;;  %v1022_v41 = vadd.f32 %v1019_v39, %v1003_v8  ;;  %v1023_v43 = vadd.f32 %v1019_v39, %v1004_v35  ;;  %v1024_v44 = vadd.f32 %v1019_v39, %v1005_v37 }
 0x192   :  { %v1025_v45 = vmax.f32 %v1021_v40, 0.0  ;;  %v1026_v13 = vmax.f32 %v1022_v41, 0.0  ;;  %v1027_v14 = vmax.f32 %v1023_v43, 0.0  ;;  %v1028_v19 = vmax.f32 %v1024_v44, 0.0 }
 0x194   :  { %1029 = vst [vmem:[%s1444_s4] sm:$0xff] %v1025_v45  ;;  %1030 = vst [vmem:[%s1444_s4 + $0x8] sm:$0xff] %v1026_v13 }
 0x195   :  { %1031 = vst [vmem:[%s1444_s4 + $0x10] sm:$0xff] %v1027_v14  ;;  %1032 = vst [vmem:[%s1444_s4 + $0x18] sm:$0xff] %v1028_v19 }
 0x196   :  { %1037 = vsyncpa [#allocation5], 1 }
 0x197   :  { %1038 = vsyncpa [#allocation7], 1 }

// kernel: generator_forward.7
= control target key start
LH: loop header
LB: loop body
LE: loop exit
PB: predicated region body
PF: predicated region fallthrough
CT: control target
= control target key end

     0   :  { %vm561_vm0 = vcmask 523264   ;;  %vm22_vm1 = vcmask 253952   ;;  %s1489_s9 = smov 96   ;;  %s1490_s10 = smov 32   ;;  %vm1019_vm2 = vcmask 261120   ;;  %vm1022_vm3 = vcmask 785408   ;;  %s1946_s1 = inlined_call_operand.vmem [shape: bf16[576,128], index: 1, kind: input, shape index: {}]   ;;  %s1947_s0 = inlined_call_operand.vmem [shape: bf16[128,576], index: 0, kind: input, shape index: {}]   ;;  %s1948_s2 = inlined_call_operand.vmem [shape: f32[1,32], index: 2, kind: input, shape index: {}]   ;;  %s1949_s3 = inlined_call_operand.vmem [shape: f32[1,32], index: 3, kind: input, shape index: {}]   ;;  %s1950_s4 = inlined_call_operand.vmem [shape: f32[128,128], index: 4, kind: output, shape index: {}]  }
   0x1   :  { %v1393_v0 = vld [vmem:[%s1946_s1 + $0x40] sm:$0xff]   ;;  %v1397_v4 = vld [vmem:[%s1946_s1 + $0x48] sm:$0xff]   ;;  %v1401_v8 = vld [vmem:[%s1946_s1 + $0x50] sm:$0xff]  }
   0x2   :  { %v1394_v1 = vld [vmem:[%s1946_s1 + $0xc0] sm:$0xff]   ;;  %1217 = vmatprep.subr.bf16.mxu0 %v1393_v0  ;;  %v1398_v5 = vld [vmem:[%s1946_s1 + $0xc8] sm:$0xff]   ;;  %v1402_v9 = vld [vmem:[%s1946_s1 + $0xd0] sm:$0xff]  }
   0x3   :  { %v1395_v2 = vld [vmem:[%s1946_s1] sm:$0xff]   ;;  %1281 = vmatprep.subr.bf16.mxu1 %v1394_v1  ;;  %v1399_v6 = vld [vmem:[%s1946_s1 + $0x8] sm:$0xff]   ;;  %v1403_v10 = vld [vmem:[%s1946_s1 + $0x10] sm:$0xff]  }
   0x4   :  { %v1396_v3 = vld [vmem:[%s1946_s1 + $0x80] sm:$0xff]   ;;  %1218 = vmatpush3.bf16.msra.mxu0 %v1395_v2  ;;  %v1400_v7 = vld [vmem:[%s1946_s1 + $0x88] sm:$0xff]   ;;  %v1404_v11 = vld [vmem:[%s1946_s1 + $0x90] sm:$0xff]  }
   0x5   :  { %1282 = vmatpush3.bf16.msra.mxu1 %v1396_v3  ;;  %1219 = vmatprep.subr.bf16.mxu0 %v1397_v4  ;;  %v1405_v12 = vld [vmem:[%s1946_s1 + $0x58] sm:$0xff]   ;;  %v1409_v16 = vld [vmem:[%s1946_s1 + $0x60] sm:$0xff]   ;;  %v1413_v20 = vld [vmem:[%s1946_s1 + $0x68] sm:$0xff]  }
   0x6   :  { %1283 = vmatprep.subr.bf16.mxu1 %v1398_v5  ;;  %v1406_v13 = vld [vmem:[%s1946_s1 + $0xd8] sm:$0xff]   ;;  %v1410_v17 = vld [vmem:[%s1946_s1 + $0xe0] sm:$0xff]   ;;  %v1414_v21 = vld [vmem:[%s1946_s1 + $0xe8] sm:$0xff]  }
   0x7   :  { %v1407_v14 = vld [vmem:[%s1946_s1 + $0x18] sm:$0xff]   ;;  %v1411_v18 = vld [vmem:[%s1946_s1 + $0x20] sm:$0xff]   ;;  %v1415_v22 = vld [vmem:[%s1946_s1 + $0x28] sm:$0xff]  }
   0x8   :  { %1220 = vmatpush3.bf16.msra.mxu0 %v1399_v6  ;;  %v1408_v15 = vld [vmem:[%s1946_s1 + $0x98] sm:$0xff]   ;;  %v1412_v19 = vld [vmem:[%s1946_s1 + $0xa0] sm:$0xff]   ;;  %v1416_v23 = vld [vmem:[%s1946_s1 + $0xa8] sm:$0xff]  }
   0x9   :  { %1284 = vmatpush3.bf16.msra.mxu1 %v1400_v7  ;;  %1221 = vmatprep.subr.bf16.mxu0 %v1401_v8  ;;  %v1417_v24 = vld [vmem:[%s1946_s1 + $0x70] sm:$0xff]   ;;  %v1421_v28 = vld [vmem:[%s1946_s1 + $0x78] sm:$0xff]   ;;  %v1430_v35 = vld [vmem:[%s1947_s0 + $0xc] ss:$20 sps:$4 sm:$0xff]  }
   0xa   :  { %1285 = vmatprep.subr.bf16.mxu1 %v1402_v9  ;;  %v1418_v25 = vld [vmem:[%s1946_s1 + $0xf0] sm:$0xff]   ;;  %v1422_v29 = vld [vmem:[%s1946_s1 + $0xf8] sm:$0xff]   ;;  %v1431_v36 = vld [vmem:[%s1946_s1 + $0x100] sm:$0xff]   ;;  %715 = vmatprep.mubr.bf16.mxu1 %v1430_v35 }
   0xb   :  { %v1419_v26 = vld [vmem:[%s1946_s1 + $0x30] sm:$0xff]   ;;  %v1423_v30 = vld [vmem:[%s1946_s1 + $0x38] sm:$0xff]   ;;  %v1432_v37 = vld [vmem:[%s1947_s0 + $0x2c] ss:$20 sps:$4 sm:$0xff]  }
   0xc   :  { %1222 = vmatpush3.bf16.msra.mxu0 %v1403_v10  ;;  %v1420_v27 = vld [vmem:[%s1946_s1 + $0xb0] sm:$0xff]   ;;  %v1424_v31 = vld [vmem:[%s1946_s1 + $0xb8] sm:$0xff]   ;;  %v1444_v42 = vld [vmem:[%s1946_s1 + $0x108] sm:$0xff]  }
   0xd   :  { %1286 = vmatpush3.bf16.msra.mxu1 %v1404_v11  ;;  %1223 = vmatprep.subr.bf16.mxu0 %v1405_v12  ;;  %v1425_v32 = vld [vmem:[%s1947_s0] ss:$20 sps:$4 sm:$0xff]   ;;  %v1427_v33 = vld [vmem:[%s1947_s0 + $0x4] ss:$20 sps:$4 sm:$0xff]   ;;  %v1428_v34 = vld [vmem:[%s1947_s0 + $0x8] ss:$20 sps:$4 sm:$0xff]  }
   0xe   :  { %1287 = vmatprep.subr.bf16.mxu1 %v1406_v13  ;;  %618 = vmatprep.mubr.bf16.mxu0 %v1427_v33  ;;  %v1434_v38 = vld [vmem:[%s1947_s0 + $0x34] ss:$20 sps:$4 sm:$0xff]   ;;  %v1437_v40 = vld [vmem:[%s1947_s0 + $0x30] ss:$20 sps:$4 sm:$0xff]   ;;  %v1443_v45 = vld [vmem:[%s1947_s0 + $0x58] ss:$20 sps:$4 sm:$0xff]  }
   0xf   :  { %v1436_v39 = vld [vmem:[%s1947_s0 + $0x28] ss:$20 sps:$4 sm:$0xff]   ;;  %v1442_v44 = vld [vmem:[%s1947_s0 + $0x50] ss:$20 sps:$4 sm:$0xff]   ;;  %v1449_v50 = vld [vmem:[%s1947_s0 + $0x78] ss:$20 sps:$4 sm:$0xff]  }
  0x10   :  { %1224 = vmatpush3.bf16.msra.mxu0 %v1407_v14  ;;  %v1438_v41 = vld [vmem:[%s1947_s0 + $0x54] ss:$20 sps:$4 sm:$0xff]   ;;  %v1440_v43 = vld [vmem:[%s1947_s0 + $0x5c] ss:$20 sps:$4 sm:$0xff]   ;;  %v1447_v48 = vld [vmem:[%s1947_s0 + $0x84] ss:$20 sps:$4 sm:$0xff]  }
  0x11   :  { %1288 = vmatpush3.bf16.msra.mxu1 %v1408_v15  ;;  %1225 = vmatprep.subr.bf16.mxu0 %v1409_v16  ;;  %v1457_v46 = vld [vmem:[%s1946_s1 + $0x110] sm:$0xff]   ;;  %v1470_v49 = vld [vmem:[%s1946_s1 + $0x118] sm:$0xff]   ;;  %v1453_v53 = vld [vmem:[%s1947_s0 + $0xac] ss:$20 sps:$4 sm:$0xff]  }
  0x12   :  { %1289 = vmatprep.subr.bf16.mxu1 %v1410_v17  ;;  %v1445_v47 = vld [vmem:[%s1947_s0 + $0x7c] ss:$20 sps:$4 sm:$0xff]   ;;  %v1450_v51 = vld [vmem:[%s1947_s0 + $0x80] ss:$20 sps:$4 sm:$0xff]   ;;  %v1451_v52 = vld [vmem:[%s1947_s0 + $0xa4] ss:$20 sps:$4 sm:$0xff]  }
  0x13   :  { %v1455_v54 = vld [vmem:[%s1947_s0 + $0xa0] ss:$20 sps:$4 sm:$0xff]   ;;  %v1456_v55 = vld [vmem:[%s1947_s0 + $0xa8] ss:$20 sps:$4 sm:$0xff]   ;;  %v1463_v59 = vld [vmem:[%s1947_s0 + $0xd0] ss:$20 sps:$4 sm:$0xff]  }
  0x14   :  { %1226 = vmatpush3.bf16.msra.mxu0 %v1411_v18  ;;  %v1458_v56 = vld [vmem:[%s1947_s0 + $0xcc] ss:$20 sps:$4 sm:$0xff]   ;;  %v1460_v57 = vld [vmem:[%s1947_s0 + $0xd4] ss:$20 sps:$4 sm:$0xff]   ;;  %v1466_v61 = vld [vmem:[%s1947_s0 + $0xfc] ss:$20 sps:$4 sm:$0xff]  }
  0x15   :  { %1290 = vmatpush3.bf16.msra.mxu1 %v1412_v19  ;;  %1227 = vmatprep.subr.bf16.mxu0 %v1413_v20  ;;  %v1462_v58 = vld [vmem:[%s1947_s0 + $0xc8] ss:$20 sps:$4 sm:$0xff]   ;;  %v1468_v62 = vld [vmem:[%s1947_s0 + $0xf0] ss:$20 sps:$4 sm:$0xff]   ;;  %v1469_v63 = vld [vmem:[%s1947_s0 + $0xf8] ss:$20 sps:$4 sm:$0xff]  }
  0x16   :  { %1291 = vmatprep.subr.bf16.mxu1 %v1414_v21  ;;  %v1464_v60 = vld [vmem:[%s1947_s0 + $0xf4] ss:$20 sps:$4 sm:$0xff]   ;;  %v1471_v0 = vld [vmem:[%s1947_s0 + $0x11c] ss:$20 sps:$4 sm:$0xff]   ;;  %v1473_v1 = vld [vmem:[%s1947_s0 + $0x124] ss:$20 sps:$4 sm:$0xff]  }
  0x17   :  { %v1475_v2 = vld [vmem:[%s1947_s0 + $0x118] ss:$20 sps:$4 sm:$0xff]   ;;  %v1476_v3 = vld [vmem:[%s1947_s0 + $0x120] ss:$20 sps:$4 sm:$0xff]   ;;  %v1477_v4 = vld [vmem:[%s1947_s0 + $0x10] ss:$20 sps:$4 sm:$0xff]  }
  0x18   :  { %1228 = vmatpush3.bf16.msra.mxu0 %v1415_v22  ;;  %v1478_v5 = vld [vmem:[%s1947_s0 + $0xb0] ss:$20 sps:$4 sm:$0xff]   ;;  %v1479_v6 = vld [vmem:[%s1947_s0 + $0x38] ss:$20 sps:$4 sm:$0xff]   ;;  %v1481_v8 = vld [vmem:[%s1947_s0 + $0x60] ss:$20 sps:$4 sm:$0xff]  }
  0x19   :  { %1292 = vmatpush3.bf16.msra.mxu1 %v1416_v23  ;;  %1229 = vmatprep.subr.bf16.mxu0 %v1417_v24  ;;  %v1480_v7 = vld [vmem:[%s1947_s0 + $0xd8] ss:$20 sps:$4 sm:$0xff]   ;;  %v1482_v9 = vld [vmem:[%s1947_s0 + $0x100] ss:$20 sps:$4 sm:$0xff]   ;;  %v1483_v10 = vld [vmem:[%s1947_s0 + $0x88] ss:$20 sps:$4 sm:$0xff]  }
  0x1a   :  { %1293 = vmatprep.subr.bf16.mxu1 %v1418_v25  ;;  %v1484_v11 = vld [vmem:[%s1947_s0 + $0x128] ss:$20 sps:$4 sm:$0xff]   ;;  %s1488_s0 = smov 64  }
  0x1c   :  { %1230 = vmatpush3.bf16.msra.mxu0 %v1419_v26 }
  0x1d   :  { %1294 = vmatpush3.bf16.msra.mxu1 %v1420_v27  ;;  %1231 = vmatprep.subr.bf16.mxu0 %v1421_v28 }
  0x1e   :  { %1295 = vmatprep.subr.bf16.mxu1 %v1422_v29 }
  0x20   :  { %1232 = vmatpush3.bf16.msra.mxu0 %v1423_v30 }
  0x21   :  { %1296 = vmatpush3.bf16.msra.mxu1 %v1424_v31  ;;  %1357 = vmatprep.subr.bf16.mxu0 %v1431_v36 }
  0x22   :  { %1381 = vmatprep.subr.bf16.mxu1 %v1431_v36 }
  0x23   :  { %619 = vmatmul.mubr.bf16.vlgmr.msra.gmra.mrb[0].mxu0 %v1425_v32 }
  0x24   :  { %716 = vmatmul.mubr.bf16.vlgmr.msra.gmra.mrb[0].mxu1 %v1428_v34  ;;  %1358 = vmatpush3.bf16.msra.mxu0 %v1431_v36 }
  0x25   :  { %626 = vmatprep.mubr.bf16.mxu0 %v1432_v37  ;;  %723 = vmatprep.mubr.bf16.mxu1 %v1434_v38 }
  0x26   :  { %1385 = vmatpush3.bf16.msra.mxu1 %v1431_v36  ;;  %1359 = vmatprep.subr.bf16.mxu0 %v1444_v42 }
  0x27   :  { %1382 = vmatprep.subr.bf16.mxu1 %v1444_v42 }
  0x28   :  { %1360 = vmatpush3.bf16.msra.mxu0 %v1444_v42 }
  0x29   :  { %1361 = vmatprep.subr.bf16.mxu0 %v1457_v46 }
  0x2a   :  { %1386 = vmatpush3.bf16.msra.mxu1 %v1444_v42 }
  0x2b   :  { %627 = vmatmul.mubr.bf16.gmra.mrb[4].mxu0 %v1436_v39  ;;  %1383 = vmatprep.subr.bf16.mxu1 %v1457_v46 }
  0x2c   :  { %724 = vmatmul.mubr.bf16.gmra.mrb[4].mxu1 %v1437_v40  ;;  %634 = vmatprep.mubr.bf16.mxu0 %v1438_v41 }
  0x2d   :  { %731 = vmatprep.mubr.bf16.mxu1 %v1440_v43  ;;  %1362 = vmatpush3.bf16.msra.mxu0 %v1457_v46 }
  0x2e   :  { %1387 = vmatpush3.bf16.msra.mxu1 %v1457_v46  ;;  %1363 = vmatprep.subr.bf16.mxu0 %v1470_v49 }
  0x2f   :  { %1384 = vmatprep.subr.bf16.mxu1 %v1470_v49 }
  0x31   :  { %1364 = vmatpush3.bf16.msra.mxu0 %v1470_v49 }
  0x32   :  { %1388 = vmatpush3.bf16.msra.mxu1 %v1470_v49 }
  0x33   :  { %635 = vmatmul.mubr.bf16.gmra.mrb[8].mxu0 %v1442_v44 }
  0x34   :  { %732 = vmatmul.mubr.bf16.gmra.mrb[8].mxu1 %v1443_v45  ;;  %642 = vmatprep.mubr.bf16.mxu0 %v1445_v47 }
  0x35   :  { %739 = vmatprep.mubr.bf16.mxu1 %v1447_v48 }
  0x3b   :  { %643 = vmatmul.mubr.bf16.gmra.mrb[12].mxu0 %v1449_v50 }
  0x3c   :  { %740 = vmatmul.mubr.bf16.gmra.mrb[12].mxu1 %v1450_v51  ;;  %650 = vmatprep.mubr.bf16.mxu0 %v1451_v52 }
  0x3d   :  { %747 = vmatprep.mubr.bf16.mxu1 %v1453_v53 }
  0x43   :  { %651 = vmatmul.mubr.bf16.gmra.mrb[16].mxu0 %v1455_v54 }
  0x44   :  { %748 = vmatmul.mubr.bf16.gmra.mrb[16].mxu1 %v1456_v55  ;;  %658 = vmatprep.mubr.bf16.mxu0 %v1458_v56 }
  0x45   :  { %755 = vmatprep.mubr.bf16.mxu1 %v1460_v57 }
  0x4b   :  { %659 = vmatmul.mubr.bf16.gmra.mrb[20].mxu0 %v1462_v58 }
  0x4c   :  { %756 = vmatmul.mubr.bf16.gmra.mrb[20].mxu1 %v1463_v59  ;;  %666 = vmatprep.mubr.bf16.mxu0 %v1464_v60 }
  0x4d   :  { %763 = vmatprep.mubr.bf16.mxu1 %v1466_v61 }
  0x53   :  { %667 = vmatmul.mubr.bf16.gmra.mrb[24].mxu0 %v1468_v62 }
  0x54   :  { %764 = vmatmul.mubr.bf16.gmra.mrb[24].mxu1 %v1469_v63  ;;  %674 = vmatprep.mubr.bf16.mxu0 %v1471_v0 }
  0x55   :  { %771 = vmatprep.mubr.bf16.mxu1 %v1473_v1 }
  0x5b   :  { %675 = vmatmul.mubr.bf16.gmra.mrb[28].mxu0 %v1475_v2 }
  0x5c   :  { %772 = vmatmul.mubr.bf16.gmra.mrb[28].mxu1 %v1476_v3  ;;  %1365 = vmatprep.mubr.msk.bf16.mxu0 %vm561_vm0, %v1477_v4 }
  0x5d   :  { %1373 = vmatprep.mubr.msk.bf16.mxu1 %vm561_vm0, %v1478_v5 }
  0x63   :  { %1366 = vmatmul.mubr.msk.bf16.vlgmr.msra.gmra.mrb[32].mxu0 %vm561_vm0, %v1479_v6 }
  0x64   :  { %1374 = vmatmul.mubr.msk.bf16.vlgmr.msra.gmra.mrb[32].mxu1 %vm561_vm0, %v1480_v7  ;;  %1369 = vmatprep.mubr.msk.bf16.mxu0 %vm561_vm0, %v1481_v8 }
  0x65   :  { %1377 = vmatprep.mubr.msk.bf16.mxu1 %vm561_vm0, %v1482_v9 }
  0x6b   :  { %1370 = vmatmul.mubr.msk.bf16.gmra.mrb[36].mxu0 %vm561_vm0, %v1483_v10 }
  0x6c   :  { %1378 = vmatmul.mubr.msk.bf16.gmra.mrb[36].mxu1 %vm561_vm0, %v1484_v11 }
  0xf6   :  { %v1233_v12 = vpop.f32.mrb[0].mxu0 }
  0xf7   :  { %v1297_v13 = vpop.f32.mrb[0].mxu1  ;;  %v1234_v14 = vpop.f32.mrb[1].mxu0 }
  0xf8   :  { %v1235_v15 = vadd.f32 %v1234_v14, %v1233_v12  ;;  %v1298_v16 = vpop.f32.mrb[1].mxu1  ;;  %v1236_v17 = vpop.f32.mrb[2].mxu0 }
  0xf9   :  { %v1299_v18 = vadd.f32 %v1298_v16, %v1297_v13  ;;  %v1300_v19 = vpop.f32.mrb[2].mxu1  ;;  %v1237_v20 = vpop.f32.mrb[3].mxu0 }
  0xfa   :  { %v1238_v21 = vadd.f32 %v1237_v20, %v1236_v17  ;;  %v1301_v22 = vpop.f32.mrb[3].mxu1 }
  0xfb   :  { %v1302_v23 = vadd.f32 %v1301_v22, %v1300_v19  ;;  %v1752_v24 = vadd.f32 %v1299_v18, %v1235_v15 }
  0xfd   :  { %v1754_v25 = vadd.f32 %v1302_v23, %v1238_v21 }
  0xfe   :  { %v1239_v26 = vpop.f32.mrb[4].mxu0 }
  0xff   :  { %v1303_v27 = vpop.f32.mrb[4].mxu1  ;;  %v1240_v28 = vpop.f32.mrb[5].mxu0 }
 0x100   :  { %v1241_v29 = vadd.f32 %v1240_v28, %v1239_v26  ;;  %v1304_v30 = vpop.f32.mrb[5].mxu1  ;;  %v1242_v31 = vpop.f32.mrb[6].mxu0 }
 0x101   :  { %v1305_v32 = vadd.f32 %v1304_v30, %v1303_v27  ;;  %v1306_v33 = vpop.f32.mrb[6].mxu1  ;;  %v1243_v34 = vpop.f32.mrb[7].mxu0 }
 0x102   :  { %v1244_v35 = vadd.f32 %v1243_v34, %v1242_v31  ;;  %v1307_v36 = vpop.f32.mrb[7].mxu1 }
 0x103   :  { %v1308_v37 = vadd.f32 %v1307_v36, %v1306_v33  ;;  %v1756_v38 = vadd.f32 %v1305_v32, %v1241_v29 }
 0x105   :  { %v1758_v39 = vadd.f32 %v1308_v37, %v1244_v35 }
 0x106   :  { %v1245_v40 = vpop.f32.mrb[8].mxu0 }
 0x107   :  { %v1309_v41 = vpop.f32.mrb[8].mxu1  ;;  %v1246_v42 = vpop.f32.mrb[9].mxu0 }
 0x108   :  { %v1247_v43 = vadd.f32 %v1246_v42, %v1245_v40  ;;  %v1310_v44 = vpop.f32.mrb[9].mxu1  ;;  %v1248_v45 = vpop.f32.mrb[10].mxu0 }
 0x109   :  { %v1311_v46 = vadd.f32 %v1310_v44, %v1309_v41  ;;  %v1312_v47 = vpop.f32.mrb[10].mxu1  ;;  %v1249_v48 = vpop.f32.mrb[11].mxu0 }
 0x10a   :  { %v1250_v49 = vadd.f32 %v1249_v48, %v1248_v45  ;;  %v1313_v50 = vpop.f32.mrb[11].mxu1 }
 0x10b   :  { %v1314_v51 = vadd.f32 %v1313_v50, %v1312_v47  ;;  %v1760_v52 = vadd.f32 %v1311_v46, %v1247_v43 }
 0x10d   :  { %v1762_v53 = vadd.f32 %v1314_v51, %v1250_v49 }
 0x10e   :  { %v1251_v54 = vpop.f32.mrb[12].mxu0 }
 0x10f   :  { %v1315_v55 = vpop.f32.mrb[12].mxu1  ;;  %v1252_v56 = vpop.f32.mrb[13].mxu0 }
 0x110   :  { %v1253_v57 = vadd.f32 %v1252_v56, %v1251_v54  ;;  %v1316_v58 = vpop.f32.mrb[13].mxu1  ;;  %v1254_v59 = vpop.f32.mrb[14].mxu0 }
 0x111   :  { %v1317_v60 = vadd.f32 %v1316_v58, %v1315_v55  ;;  %v1318_v61 = vpop.f32.mrb[14].mxu1  ;;  %v1255_v62 = vpop.f32.mrb[15].mxu0 }
 0x112   :  { %v1256_v63 = vadd.f32 %v1255_v62, %v1254_v59  ;;  %v1319_v0 = vpop.f32.mrb[15].mxu1 }
 0x113   :  { %v1320_v1 = vadd.f32 %v1319_v0, %v1318_v61  ;;  %v1764_v2 = vadd.f32 %v1317_v60, %v1253_v57 }
 0x115   :  { %v1766_v3 = vadd.f32 %v1320_v1, %v1256_v63 }
 0x116   :  { %v1257_v4 = vpop.f32.mrb[16].mxu0 }
 0x117   :  { %v1321_v5 = vpop.f32.mrb[16].mxu1  ;;  %v1258_v6 = vpop.f32.mrb[17].mxu0 }
 0x118   :  { %v1259_v7 = vadd.f32 %v1258_v6, %v1257_v4  ;;  %v1322_v8 = vpop.f32.mrb[17].mxu1  ;;  %v1260_v9 = vpop.f32.mrb[18].mxu0 }
 0x119   :  { %v1323_v10 = vadd.f32 %v1322_v8, %v1321_v5  ;;  %v1324_v11 = vpop.f32.mrb[18].mxu1  ;;  %v1261_v12 = vpop.f32.mrb[19].mxu0 }
 0x11a   :  { %v1262_v13 = vadd.f32 %v1261_v12, %v1260_v9  ;;  %v1325_v14 = vpop.f32.mrb[19].mxu1 }
 0x11b   :  { %v1326_v15 = vadd.f32 %v1325_v14, %v1324_v11  ;;  %v750_v16 = vadd.f32 %v1323_v10, %v1259_v7 }
 0x11d   :  { %v753_v17 = vadd.f32 %v1326_v15, %v1262_v13 }
 0x11e   :  { %v1263_v18 = vpop.f32.mrb[20].mxu0 }
 0x11f   :  { %v1327_v19 = vpop.f32.mrb[20].mxu1  ;;  %v1264_v20 = vpop.f32.mrb[21].mxu0 }
 0x120   :  { %v1265_v21 = vadd.f32 %v1264_v20, %v1263_v18  ;;  %v1328_v22 = vpop.f32.mrb[21].mxu1  ;;  %v1266_v23 = vpop.f32.mrb[22].mxu0 }
 0x121   :  { %v1329_v26 = vadd.f32 %v1328_v22, %v1327_v19  ;;  %v1330_v27 = vpop.f32.mrb[22].mxu1  ;;  %v1267_v28 = vpop.f32.mrb[23].mxu0 }
 0x122   :  { %v1268_v29 = vadd.f32 %v1267_v28, %v1266_v23  ;;  %v1331_v30 = vpop.f32.mrb[23].mxu1 }
 0x123   :  { %v1332_v31 = vadd.f32 %v1331_v30, %v1330_v27  ;;  %v758_v32 = vadd.f32 %v1329_v26, %v1265_v21 }
 0x125   :  { %v761_v33 = vadd.f32 %v1332_v31, %v1268_v29 }
 0x126   :  { %v1269_v34 = vpop.f32.mrb[24].mxu0 }
 0x127   :  { %v1333_v35 = vpop.f32.mrb[24].mxu1  ;;  %v1270_v36 = vpop.f32.mrb[25].mxu0 }
 0x128   :  { %v1271_v37 = vadd.f32 %v1270_v36, %v1269_v34  ;;  %v1334_v40 = vpop.f32.mrb[25].mxu1  ;;  %v1272_v41 = vpop.f32.mrb[26].mxu0 }
 0x129   :  { %v1335_v42 = vadd.f32 %v1334_v40, %v1333_v35  ;;  %v1336_v43 = vpop.f32.mrb[26].mxu1  ;;  %v1273_v44 = vpop.f32.mrb[27].mxu0 }
 0x12a   :  { %v1274_v45 = vadd.f32 %v1273_v44, %v1272_v41  ;;  %v1337_v46 = vpop.f32.mrb[27].mxu1 }
 0x12b   :  { %v1338_v47 = vadd.f32 %v1337_v46, %v1336_v43  ;;  %v766_v48 = vadd.f32 %v1335_v42, %v1271_v37 }
 0x12d   :  { %v769_v49 = vadd.f32 %v1338_v47, %v1274_v45 }
 0x12e   :  { %v1275_v50 = vpop.f32.mrb[28].mxu0 }
 0x12f   :  { %v1339_v51 = vpop.f32.mrb[28].mxu1  ;;  %v1276_v54 = vpop.f32.mrb[29].mxu0 }
 0x130   :  { %v1277_v55 = vadd.f32 %v1276_v54, %v1275_v50  ;;  %v1340_v56 = vpop.f32.mrb[29].mxu1  ;;  %v1278_v57 = vpop.f32.mrb[30].mxu0 }
 0x131   :  { %v1341_v58 = vadd.f32 %v1340_v56, %v1339_v51  ;;  %v1342_v59 = vpop.f32.mrb[30].mxu1  ;;  %v1279_v60 = vpop.f32.mrb[31].mxu0 }
 0x132   :  { %v1280_v61 = vadd.f32 %v1279_v60, %v1278_v57  ;;  %v1343_v62 = vpop.f32.mrb[31].mxu1 }
 0x133   :  { %v1344_v63 = vadd.f32 %v1343_v62, %v1342_v59  ;;  %v774_v0 = vadd.f32 %v1341_v58, %v1277_v55 }
 0x135   :  { %v777_v1 = vadd.f32 %v1344_v63, %v1280_v61 }
 0x136   :  { %v1367_v4 = vpop.f32.mrb[32].mxu0 }
 0x137   :  { %v1769_v5 = vadd.f32 %v1367_v4, %v1756_v38  ;;  %v1375_v6 = vpop.f32.mrb[32].mxu1  ;;  %v814_v7 = vpop.f32.mrb[33].mxu0 }
 0x138   :  { %v1771_v8 = vadd.f32 %v1375_v6, %v758_v32  ;;  %v1774_v9 = vadd.f32 %v814_v7, %v1752_v24  ;;  %v846_v10 = vpop.f32.mrb[33].mxu1  ;;  %v1368_v11 = vpop.f32.mrb[34].mxu0 }
 0x139   :  { %v1776_v12 = vadd.f32 %v846_v10, %v750_v16  ;;  %v1779_v13 = vadd.f32 %v1368_v11, %v1758_v39  ;;  %v1376_v14 = vpop.f32.mrb[34].mxu1  ;;  %v817_v15 = vpop.f32.mrb[35].mxu0  ;;  %v900_v21 = vmul.f32 %v1769_v5, %v1769_v5 }
 0x13a   :  { %v1781_v18 = vadd.f32 %v1376_v14, %v761_v33  ;;  %v1784_v38 = vadd.f32 %v817_v15, %v1754_v25  ;;  %v849_v19 = vpop.f32.mrb[35].mxu1  ;;  %v898_v24 = vmul.f32 %v1774_v9, %v1774_v9  ;;  %v908_v61 = vmul.f32 %v1771_v8, %v1771_v8 }
 0x13b   :  { %v1786_v20 = vadd.f32 %v849_v19, %v753_v17  ;;  %v901_v17 = vmul.f32 %v1779_v13, %v1779_v13 }
 0x13c   :  { %v877_v16 = vadd.f32 %v1784_v38, %v1774_v9  ;;  %v899_v39 = vmul.f32 %v1784_v38, %v1784_v38 }
 0x13d   :  { %v907_v58 = vmul.f32 %v1786_v20, %v1786_v20 }
 0x13e   :  { %v878_v22 = vadd.f32 %v877_v16, %v1769_v5  ;;  %v914_v23 = vadd.f32 %v899_v39, %v898_v24  ;;  %v1371_v25 = vpop.f32.mrb[36].mxu0 }
 0x13f   :  { %v1800_v26 = vadd.f32 %v1371_v25, %v1764_v2  ;;  %v1379_v27 = vpop.f32.mrb[36].mxu1  ;;  %v830_v28 = vpop.f32.mrb[37].mxu0 }
 0x140   :  { %v915_v29 = vadd.f32 %v914_v23, %v900_v21  ;;  %v1802_v30 = vadd.f32 %v1379_v27, %v774_v0  ;;  %v1805_v31 = vadd.f32 %v830_v28, %v1760_v52  ;;  %v879_v32 = vadd.f32 %v878_v22, %v1779_v13  ;;  %v862_v33 = vpop.f32.mrb[37].mxu1  ;;  %v1372_v34 = vpop.f32.mrb[38].mxu0 }
 0x141   :  { %v1808_v35 = vadd.f32 %v862_v33, %v766_v48  ;;  %v1811_v36 = vadd.f32 %v1372_v34, %v1766_v3  ;;  %v1380_v37 = vpop.f32.mrb[38].mxu1  ;;  %v833_v2 = vpop.f32.mrb[39].mxu0  ;;  %v904_v48 = vmul.f32 %v1800_v26, %v1800_v26  ;;  %v909_v0 = vmul.f32 %v1781_v18, %v1781_v18 }
 0x142   :  { %v880_v40 = vadd.f32 %v879_v32, %v1805_v31  ;;  %v902_v41 = vmul.f32 %v1805_v31, %v1805_v31  ;;  %v916_v42 = vadd.f32 %v915_v29, %v901_v17  ;;  %v865_v43 = vpop.f32.mrb[39].mxu1  ;;  %v1816_v52 = vadd.f32 %v1380_v37, %v777_v1 }
 0x143   :  { %v1819_v44 = vadd.f32 %v833_v2, %v1762_v53  ;;  %v1821_v46 = vadd.f32 %v865_v43, %v769_v49  ;;  %v905_v54 = vmul.f32 %v1811_v36, %v1811_v36  ;;  %v906_v49 = vmul.f32 %v1776_v12, %v1776_v12 }
 0x144   :  { %v917_v45 = vadd.f32 %v916_v42, %v902_v41  ;;  %v910_v6 = vmul.f32 %v1808_v35, %v1808_v35  ;;  %v912_v19 = vmul.f32 %v1802_v30, %v1802_v30  ;;  %v913_v39 = vmul.f32 %v1816_v52, %v1816_v52 }
 0x145   :  { %v881_v3 = vadd.f32 %v880_v40, %v1819_v44  ;;  %v903_v47 = vmul.f32 %v1819_v44, %v1819_v44  ;;  %v911_v14 = vmul.f32 %v1821_v46, %v1821_v46  ;;  %v1487_v28 = vmov 0.0  }
 0x146   :  { %24 = vst.msk [vmem:[#allocation3] sm:$0x1] %vm22_vm1, %v1487_v28  ;;  %23 = vst.msk [vmem:[#allocation2] sm:$0x1] %vm22_vm1, %v1487_v28 }
 0x147   :  { %v882_v50 = vadd.f32 %v881_v3, %v1800_v26  ;;  %v918_v51 = vadd.f32 %v917_v45, %v903_v47 }
 0x149   :  { %v883_v53 = vadd.f32 %v882_v50, %v1811_v36  ;;  %v919_v55 = vadd.f32 %v918_v51, %v904_v48 }
 0x14b   :  { %v884_v56 = vadd.f32 %v883_v53, %v1776_v12  ;;  %v920_v57 = vadd.f32 %v919_v55, %v905_v54 }
 0x14d   :  { %v921_v59 = vadd.f32 %v920_v57, %v906_v49  ;;  %v885_v60 = vadd.f32 %v884_v56, %v1786_v20  ;;  %v967_v53 = vld [vmem:[#allocation3] sm:$0x1]  ;;  %v963_v49 = vld [vmem:[#allocation2] sm:$0x1] }
 0x14f   :  { %v886_v62 = vadd.f32 %v885_v60, %v1771_v8  ;;  %v922_v63 = vadd.f32 %v921_v59, %v907_v58 }
 0x151   :  { %v887_v1 = vadd.f32 %v886_v62, %v1781_v18  ;;  %v923_v4 = vadd.f32 %v922_v63, %v908_v61 }
 0x153   :  { %v888_v7 = vadd.f32 %v887_v1, %v1808_v35  ;;  %v924_v10 = vadd.f32 %v923_v4, %v909_v0 }
 0x155   :  { %v889_v11 = vadd.f32 %v888_v7, %v1821_v46  ;;  %v925_v15 = vadd.f32 %v924_v10, %v910_v6  ;;  %v1006_v7 = vlaneseq }
 0x157   :  { %v890_v24 = vadd.f32 %v889_v11, %v1802_v30  ;;  %v926_v16 = vadd.f32 %v925_v15, %v911_v14  ;;  %v1007_v10 = vshrl.u32 %v1006_v7, 7  ;;  %v998_v11 = vld [vmem:[%s1948_s2] sm:$0x1] }
 0x159   :  { %v891_v21 = vadd.f32 %v890_v24, %v1816_v52  ;;  %v927_v22 = vadd.f32 %v926_v16, %v912_v19  ;;  %v1008_v14 = vsub.s32 0, %v1007_v10  ;;  %v1002_v24 = vld [vmem:[%s1949_s3] sm:$0x1] }
 0x15b   :  { %v892_v23 = vrot.slane %v891_v21, 4  ;;  %v928_v25 = vadd.f32 %v927_v22, %v913_v39 }
 0x15d   :  { %v893_v17 = vadd.f32 %v892_v23, %v891_v21  ;;  %v929_v27 = vrot.slane %v928_v25, 4 }
 0x15f   :  { %v894_v29 = vrot.slane %v893_v17, 2  ;;  %v930_v32 = vadd.f32 %v929_v27, %v928_v25 }
 0x161   :  { %v895_v33 = vadd.f32 %v894_v29, %v893_v17  ;;  %v931_v34 = vrot.slane %v930_v32, 2 }
 0x163   :  { %v896_v37 = vrot.slane %v895_v33, 1  ;;  %v932_v2 = vadd.f32 %v931_v34, %v930_v32 }
 0x165   :  { %v897_v40 = vadd.f32 %v896_v37, %v895_v33  ;;  %v933_v41 = vrot.slane %v932_v2, 1 }
 0x167   :  { %947 = vrot.lane.b32.xlu1 %v897_v40, %s1488_s0  ;;  %938 = vrot.lane.b32.xlu0 %v897_v40, %s1489_s9  ;;  %v934_v42 = vadd.f32 %v933_v41, %v932_v2 }
 0x16b   :  { %951 = vrot.lane.b32.xlu1 %v934_v42, %s1488_s0  ;;  %943 = vrot.lane.b32.xlu0 %v934_v42, %s1489_s9 }
 0x16f   :  { %959 = vrot.lane.b32.xlu1 %v934_v42, %s1490_s10  ;;  %955 = vrot.lane.b32.xlu0 %v897_v40, %s1490_s10 }
 0x1d9   :  { %v948_v43 = vpop.permute.xlu1 %947  ;;  %v939_v45 = vpop.permute.xlu0 %938 }
 0x1da   :  { %v941_v3 = vadd.f32 %v939_v45, %v897_v40 }
 0x1dc   :  { %v950_v54 = vadd.f32 %v948_v43, %v941_v3 }
 0x1dd   :  { %v952_v47 = vpop.permute.xlu1 %951  ;;  %v944_v48 = vpop.permute.xlu0 %943 }
 0x1de   :  { %v946_v50 = vadd.f32 %v944_v48, %v934_v42 }
 0x1e0   :  { %v954_v51 = vadd.f32 %v952_v47, %v946_v50 }
 0x1e1   :  { %v960_v55 = vpop.permute.xlu1 %959  ;;  %v956_v56 = vpop.permute.xlu0 %955 }
 0x1e2   :  { %v962_v57 = vadd.f32 %v960_v55, %v954_v51  ;;  %v958_v58 = vadd.f32 %v956_v56, %v950_v54 }
 0x1e4   :  { %v968_v59 = vadd.f32 %v967_v53, %v962_v57  ;;  %v964_v60 = vadd.f32 %v963_v49, %v958_v58 }
 0x1e6   :  { %969 = vst.msk [vmem:[#allocation3] sm:$0x1] %vm22_vm1, %v968_v59  ;;  %966 = vst.msk [vmem:[#allocation2] sm:$0x1] %vm22_vm1, %v964_v60 }
 0x1ed   :  { %v991_v61 = vld [vmem:[#allocation2] sm:$0x1]  ;;  %v994_v62 = vld [vmem:[#allocation3] sm:$0x1] }
 0x1ee   :  { %v993_v63 = vmul.f32 0.001953125, %v991_v61  ;;  %v995_v0 = vmul.f32 0.001953125, %v994_v62 }
 0x1f0   :  { %v996_v1 = vmul.f32 %v993_v63, %v993_v63 }
 0x1f2   :  { %v997_v4 = vsub.f32 %v995_v0, %v996_v1 }
 0x1f4   :  { %v999_v6 = vadd.f32 1e-05, %v997_v4 }
 0x1f6   :  { %1485 = vrsqrt.f32 %v999_v6 }
 0x200   :  { %v1486_v15 = vpop.eup %1485 }
 0x201   :  { %v1001_v19 = vmul.f32 %v1486_v15, %v998_v11 }
 0x203   :  { %v1009_v16 = vrot.slane %v1001_v19, %v1008_v14  ;;  %v1003_v39 = vmul.f32 %v1001_v19, %v993_v63 }
 0x205   :  { %1013 = vrot.lane.b32.xlu1 %v1009_v16, %s1488_s0  ;;  %1010 = vrot.lane.b32.xlu0 %v1009_v16, %s1490_s10  ;;  %v1004_v21 = vsub.f32 %v1002_v24, %v1003_v39 }
 0x207   :  { %v1028_v22 = vrot.slane %v1004_v21, %v1008_v14 }
 0x209   :  { %1016 = vrot.lane.b32.xlu0 %v1009_v16, %s1489_s9  ;;  %1029 = vrot.lane.b32.xlu1 %v1028_v22, %s1490_s10 }
 0x20d   :  { %1032 = vrot.lane.b32.xlu0 %v1028_v22, %s1488_s0  ;;  %1035 = vrot.lane.b32.xlu1 %v1028_v22, %s1489_s9 }
 0x277   :  { %v1014_v23 = vpop.permute.xlu1 %1013  ;;  %v1011_v25 = vpop.permute.xlu0 %1010 }
 0x278   :  { %v1020_v17 = vsel %vm1019_vm2, %v1001_v19, %v1011_v25 }
 0x279   :  { %v1021_v27 = vsel %vm561_vm0, %v1020_v17, %v1014_v23 }
 0x27b   :  { %v1017_v28 = vpop.permute.xlu0 %1016  ;;  %v1030_v29 = vpop.permute.xlu1 %1029 }
 0x27c   :  { %v1023_v32 = vsel %vm1022_vm3, %v1021_v27, %v1017_v28  ;;  %v1038_v42 = vsel %vm1019_vm2, %v1004_v21, %v1030_v29 }
 0x27d   :  { %v1060_v33 = vrot.slane %v1023_v32, %v1008_v14 }
 0x27f   :  { %v1033_v34 = vpop.permute.xlu0 %1032  ;;  %v1036_v37 = vpop.permute.xlu1 %1035  ;;  %v1061_v2 = vmul.f32 %v1060_v33, %v1774_v9  ;;  %v1062_v40 = vmul.f32 %v1060_v33, %v1784_v38  ;;  %v1063_v41 = vmul.f32 %v1060_v33, %v1769_v5  ;;  %v1064_v43 = vmul.f32 %v1060_v33, %v1779_v13 }
 0x280   :  { %v1065_v45 = vmul.f32 %v1060_v33, %v1805_v31  ;;  %v1066_v3 = vmul.f32 %v1060_v33, %v1819_v44  ;;  %v1039_v47 = vsel %vm561_vm0, %v1038_v42, %v1033_v34  ;;  %v1067_v48 = vmul.f32 %v1060_v33, %v1800_v26 }
 0x281   :  { %v1068_v50 = vmul.f32 %v1060_v33, %v1811_v36  ;;  %v1069_v51 = vmul.f32 %v1060_v33, %v1776_v12  ;;  %v1040_v9 = vsel %vm1022_vm3, %v1039_v47, %v1036_v37  ;;  %v1070_v38 = vmul.f32 %v1060_v33, %v1786_v20 }
 0x282   :  { %v1071_v5 = vmul.f32 %v1060_v33, %v1771_v8  ;;  %v1072_v13 = vmul.f32 %v1060_v33, %v1781_v18  ;;  %v1080_v54 = vrot.slane %v1040_v9, %v1008_v14  ;;  %v1073_v31 = vmul.f32 %v1060_v33, %v1808_v35 }
 0x283   :  { %v1074_v44 = vmul.f32 %v1060_v33, %v1821_v46  ;;  %v1075_v53 = vmul.f32 %v1060_v33, %v1802_v30  ;;  %v1076_v26 = vmul.f32 %v1060_v33, %v1816_v52 }
 0x284   :  { %v1081_v36 = vadd.f32 %v1080_v54, %v1061_v2  ;;  %v1082_v55 = vadd.f32 %v1080_v54, %v1062_v40  ;;  %v1083_v12 = vadd.f32 %v1080_v54, %v1063_v41  ;;  %v1084_v49 = vadd.f32 %v1080_v54, %v1064_v43 }
 0x285   :  { %v1085_v56 = vadd.f32 %v1080_v54, %v1065_v45  ;;  %v1086_v57 = vadd.f32 %v1080_v54, %v1066_v3  ;;  %v1087_v20 = vadd.f32 %v1080_v54, %v1067_v48  ;;  %v1088_v58 = vadd.f32 %v1080_v54, %v1068_v50 }
 0x286   :  { %v1089_v8 = vadd.f32 %v1080_v54, %v1069_v51  ;;  %v1090_v59 = vadd.f32 %v1080_v54, %v1070_v38  ;;  %v1091_v18 = vadd.f32 %v1080_v54, %v1071_v5  ;;  %v1092_v60 = vadd.f32 %v1080_v54, %v1072_v13 }
 0x287   :  { %v1093_v61 = vadd.f32 %v1080_v54, %v1073_v31  ;;  %v1094_v35 = vadd.f32 %v1080_v54, %v1074_v44  ;;  %v1095_v62 = vadd.f32 %v1080_v54, %v1075_v53  ;;  %v1096_v46 = vadd.f32 %v1080_v54, %v1076_v26 }
 0x288   :  { %v1097_v63 = vmax.f32 %v1081_v36, 0.0  ;;  %v1098_v30 = vmax.f32 %v1082_v55, 0.0  ;;  %v1099_v0 = vmax.f32 %v1083_v12, 0.0  ;;  %v1100_v52 = vmax.f32 %v1084_v49, 0.0 }
 0x289   :  { %v1101_v1 = vmax.f32 %v1085_v56, 0.0  ;;  %v1102_v4 = vmax.f32 %v1086_v57, 0.0  ;;  %v1103_v6 = vmax.f32 %v1087_v20, 0.0  ;;  %v1104_v7 = vmax.f32 %v1088_v58, 0.0 }
 0x28a   :  { %v1105_v10 = vmax.f32 %v1089_v8, 0.0  ;;  %v1106_v11 = vmax.f32 %v1090_v59, 0.0  ;;  %v1107_v14 = vmax.f32 %v1091_v18, 0.0  ;;  %v1108_v15 = vmax.f32 %v1092_v60, 0.0  ;;  %1113 = vst [vmem:[%s1950_s4] sm:$0xff] %v1097_v63  ;;  %1114 = vst [vmem:[%s1950_s4 + $0x8] sm:$0xff] %v1098_v30 }
 0x28b   :  { %1115 = vst [vmem:[%s1950_s4 + $0x10] sm:$0xff] %v1099_v0  ;;  %1116 = vst [vmem:[%s1950_s4 + $0x18] sm:$0xff] %v1100_v52  ;;  %v1109_v19 = vmax.f32 %v1093_v61, 0.0  ;;  %v1110_v24 = vmax.f32 %v1094_v35, 0.0  ;;  %v1111_v16 = vmax.f32 %v1095_v62, 0.0  ;;  %v1112_v39 = vmax.f32 %v1096_v46, 0.0 }
 0x28c   :  { %1117 = vst [vmem:[%s1950_s4 + $0x20] sm:$0xff] %v1101_v1  ;;  %1118 = vst [vmem:[%s1950_s4 + $0x28] sm:$0xff] %v1102_v4 }
 0x28d   :  { %1119 = vst [vmem:[%s1950_s4 + $0x30] sm:$0xff] %v1103_v6  ;;  %1120 = vst [vmem:[%s1950_s4 + $0x38] sm:$0xff] %v1104_v7 }
 0x28e   :  { %1121 = vst [vmem:[%s1950_s4 + $0x40] sm:$0xff] %v1105_v10  ;;  %1122 = vst [vmem:[%s1950_s4 + $0x48] sm:$0xff] %v1106_v11 }
 0x28f   :  { %1123 = vst [vmem:[%s1950_s4 + $0x50] sm:$0xff] %v1107_v14  ;;  %1124 = vst [vmem:[%s1950_s4 + $0x58] sm:$0xff] %v1108_v15 }
 0x290   :  { %1125 = vst [vmem:[%s1950_s4 + $0x60] sm:$0xff] %v1109_v19  ;;  %1126 = vst [vmem:[%s1950_s4 + $0x68] sm:$0xff] %v1110_v24 }
 0x291   :  { %1127 = vst [vmem:[%s1950_s4 + $0x70] sm:$0xff] %v1111_v16  ;;  %1128 = vst [vmem:[%s1950_s4 + $0x78] sm:$0xff] %v1112_v39 }

// kernel: generator_forward.6
= control target key start
LH: loop header
LB: loop body
LE: loop exit
PB: predicated region body
PF: predicated region fallthrough
CT: control target
= control target key end

     0   :  { %9 = vsyncpa [#allocation5], 0  ;;  %s2231_s0 = inlined_call_operand.vmem [shape: bf16[32,1152], index: 0, kind: input, shape index: {}]   ;;  %s2232_s1 = inlined_call_operand.hbm [shape: bf16[1152,256], index: 1, kind: input, shape index: {}]   ;;  %s2233_s2 = inlined_call_operand.hbm [shape: f32[1,64], index: 2, kind: input, shape index: {}]   ;;  %s2234_s3 = inlined_call_operand.hbm [shape: f32[1,64], index: 3, kind: input, shape index: {}]   ;;  %s2235_s4 = inlined_call_operand.vmem [shape: f32[32,256], index: 4, kind: output, shape index: {}]  }
   0x1   :  { %10 = vsyncpa [#allocation7], 0  ;;  %s2019_s15 = smov [#allocation6]   ;;  %s2020_s17 = smov [#allocation4]  }
   0x2   :  { %s31_s16 = sshll.u32 %s2019_s15, 4  ;;  %s18_s18 = sshll.u32 %s2020_s17, 4  ;;  %s32_s16 = int_to_ptr.vmem [resolvable:$true] %s31_s16  ;;  %s2052_s18 = int_to_ptr.vmem [resolvable:$true] %s18_s18 }
   0x3   :  { %s1949_s21 = scalar_lea.hbm %s2233_s2, 16 }
   0x4   :  { %p1950_p0 = scmp.ne.s32.totalorder %s2233_s2, %s1949_s21  ;;  %p1953_p1 = scmp.lt.u32.totalorder %s1949_s21, %s2233_s2 }
   0x6   :  { %p1955_p2 = pnand %p1953_p1, %p1950_p0 }
   0x8   :  { %1958 = shalt.err (!%p1955_p2)
}
   0x9   :  { %s1959_s26 = scalar_lea.vmem %s32_s16, 16  ;;  %s1963_s27 = scalar_lea.vmem %s32_s16, 32 }
   0xa   :  { %p1960_p3 = scmp.ne.s32.totalorder %s32_s16, %s1959_s26  ;;  %p1964_p4 = scmp.lt.s32.totalorder %s32_s16, %s32_s16 }
   0xb   :  { %p1965_p5 = scmp.lt.s32.totalorder %s1963_s27, %s1959_s26 }
   0xd   :  { %p1966_p6 = por %p1965_p5, %p1964_p4 }
   0xf   :  { %p1967_p7 = pnand %p1966_p6, %p1960_p3 }
  0x11   :  { %1970 = shalt.err (!%p1967_p7)
}
  0x12   :  { %34 = dma.hbm_to_vmem [thread:$0]  %s2233_s2, 16, %s32_s16, [#allocation7]  }
  0x13   :  { %s1971_s6 = scalar_lea.hbm %s2232_s1, 18432 }
  0x14   :  { %p1972_p8 = scmp.ne.s32.totalorder %s2232_s1, %s1971_s6  ;;  %p1975_p9 = scmp.lt.u32.totalorder %s1971_s6, %s2232_s1 }
  0x16   :  { %p1977_p10 = pnand %p1975_p9, %p1972_p8 }
  0x18   :  { %1980 = shalt.err (!%p1977_p10)
}
  0x19   :  { %s1981_s11 = scalar_lea.vmem %s2052_s18, 18432  ;;  %p1986_p12 = scmp.lt.s32.totalorder %s2052_s18, %s2052_s18 }
  0x1a   :  { %p1982_p11 = scmp.ne.s32.totalorder %s2052_s18, %s1981_s11  ;;  %p1987_p13 = scmp.lt.s32.totalorder %s1981_s11, %s1981_s11 }
  0x1c   :  { %p1988_p0 = por %p1987_p13, %p1986_p12 }
  0x1e   :  { %p1989_p1 = pnand %p1988_p0, %p1982_p11 }
  0x20   :  { %1992 = shalt.err (!%p1989_p1)
}
  0x21   :  { %s2021_s2 = smov 128   ;;  %s2022_s12 = smov 8  }
  0x22   :  { %24 = dma.hbm_to_vmem [thread:$0]  %s2232_s1, 18432, %s2052_s18, [#allocation5], %s2021_s2, %s2021_s2, %s2022_s12  }
  0x23   :  { %s2023_s15 = smov [#allocation8]   ;;  %s1993_s20 = scalar_lea.hbm %s2234_s3, 16 }
  0x24   :  { %s41_s16 = sshll.u32 %s2023_s15, 4  ;;  %p1994_p2 = scmp.ne.s32.totalorder %s2234_s3, %s1993_s20  ;;  %s42_s16 = int_to_ptr.vmem [resolvable:$true] %s41_s16 }
  0x25   :  { %p1997_p3 = scmp.lt.u32.totalorder %s1993_s20, %s2234_s3 }
  0x27   :  { %p1999_p4 = pnand %p1997_p3, %p1994_p2 }
  0x29   :  { %2002 = shalt.err (!%p1999_p4)
}
  0x2a   :  { %s2003_s25 = scalar_lea.vmem %s42_s16, 16  ;;  %s2007_s1 = scalar_lea.vmem %s42_s16, 32 }
  0x2b   :  { %p2004_p5 = scmp.ne.s32.totalorder %s42_s16, %s2003_s25  ;;  %p2008_p6 = scmp.lt.s32.totalorder %s42_s16, %s42_s16 }
  0x2c   :  { %p2009_p7 = scmp.lt.s32.totalorder %s2007_s1, %s2003_s25 }
  0x2e   :  { %p2010_p8 = por %p2009_p7, %p2008_p6 }
  0x30   :  { %p2011_p9 = pnand %p2010_p8, %p2004_p5 }
  0x32   :  { %2014 = shalt.err (!%p2011_p9)
}
  0x33   :  { %44 = dma.hbm_to_vmem [thread:$0]  %s2234_s3, 16, %s42_s16, [#allocation7]  }
  0x34   :  { %2015 = dma.done.wait [#allocation5], 18432  }
  0x35   :  { %2016 = vsyncadd [#allocation5], 4294948864 }
  0x36   :  { %2017 = dma.done.wait [#allocation7], 32  }
  0x37   :  { %2018 = vsyncadd [#allocation7], 4294967264  ;;  %v1705_v0 = vld [vmem:[#allocation4 + $0x4] ss:$8 sps:$4 sm:$0xff]   ;;  %v1709_v2 = vld [vmem:[#allocation4] ss:$8 sps:$4 sm:$0xff]  }
  0x38   :  { %v1707_v1 = vld [vmem:[#allocation4 + $0x204] ss:$8 sps:$4 sm:$0xff]   ;;  %1038 = vmatprep.subr.bf16.mxu1 %v1705_v0  ;;  %v1710_v3 = vld [vmem:[#allocation4 + $0x200] ss:$8 sps:$4 sm:$0xff]   ;;  %v1711_v4 = vld [vmem:[#allocation4 + $0x14] ss:$8 sps:$4 sm:$0xff]  }
  0x39   :  { %1144 = vmatprep.subr.bf16.mxu0 %v1707_v1  ;;  %1039 = vmatpush1.bf16.msra.mxu1 %v1709_v2  ;;  %v1713_v5 = vld [vmem:[#allocation4 + $0x214] ss:$8 sps:$4 sm:$0xff]   ;;  %v1715_v6 = vld [vmem:[#allocation4 + $0x10] ss:$8 sps:$4 sm:$0xff]   ;;  %v1717_v8 = vld [vmem:[#allocation4 + $0x24] ss:$8 sps:$4 sm:$0xff]  }
  0x3a   :  { %1145 = vmatpush1.bf16.msra.mxu0 %v1710_v3  ;;  %1040 = vmatprep.subr.bf16.mxu1 %v1711_v4  ;;  %v1716_v7 = vld [vmem:[#allocation4 + $0x210] ss:$8 sps:$4 sm:$0xff]   ;;  %v1719_v9 = vld [vmem:[#allocation4 + $0x224] ss:$8 sps:$4 sm:$0xff]   ;;  %v1721_v10 = vld [vmem:[#allocation4 + $0x20] ss:$8 sps:$4 sm:$0xff]  }
  0x3b   :  { %1146 = vmatprep.subr.bf16.mxu0 %v1713_v5  ;;  %v1722_v11 = vld [vmem:[#allocation4 + $0x220] ss:$8 sps:$4 sm:$0xff]   ;;  %v1723_v12 = vld [vmem:[#allocation4 + $0x34] ss:$8 sps:$4 sm:$0xff]   ;;  %v1727_v14 = vld [vmem:[#allocation4 + $0x30] ss:$8 sps:$4 sm:$0xff]  }
  0x3c   :  { %v1725_v13 = vld [vmem:[#allocation4 + $0x234] ss:$8 sps:$4 sm:$0xff]   ;;  %v1728_v15 = vld [vmem:[#allocation4 + $0x230] ss:$8 sps:$4 sm:$0xff]   ;;  %v1729_v16 = vld [vmem:[#allocation4 + $0x44] ss:$8 sps:$4 sm:$0xff]  }
  0x3d   :  { %1041 = vmatpush1.bf16.msra.mxu1 %v1715_v6  ;;  %v1731_v17 = vld [vmem:[#allocation4 + $0x244] ss:$8 sps:$4 sm:$0xff]   ;;  %v1733_v18 = vld [vmem:[#allocation4 + $0x40] ss:$8 sps:$4 sm:$0xff]   ;;  %v1735_v20 = vld [vmem:[#allocation4 + $0x54] ss:$8 sps:$4 sm:$0xff]  }
  0x3e   :  { %1147 = vmatpush1.bf16.msra.mxu0 %v1716_v7  ;;  %1042 = vmatprep.subr.bf16.mxu1 %v1717_v8  ;;  %v1734_v19 = vld [vmem:[#allocation4 + $0x240] ss:$8 sps:$4 sm:$0xff]   ;;  %v1737_v21 = vld [vmem:[#allocation4 + $0x254] ss:$8 sps:$4 sm:$0xff]   ;;  %v1739_v22 = vld [vmem:[#allocation4 + $0x50] ss:$8 sps:$4 sm:$0xff]  }
  0x3f   :  { %1148 = vmatprep.subr.bf16.mxu0 %v1719_v9  ;;  %v1740_v23 = vld [vmem:[#allocation4 + $0x250] ss:$8 sps:$4 sm:$0xff]   ;;  %v1741_v24 = vld [vmem:[#allocation4 + $0x64] ss:$8 sps:$4 sm:$0xff]   ;;  %v1745_v26 = vld [vmem:[#allocation4 + $0x60] ss:$8 sps:$4 sm:$0xff]  }
  0x40   :  { %v1743_v25 = vld [vmem:[#allocation4 + $0x264] ss:$8 sps:$4 sm:$0xff]   ;;  %v1746_v27 = vld [vmem:[#allocation4 + $0x260] ss:$8 sps:$4 sm:$0xff]   ;;  %v1747_v28 = vld [vmem:[#allocation4 + $0x74] ss:$8 sps:$4 sm:$0xff]  }
  0x41   :  { %1043 = vmatpush1.bf16.msra.mxu1 %v1721_v10  ;;  %v1749_v29 = vld [vmem:[#allocation4 + $0x274] ss:$8 sps:$4 sm:$0xff]   ;;  %v1751_v30 = vld [vmem:[#allocation4 + $0x70] ss:$8 sps:$4 sm:$0xff]   ;;  %v1753_v32 = vld [vmem:[#allocation4 + $0x84] ss:$8 sps:$4 sm:$0xff]  }
  0x42   :  { %1149 = vmatpush1.bf16.msra.mxu0 %v1722_v11  ;;  %1044 = vmatprep.subr.bf16.mxu1 %v1723_v12  ;;  %v1752_v31 = vld [vmem:[#allocation4 + $0x270] ss:$8 sps:$4 sm:$0xff]   ;;  %v1755_v33 = vld [vmem:[#allocation4 + $0x284] ss:$8 sps:$4 sm:$0xff]   ;;  %v1757_v34 = vld [vmem:[#allocation4 + $0x80] ss:$8 sps:$4 sm:$0xff]  }
  0x43   :  { %1150 = vmatprep.subr.bf16.mxu0 %v1725_v13  ;;  %v1758_v35 = vld [vmem:[#allocation4 + $0x280] ss:$8 sps:$4 sm:$0xff]   ;;  %v1759_v36 = vld [vmem:[#allocation4 + $0x94] ss:$8 sps:$4 sm:$0xff]   ;;  %v1763_v38 = vld [vmem:[#allocation4 + $0x90] ss:$8 sps:$4 sm:$0xff]  }
  0x44   :  { %v1761_v37 = vld [vmem:[#allocation4 + $0x294] ss:$8 sps:$4 sm:$0xff]   ;;  %v1764_v39 = vld [vmem:[#allocation4 + $0x290] ss:$8 sps:$4 sm:$0xff]   ;;  %v1765_v40 = vld [vmem:[#allocation4 + $0xa4] ss:$8 sps:$4 sm:$0xff]  }
  0x45   :  { %1045 = vmatpush1.bf16.msra.mxu1 %v1727_v14  ;;  %v1767_v41 = vld [vmem:[#allocation4 + $0x2a4] ss:$8 sps:$4 sm:$0xff]   ;;  %v1769_v42 = vld [vmem:[#allocation4 + $0xa0] ss:$8 sps:$4 sm:$0xff]   ;;  %v1771_v44 = vld [vmem:[#allocation4 + $0xb4] ss:$8 sps:$4 sm:$0xff]  }
  0x46   :  { %1151 = vmatpush1.bf16.msra.mxu0 %v1728_v15  ;;  %1046 = vmatprep.subr.bf16.mxu1 %v1729_v16  ;;  %v1770_v43 = vld [vmem:[#allocation4 + $0x2a0] ss:$8 sps:$4 sm:$0xff]   ;;  %v1773_v45 = vld [vmem:[#allocation4 + $0x2b4] ss:$8 sps:$4 sm:$0xff]   ;;  %v1775_v46 = vld [vmem:[#allocation4 + $0xb0] ss:$8 sps:$4 sm:$0xff]  }
  0x47   :  { %1152 = vmatprep.subr.bf16.mxu0 %v1731_v17  ;;  %v1776_v47 = vld [vmem:[#allocation4 + $0x2b0] ss:$8 sps:$4 sm:$0xff]   ;;  %v1777_v49 = vld [vmem:[#allocation4 + $0xc4] ss:$8 sps:$4 sm:$0xff]   ;;  %v1781_v52 = vld [vmem:[#allocation4 + $0xc0] ss:$8 sps:$4 sm:$0xff]  }
  0x48   :  { %v1803_v48 = vld [vmem:[%s2231_s0 + $0x4] ss:$36 sps:$4 sm:$0xff]   ;;  %v1779_v50 = vld [vmem:[#allocation4 + $0x2c4] ss:$8 sps:$4 sm:$0xff]   ;;  %vm59_vm0 = vcmask 516096   ;;  %vm1417_vm1 = vcmask 523264  }
  0x49   :  { %1047 = vmatpush1.bf16.msra.mxu1 %v1733_v18  ;;  %1070 = vmatprep.mubr.bf16.mxu1 %v1803_v48  ;;  %v1809_v51 = vld [vmem:[%s2231_s0 + $0x14] ss:$36 sps:$4 sm:$0xff]   ;;  %v1783_v54 = vld [vmem:[#allocation4 + $0xd4] ss:$8 sps:$4 sm:$0xff]  }
  0x4a   :  { %1153 = vmatpush1.bf16.msra.mxu0 %v1734_v19  ;;  %1048 = vmatprep.subr.bf16.mxu1 %v1735_v20  ;;  %v1782_v53 = vld [vmem:[#allocation4 + $0x2c0] ss:$8 sps:$4 sm:$0xff]   ;;  %v1785_v55 = vld [vmem:[#allocation4 + $0x2d4] ss:$8 sps:$4 sm:$0xff]   ;;  %v1787_v56 = vld [vmem:[#allocation4 + $0xd0] ss:$8 sps:$4 sm:$0xff]  }
  0x4b   :  { %1154 = vmatprep.subr.bf16.mxu0 %v1737_v21  ;;  %1176 = vmatprep.mubr.bf16.mxu0 %v1809_v51  ;;  %v1788_v57 = vld [vmem:[#allocation4 + $0x2d0] ss:$8 sps:$4 sm:$0xff]   ;;  %v1789_v58 = vld [vmem:[#allocation4 + $0xe4] ss:$8 sps:$4 sm:$0xff]   ;;  %v1793_v60 = vld [vmem:[#allocation4 + $0xe0] ss:$8 sps:$4 sm:$0xff]  }
  0x4c   :  { %v1791_v59 = vld [vmem:[#allocation4 + $0x2e4] ss:$8 sps:$4 sm:$0xff]   ;;  %v1794_v61 = vld [vmem:[#allocation4 + $0x2e0] ss:$8 sps:$4 sm:$0xff]   ;;  %v1795_v62 = vld [vmem:[#allocation4 + $0xf4] ss:$8 sps:$4 sm:$0xff]  }
  0x4d   :  { %1049 = vmatpush1.bf16.msra.mxu1 %v1739_v22  ;;  %v1797_v63 = vld [vmem:[#allocation4 + $0x2f4] ss:$8 sps:$4 sm:$0xff]   ;;  %v1799_v0 = vld [vmem:[#allocation4 + $0xf0] ss:$8 sps:$4 sm:$0xff]   ;;  %v1806_v2 = vld [vmem:[#allocation4 + $0x104] ss:$8 sps:$4 sm:$0xff]  }
  0x4e   :  { %1155 = vmatpush1.bf16.msra.mxu0 %v1740_v23  ;;  %1050 = vmatprep.subr.bf16.mxu1 %v1741_v24  ;;  %v1800_v1 = vld [vmem:[#allocation4 + $0x2f0] ss:$8 sps:$4 sm:$0xff]   ;;  %v1812_v3 = vld [vmem:[#allocation4 + $0x304] ss:$8 sps:$4 sm:$0xff]   ;;  %v1804_v5 = vld [vmem:[#allocation4 + $0x100] ss:$8 sps:$4 sm:$0xff]  }
  0x4f   :  { %1156 = vmatprep.subr.bf16.mxu0 %v1743_v25  ;;  %v1801_v4 = vld [vmem:[%s2231_s0] ss:$36 sps:$4 sm:$0xff]   ;;  %v1807_v6 = vld [vmem:[%s2231_s0 + $0x10] ss:$36 sps:$4 sm:$0xff]  }
  0x50   :  { %v1810_v7 = vld [vmem:[#allocation4 + $0x300] ss:$8 sps:$4 sm:$0xff]   ;;  %v1815_v8 = vld [vmem:[#allocation4 + $0x114] ss:$8 sps:$4 sm:$0xff]   ;;  %v1813_v10 = vld [vmem:[#allocation4 + $0x110] ss:$8 sps:$4 sm:$0xff]  }
  0x51   :  { %1051 = vmatpush1.bf16.msra.mxu1 %v1745_v26  ;;  %v1818_v9 = vld [vmem:[#allocation4 + $0x314] ss:$8 sps:$4 sm:$0xff]   ;;  %v1816_v11 = vld [vmem:[#allocation4 + $0x310] ss:$8 sps:$4 sm:$0xff]   ;;  %v1821_v12 = vld [vmem:[#allocation4 + $0x124] ss:$8 sps:$4 sm:$0xff]  }
  0x52   :  { %1157 = vmatpush1.bf16.msra.mxu0 %v1746_v27  ;;  %1052 = vmatprep.subr.bf16.mxu1 %v1747_v28  ;;  %v1824_v13 = vld [vmem:[#allocation4 + $0x324] ss:$8 sps:$4 sm:$0xff]   ;;  %v1819_v14 = vld [vmem:[#allocation4 + $0x120] ss:$8 sps:$4 sm:$0xff]   ;;  %v1827_v16 = vld [vmem:[#allocation4 + $0x134] ss:$8 sps:$4 sm:$0xff]  }
  0x53   :  { %1158 = vmatprep.subr.bf16.mxu0 %v1749_v29  ;;  %v1822_v15 = vld [vmem:[#allocation4 + $0x320] ss:$8 sps:$4 sm:$0xff]   ;;  %v1830_v17 = vld [vmem:[#allocation4 + $0x334] ss:$8 sps:$4 sm:$0xff]   ;;  %v1825_v18 = vld [vmem:[#allocation4 + $0x130] ss:$8 sps:$4 sm:$0xff]  }
  0x54   :  { %v1828_v19 = vld [vmem:[#allocation4 + $0x330] ss:$8 sps:$4 sm:$0xff]   ;;  %v1833_v20 = vld [vmem:[#allocation4 + $0x144] ss:$8 sps:$4 sm:$0xff]   ;;  %v1831_v22 = vld [vmem:[#allocation4 + $0x140] ss:$8 sps:$4 sm:$0xff]  }
  0x55   :  { %1053 = vmatpush1.bf16.msra.mxu1 %v1751_v30  ;;  %v1836_v21 = vld [vmem:[#allocation4 + $0x344] ss:$8 sps:$4 sm:$0xff]   ;;  %v1834_v23 = vld [vmem:[#allocation4 + $0x340] ss:$8 sps:$4 sm:$0xff]   ;;  %v1839_v24 = vld [vmem:[#allocation4 + $0x154] ss:$8 sps:$4 sm:$0xff]  }
  0x56   :  { %1159 = vmatpush1.bf16.msra.mxu0 %v1752_v31  ;;  %1054 = vmatprep.subr.bf16.mxu1 %v1753_v32  ;;  %v1842_v25 = vld [vmem:[#allocation4 + $0x354] ss:$8 sps:$4 sm:$0xff]   ;;  %v1837_v26 = vld [vmem:[#allocation4 + $0x150] ss:$8 sps:$4 sm:$0xff]   ;;  %v1845_v28 = vld [vmem:[#allocation4 + $0x164] ss:$8 sps:$4 sm:$0xff]  }
  0x57   :  { %1160 = vmatprep.subr.bf16.mxu0 %v1755_v33  ;;  %v1840_v27 = vld [vmem:[#allocation4 + $0x350] ss:$8 sps:$4 sm:$0xff]   ;;  %v1891_v29 = vld [vmem:[%s2231_s0 + $0x4c] ss:$36 sps:$4 sm:$0xff]  }
  0x58   :  { %v1893_v30 = vld [vmem:[%s2231_s0 + $0x5c] ss:$36 sps:$4 sm:$0xff]   ;;  %v1895_v31 = vld [vmem:[%s2231_s0 + $0x48] ss:$36 sps:$4 sm:$0xff]  }
  0x59   :  { %1055 = vmatpush1.bf16.msra.mxu1 %v1757_v34  ;;  %v1848_v32 = vld [vmem:[#allocation4 + $0x364] ss:$8 sps:$4 sm:$0xff]   ;;  %v1843_v34 = vld [vmem:[#allocation4 + $0x160] ss:$8 sps:$4 sm:$0xff]   ;;  %v1861_v48 = vld [vmem:[#allocation4 + $0x190] ss:$8 sps:$4 sm:$0xff]  }
  0x5a   :  { %1161 = vmatpush1.bf16.msra.mxu0 %v1758_v35  ;;  %1056 = vmatprep.subr.bf16.mxu1 %v1759_v36  ;;  %v1899_v33 = vld [vmem:[%s2231_s0 + $0x58] ss:$36 sps:$4 sm:$0xff]   ;;  %v1846_v35 = vld [vmem:[#allocation4 + $0x360] ss:$8 sps:$4 sm:$0xff]  }
  0x5b   :  { %1162 = vmatprep.subr.bf16.mxu0 %v1761_v37  ;;  %v1851_v36 = vld [vmem:[#allocation4 + $0x174] ss:$8 sps:$4 sm:$0xff]   ;;  %v1872_v51 = vld [vmem:[#allocation4 + $0x3a4] ss:$8 sps:$4 sm:$0xff]  }
  0x5c   :  { %v1854_v37 = vld [vmem:[#allocation4 + $0x374] ss:$8 sps:$4 sm:$0xff]  }
  0x5d   :  { %1057 = vmatpush1.bf16.msra.mxu1 %v1763_v38  ;;  %v1849_v38 = vld [vmem:[#allocation4 + $0x170] ss:$8 sps:$4 sm:$0xff]  }
  0x5e   :  { %1163 = vmatpush1.bf16.msra.mxu0 %v1764_v39  ;;  %1058 = vmatprep.subr.bf16.mxu1 %v1765_v40  ;;  %v1852_v39 = vld [vmem:[#allocation4 + $0x370] ss:$8 sps:$4 sm:$0xff]   ;;  %v1857_v40 = vld [vmem:[#allocation4 + $0x184] ss:$8 sps:$4 sm:$0xff]  }
  0x5f   :  { %1164 = vmatprep.subr.bf16.mxu0 %v1767_v41  ;;  %v1911_v41 = vld [vmem:[%s2231_s0 + $0xc] ss:$36 sps:$4 sm:$0xff]  }
  0x61   :  { %1059 = vmatpush1.bf16.msra.mxu1 %v1769_v42  ;;  %v1860_v42 = vld [vmem:[#allocation4 + $0x384] ss:$8 sps:$4 sm:$0xff]  }
  0x62   :  { %1165 = vmatpush1.bf16.msra.mxu0 %v1770_v43  ;;  %1060 = vmatprep.subr.bf16.mxu1 %v1771_v44  ;;  %v1914_v43 = vld [vmem:[%s2231_s0 + $0x1c] ss:$36 sps:$4 sm:$0xff]   ;;  %v1855_v44 = vld [vmem:[#allocation4 + $0x180] ss:$8 sps:$4 sm:$0xff]  }
  0x63   :  { %1166 = vmatprep.subr.bf16.mxu0 %v1773_v45  ;;  %v1858_v45 = vld [vmem:[#allocation4 + $0x380] ss:$8 sps:$4 sm:$0xff]  }
  0x65   :  { %1061 = vmatpush1.bf16.msra.mxu1 %v1775_v46  ;;  %v1863_v46 = vld [vmem:[#allocation4 + $0x194] ss:$8 sps:$4 sm:$0xff]  }
  0x66   :  { %1167 = vmatpush1.bf16.msra.mxu0 %v1776_v47  ;;  %1062 = vmatprep.subr.bf16.mxu1 %v1777_v49  ;;  %v1866_v47 = vld [vmem:[#allocation4 + $0x394] ss:$8 sps:$4 sm:$0xff]   ;;  %v1864_v49 = vld [vmem:[#allocation4 + $0x390] ss:$8 sps:$4 sm:$0xff]  }
  0x67   :  { %1168 = vmatprep.subr.bf16.mxu0 %v1779_v50  ;;  %v1869_v50 = vld [vmem:[#allocation4 + $0x1a4] ss:$8 sps:$4 sm:$0xff]  }
  0x69   :  { %1063 = vmatpush1.bf16.msra.mxu1 %v1781_v52  ;;  %v1867_v52 = vld [vmem:[#allocation4 + $0x1a0] ss:$8 sps:$4 sm:$0xff]  }
  0x6a   :  { %1169 = vmatpush1.bf16.msra.mxu0 %v1782_v53  ;;  %1064 = vmatprep.subr.bf16.mxu1 %v1783_v54  ;;  %v1870_v53 = vld [vmem:[#allocation4 + $0x3a0] ss:$8 sps:$4 sm:$0xff]   ;;  %v1875_v54 = vld [vmem:[#allocation4 + $0x1b4] ss:$8 sps:$4 sm:$0xff]  }
  0x6b   :  { %1170 = vmatprep.subr.bf16.mxu0 %v1785_v55  ;;  %v1878_v55 = vld [vmem:[#allocation4 + $0x3b4] ss:$8 sps:$4 sm:$0xff]  }
  0x6d   :  { %1065 = vmatpush1.bf16.msra.mxu1 %v1787_v56  ;;  %v1873_v56 = vld [vmem:[#allocation4 + $0x1b0] ss:$8 sps:$4 sm:$0xff]  }
  0x6e   :  { %1171 = vmatpush1.bf16.msra.mxu0 %v1788_v57  ;;  %1066 = vmatprep.subr.bf16.mxu1 %v1789_v58  ;;  %v1876_v57 = vld [vmem:[#allocation4 + $0x3b0] ss:$8 sps:$4 sm:$0xff]   ;;  %v1881_v58 = vld [vmem:[#allocation4 + $0x1c4] ss:$8 sps:$4 sm:$0xff]  }
  0x6f   :  { %1172 = vmatprep.subr.bf16.mxu0 %v1791_v59  ;;  %v1884_v59 = vld [vmem:[#allocation4 + $0x3c4] ss:$8 sps:$4 sm:$0xff]  }
  0x71   :  { %1067 = vmatpush1.bf16.msra.mxu1 %v1793_v60  ;;  %v1879_v60 = vld [vmem:[#allocation4 + $0x1c0] ss:$8 sps:$4 sm:$0xff]  }
  0x72   :  { %1173 = vmatpush1.bf16.msra.mxu0 %v1794_v61  ;;  %1068 = vmatprep.subr.bf16.mxu1 %v1795_v62  ;;  %v1882_v61 = vld [vmem:[#allocation4 + $0x3c0] ss:$8 sps:$4 sm:$0xff]   ;;  %v1887_v62 = vld [vmem:[#allocation4 + $0x1d4] ss:$8 sps:$4 sm:$0xff]  }
  0x73   :  { %1174 = vmatprep.subr.bf16.mxu0 %v1797_v63  ;;  %v1890_v63 = vld [vmem:[#allocation4 + $0x3d4] ss:$8 sps:$4 sm:$0xff]  }
  0x75   :  { %1069 = vmatpush1.bf16.msra.mxu1 %v1799_v0  ;;  %v1885_v0 = vld [vmem:[#allocation4 + $0x1d0] ss:$8 sps:$4 sm:$0xff]  }
  0x76   :  { %1175 = vmatpush1.bf16.msra.mxu0 %v1800_v1  ;;  %1091 = vmatprep.subr.bf16.mxu1 %v1806_v2  ;;  %v1888_v1 = vld [vmem:[#allocation4 + $0x3d0] ss:$8 sps:$4 sm:$0xff]   ;;  %v1898_v2 = vld [vmem:[#allocation4 + $0x1e4] ss:$8 sps:$4 sm:$0xff]  }
  0x77   :  { %1197 = vmatprep.subr.bf16.mxu0 %v1812_v3  ;;  %v1902_v3 = vld [vmem:[#allocation4 + $0x3e4] ss:$8 sps:$4 sm:$0xff]  }
  0x78   :  { %1071 = vmatmul.mubr.bf16.vlgmr.msra.gmra.mrb[0].mxu1 %v1801_v4  ;;  %v1896_v4 = vld [vmem:[#allocation4 + $0x1e0] ss:$8 sps:$4 sm:$0xff]  }
  0x79   :  { %1177 = vmatmul.mubr.bf16.vlgmr.msra.gmra.mrb[0].mxu0 %v1807_v6  ;;  %1092 = vmatpush1.bf16.msra.mxu1 %v1804_v5  ;;  %v1900_v5 = vld [vmem:[#allocation4 + $0x3e0] ss:$8 sps:$4 sm:$0xff]   ;;  %v1905_v6 = vld [vmem:[#allocation4 + $0x1f4] ss:$8 sps:$4 sm:$0xff]  }
  0x7a   :  { %1198 = vmatpush1.bf16.msra.mxu0 %v1810_v7  ;;  %1093 = vmatprep.subr.bf16.mxu1 %v1815_v8  ;;  %v1908_v7 = vld [vmem:[#allocation4 + $0x3f4] ss:$8 sps:$4 sm:$0xff]   ;;  %v1903_v8 = vld [vmem:[#allocation4 + $0x1f0] ss:$8 sps:$4 sm:$0xff]  }
  0x7b   :  { %1199 = vmatprep.subr.bf16.mxu0 %v1818_v9  ;;  %1080 = vmatprep.mubr.bf16.mxu1 %v1891_v29  ;;  %v1906_v9 = vld [vmem:[#allocation4 + $0x3f0] ss:$8 sps:$4 sm:$0xff]   ;;  %v1941_v29 = vld [vmem:[#allocation4 + $0x464] ss:$8 sps:$4 sm:$0xff]  }
  0x7c   :  { %1186 = vmatprep.mubr.bf16.mxu0 %v1893_v30  ;;  %v1939_v30 = vld [vmem:[#allocation4 + $0x460] ss:$8 sps:$4 sm:$0xff]  }
  0x7d   :  { %1094 = vmatpush1.bf16.msra.mxu1 %v1813_v10  ;;  %v1917_v10 = vld [vmem:[#allocation4 + $0x404] ss:$8 sps:$4 sm:$0xff]  }
  0x7e   :  { %1200 = vmatpush1.bf16.msra.mxu0 %v1816_v11  ;;  %1095 = vmatprep.subr.bf16.mxu1 %v1821_v12  ;;  %v1909_v11 = vld [vmem:[%s2231_s0 + $0x8] ss:$36 sps:$4 sm:$0xff]   ;;  %v1912_v12 = vld [vmem:[%s2231_s0 + $0x18] ss:$36 sps:$4 sm:$0xff]  }
  0x7f   :  { %1201 = vmatprep.subr.bf16.mxu0 %v1824_v13  ;;  %v1915_v13 = vld [vmem:[#allocation4 + $0x400] ss:$8 sps:$4 sm:$0xff]  }
  0x80   :  { %1081 = vmatmul.mubr.bf16.gmra.mrb[4].mxu1 %v1895_v31  ;;  %v1944_v31 = vld [vmem:[#allocation4 + $0x474] ss:$8 sps:$4 sm:$0xff]  }
  0x81   :  { %1096 = vmatpush1.bf16.msra.mxu1 %v1819_v14  ;;  %1187 = vmatmul.mubr.bf16.gmra.mrb[4].mxu0 %v1899_v33  ;;  %v1920_v14 = vld [vmem:[#allocation4 + $0x414] ss:$8 sps:$4 sm:$0xff]  }
  0x82   :  { %1202 = vmatpush1.bf16.msra.mxu0 %v1822_v15  ;;  %1097 = vmatprep.subr.bf16.mxu1 %v1827_v16  ;;  %v1921_v15 = vld [vmem:[%s2231_s0 + $0x54] ss:$36 sps:$4 sm:$0xff]   ;;  %v1923_v16 = vld [vmem:[%s2231_s0 + $0x64] ss:$36 sps:$4 sm:$0xff]  }
  0x83   :  { %1203 = vmatprep.subr.bf16.mxu0 %v1830_v17  ;;  %1123 = vmatprep.mubr.bf16.mxu1 %v1911_v41  ;;  %v1918_v17 = vld [vmem:[#allocation4 + $0x410] ss:$8 sps:$4 sm:$0xff]  }
  0x84   :  { %1229 = vmatprep.mubr.bf16.mxu0 %v1914_v43  ;;  %v1945_v33 = vld [vmem:[%s2231_s0 + $0x20] ss:$36 sps:$4 sm:$0xff]  }
  0x85   :  { %1098 = vmatpush1.bf16.msra.mxu1 %v1825_v18  ;;  %v1929_v18 = vld [vmem:[#allocation4 + $0x424] ss:$8 sps:$4 sm:$0xff]  }
  0x86   :  { %1204 = vmatpush1.bf16.msra.mxu0 %v1828_v19  ;;  %1099 = vmatprep.subr.bf16.mxu1 %v1833_v20  ;;  %v1925_v19 = vld [vmem:[%s2231_s0 + $0x50] ss:$36 sps:$4 sm:$0xff]   ;;  %v1926_v20 = vld [vmem:[%s2231_s0 + $0x60] ss:$36 sps:$4 sm:$0xff]  }
  0x87   :  { %1205 = vmatprep.subr.bf16.mxu0 %v1836_v21  ;;  %v1927_v21 = vld [vmem:[#allocation4 + $0x420] ss:$8 sps:$4 sm:$0xff]  }
  0x89   :  { %1100 = vmatpush1.bf16.msra.mxu1 %v1831_v22  ;;  %v1932_v22 = vld [vmem:[#allocation4 + $0x434] ss:$8 sps:$4 sm:$0xff]  }
  0x8a   :  { %1206 = vmatpush1.bf16.msra.mxu0 %v1834_v23  ;;  %1101 = vmatprep.subr.bf16.mxu1 %v1839_v24  ;;  %v1930_v23 = vld [vmem:[#allocation4 + $0x430] ss:$8 sps:$4 sm:$0xff]   ;;  %v1935_v24 = vld [vmem:[#allocation4 + $0x444] ss:$8 sps:$4 sm:$0xff]  }
  0x8b   :  { %1207 = vmatprep.subr.bf16.mxu0 %v1842_v25  ;;  %v2024_v25 = vmov 0  }
  0x8d   :  { %1102 = vmatpush1.bf16.msra.mxu1 %v1837_v26  ;;  %v1933_v26 = vld [vmem:[#allocation4 + $0x440] ss:$8 sps:$4 sm:$0xff]  }
  0x8e   :  { %1208 = vmatpush1.bf16.msra.mxu0 %v1840_v27  ;;  %1103 = vmatprep.subr.bf16.mxu1 %v1845_v28  ;;  %v1938_v27 = vld [vmem:[#allocation4 + $0x454] ss:$8 sps:$4 sm:$0xff]   ;;  %v1936_v28 = vld [vmem:[#allocation4 + $0x450] ss:$8 sps:$4 sm:$0xff]  }
  0x8f   :  { %1209 = vmatprep.subr.bf16.mxu0 %v1848_v32  ;;  %v1942_v32 = vld [vmem:[#allocation4 + $0x470] ss:$8 sps:$4 sm:$0xff]  }
  0x91   :  { %1104 = vmatpush1.bf16.msra.mxu1 %v1843_v34  ;;  %v1946_v34 = vld [vmem:[%s2231_s0 + $0x68] ss:$36 sps:$4 sm:$0xff]   ;;  %s2026_s0 = smov 64  }
  0x92   :  { %1210 = vmatpush1.bf16.msra.mxu0 %v1846_v35  ;;  %1105 = vmatprep.subr.bf16.mxu1 %v1851_v36 }
  0x93   :  { %1211 = vmatprep.subr.bf16.mxu0 %v1854_v37 }
  0x95   :  { %1106 = vmatpush1.bf16.msra.mxu1 %v1849_v38 }
  0x96   :  { %1212 = vmatpush1.bf16.msra.mxu0 %v1852_v39  ;;  %1107 = vmatprep.subr.bf16.mxu1 %v1857_v40 }
  0x97   :  { %1213 = vmatprep.subr.bf16.mxu0 %v1860_v42 }
  0x99   :  { %1108 = vmatpush1.bf16.msra.mxu1 %v1855_v44 }
  0x9a   :  { %1214 = vmatpush1.bf16.msra.mxu0 %v1858_v45  ;;  %1109 = vmatprep.subr.bf16.mxu1 %v1863_v46 }
  0x9b   :  { %1215 = vmatprep.subr.bf16.mxu0 %v1866_v47 }
  0x9d   :  { %1110 = vmatpush1.bf16.msra.mxu1 %v1861_v48 }
  0x9e   :  { %1216 = vmatpush1.bf16.msra.mxu0 %v1864_v49  ;;  %1111 = vmatprep.subr.bf16.mxu1 %v1869_v50 }
  0x9f   :  { %1217 = vmatprep.subr.bf16.mxu0 %v1872_v51 }
  0xa1   :  { %1112 = vmatpush1.bf16.msra.mxu1 %v1867_v52 }
  0xa2   :  { %1218 = vmatpush1.bf16.msra.mxu0 %v1870_v53  ;;  %1113 = vmatprep.subr.bf16.mxu1 %v1875_v54 }
  0xa3   :  { %1219 = vmatprep.subr.bf16.mxu0 %v1878_v55 }
  0xa5   :  { %1114 = vmatpush1.bf16.msra.mxu1 %v1873_v56 }
  0xa6   :  { %1220 = vmatpush1.bf16.msra.mxu0 %v1876_v57  ;;  %1115 = vmatprep.subr.bf16.mxu1 %v1881_v58 }
  0xa7   :  { %1221 = vmatprep.subr.bf16.mxu0 %v1884_v59 }
  0xa9   :  { %1116 = vmatpush1.bf16.msra.mxu1 %v1879_v60 }
  0xaa   :  { %1222 = vmatpush1.bf16.msra.mxu0 %v1882_v61  ;;  %1117 = vmatprep.subr.bf16.mxu1 %v1887_v62 }
  0xab   :  { %1223 = vmatprep.subr.bf16.mxu0 %v1890_v63 }
  0xad   :  { %1118 = vmatpush1.bf16.msra.mxu1 %v1885_v0 }
  0xae   :  { %1224 = vmatpush1.bf16.msra.mxu0 %v1888_v1  ;;  %1119 = vmatprep.subr.bf16.mxu1 %v1898_v2 }
  0xaf   :  { %1225 = vmatprep.subr.bf16.mxu0 %v1902_v3 }
  0xb1   :  { %1120 = vmatpush1.bf16.msra.mxu1 %v1896_v4 }
  0xb2   :  { %1226 = vmatpush1.bf16.msra.mxu0 %v1900_v5  ;;  %1121 = vmatprep.subr.bf16.mxu1 %v1905_v6 }
  0xb3   :  { %1227 = vmatprep.subr.bf16.mxu0 %v1908_v7 }
  0xb5   :  { %1122 = vmatpush1.bf16.msra.mxu1 %v1903_v8 }
  0xb6   :  { %1228 = vmatpush1.bf16.msra.mxu0 %v1906_v9  ;;  %1649 = vmatprep.subr.bf16.mxu1 %v1917_v10 }
  0xb7   :  { %1250 = vmatprep.subr.bf16.mxu0 %v1917_v10 }
  0xb8   :  { %1124 = vmatmul.mubr.bf16.vlgmr.msra.gmra.mrb[0].mxu1 %v1909_v11 }
  0xb9   :  { %1230 = vmatmul.mubr.bf16.vlgmr.msra.gmra.mrb[0].mxu0 %v1912_v12  ;;  %1657 = vmatpush1.bf16.msra.mxu1 %v1915_v13 }
  0xba   :  { %1251 = vmatpush1.bf16.msra.mxu0 %v1915_v13  ;;  %1650 = vmatprep.subr.bf16.mxu1 %v1920_v14 }
  0xbb   :  { %1252 = vmatprep.subr.bf16.mxu0 %v1920_v14  ;;  %1133 = vmatprep.mubr.bf16.mxu1 %v1921_v15  ;;  %v2025_v15 = vmov 0.0  }
  0xbc   :  { %1239 = vmatprep.mubr.bf16.mxu0 %v1923_v16  ;;  %60 = vst.msk [vmem:[#allocation2] sm:$0x1] %vm59_vm0, %v2025_v15  ;;  %61 = vst.msk [vmem:[#allocation3] sm:$0x1] %vm59_vm0, %v2025_v15  ;;  %v1402_v15 = vld [vmem:[#allocation6] sm:$0x1] }
  0xbd   :  { %1658 = vmatpush1.bf16.msra.mxu1 %v1918_v17 }
  0xbe   :  { %1253 = vmatpush1.bf16.msra.mxu0 %v1918_v17  ;;  %1651 = vmatprep.subr.bf16.mxu1 %v1929_v18 }
  0xbf   :  { %1254 = vmatprep.subr.bf16.mxu0 %v1929_v18 }
  0xc0   :  { %1134 = vmatmul.mubr.bf16.gmra.mrb[4].mxu1 %v1925_v19 }
  0xc1   :  { %1240 = vmatmul.mubr.bf16.gmra.mrb[4].mxu0 %v1926_v20  ;;  %1659 = vmatpush1.bf16.msra.mxu1 %v1927_v21 }
  0xc2   :  { %1255 = vmatpush1.bf16.msra.mxu0 %v1927_v21  ;;  %1652 = vmatprep.subr.bf16.mxu1 %v1932_v22 }
  0xc3   :  { %1256 = vmatprep.subr.bf16.mxu0 %v1932_v22  ;;  %1282 = vmatprep.mubr.bf16.mxu0 %v2024_v25 }
  0xc4   :  { %1292 = vmatprep.mubr.bf16.mxu1 %v2024_v25 }
  0xc5   :  { %1660 = vmatpush1.bf16.msra.mxu1 %v1930_v23 }
  0xc6   :  { %1257 = vmatpush1.bf16.msra.mxu0 %v1930_v23  ;;  %1653 = vmatprep.subr.bf16.mxu1 %v1935_v24 }
  0xc7   :  { %1258 = vmatprep.subr.bf16.mxu0 %v1935_v24 }
  0xc9   :  { %1661 = vmatpush1.bf16.msra.mxu1 %v1933_v26 }
  0xca   :  { %1259 = vmatpush1.bf16.msra.mxu0 %v1933_v26  ;;  %1654 = vmatprep.subr.bf16.mxu1 %v1938_v27 }
  0xcb   :  { %1260 = vmatprep.subr.bf16.mxu0 %v1938_v27 }
  0xcd   :  { %1662 = vmatpush1.bf16.msra.mxu1 %v1936_v28 }
  0xce   :  { %1261 = vmatpush1.bf16.msra.mxu0 %v1936_v28  ;;  %1655 = vmatprep.subr.bf16.mxu1 %v1941_v29 }
  0xcf   :  { %1262 = vmatprep.subr.bf16.mxu0 %v1941_v29 }
  0xd1   :  { %1663 = vmatpush1.bf16.msra.mxu1 %v1939_v30 }
  0xd2   :  { %1263 = vmatpush1.bf16.msra.mxu0 %v1939_v30  ;;  %1656 = vmatprep.subr.bf16.mxu1 %v1944_v31 }
  0xd3   :  { %1264 = vmatprep.subr.bf16.mxu0 %v1944_v31 }
  0xd5   :  { %1664 = vmatpush1.bf16.msra.mxu1 %v1942_v32 }
  0xd6   :  { %1265 = vmatpush1.bf16.msra.mxu0 %v1942_v32 }
  0xd8   :  { %1293 = vmatmul.mubr.bf16.vlgmr.msra.gmra.mrb[8].mxu1 %v1946_v34 }
  0xd9   :  { %1283 = vmatmul.mubr.bf16.vlgmr.msra.gmra.mrb[0].mxu0 %v1945_v33 }
 0x18b   :  { %v1125_v35 = vpop.f32.mrb[0].mxu1 }
 0x18c   :  { %v1127_v36 = vpop.f32.mrb[1].mxu1 }
 0x18d   :  { %v1129_v37 = vpop.f32.mrb[2].mxu1 }
 0x18e   :  { %v1131_v38 = vpop.f32.mrb[3].mxu1 }
 0x193   :  { %v1135_v39 = vpop.f32.mrb[4].mxu1 }
 0x194   :  { %v1241_v40 = vpop.f32.mrb[4].mxu0  ;;  %v1137_v42 = vpop.f32.mrb[5].mxu1 }
 0x195   :  { %v1669_v41 = vadd.f32 %v1241_v40, %v1135_v39  ;;  %v1243_v43 = vpop.f32.mrb[5].mxu0  ;;  %v1139_v45 = vpop.f32.mrb[6].mxu1 }
 0x196   :  { %v1671_v44 = vadd.f32 %v1243_v43, %v1137_v42  ;;  %v1245_v46 = vpop.f32.mrb[6].mxu0  ;;  %v1141_v48 = vpop.f32.mrb[7].mxu1 }
 0x197   :  { %v1673_v47 = vadd.f32 %v1245_v46, %v1139_v45  ;;  %v1247_v49 = vpop.f32.mrb[7].mxu0 }
 0x198   :  { %v1675_v50 = vadd.f32 %v1247_v49, %v1141_v48 }
 0x1ab   :  { %v1294_v52 = vpop.f32.mrb[8].mxu1 }
 0x1ac   :  { %v1284_v51 = vpop.f32.mrb[0].mxu0  ;;  %v2151_v54 = vadd.f32 %v1669_v41, %v1294_v52  ;;  %v1296_v56 = vpop.f32.mrb[9].mxu1  ;;  %v1371_v52 = vld [vmem:[#allocation2] sm:$0x1] }
 0x1ad   :  { %v2149_v53 = vadd.f32 %v1284_v51, %v1125_v35  ;;  %v1286_v55 = vpop.f32.mrb[1].mxu0  ;;  %v2155_v58 = vadd.f32 %v1671_v44, %v1296_v56  ;;  %v1298_v60 = vpop.f32.mrb[10].mxu1 }
 0x1ae   :  { %v2153_v57 = vadd.f32 %v1286_v55, %v1127_v36  ;;  %v1288_v59 = vpop.f32.mrb[2].mxu0  ;;  %v2159_v62 = vadd.f32 %v1673_v47, %v1298_v60  ;;  %v1300_v0 = vpop.f32.mrb[11].mxu1  ;;  %v1325_v6 = vmul.f32 %v2151_v54, %v2151_v54 }
 0x1af   :  { %v2157_v61 = vadd.f32 %v1288_v59, %v1129_v37  ;;  %v1290_v63 = vpop.f32.mrb[3].mxu0  ;;  %v2163_v2 = vadd.f32 %v1675_v50, %v1300_v0  ;;  %v1321_v3 = vmul.f32 %v2149_v53, %v2149_v53  ;;  %v1326_v12 = vmul.f32 %v2155_v58, %v2155_v58 }
 0x1b0   :  { %v2161_v1 = vadd.f32 %v1290_v63, %v1131_v38  ;;  %v1322_v7 = vmul.f32 %v2153_v57, %v2153_v57  ;;  %v1327_v17 = vmul.f32 %v2159_v62, %v2159_v62 }
 0x1b1   :  { %v1303_v4 = vadd.f32 %v2157_v61, %v2149_v53  ;;  %v1323_v5 = vmul.f32 %v2157_v61, %v2157_v61  ;;  %v1328_v20 = vmul.f32 %v2163_v2, %v2163_v2 }
 0x1b2   :  { %v1312_v8 = vadd.f32 %v2161_v1, %v2153_v57  ;;  %v1324_v9 = vmul.f32 %v2161_v1, %v2161_v1 }
 0x1b3   :  { %v1329_v10 = vadd.f32 %v1323_v5, %v1321_v3  ;;  %v1304_v11 = vadd.f32 %v2151_v54, %v1303_v4  ;;  %v1375_v3 = vld [vmem:[#allocation3] sm:$0x1] }
 0x1b4   :  { %v1338_v13 = vadd.f32 %v1324_v9, %v1322_v7  ;;  %v1313_v14 = vadd.f32 %v2155_v58, %v1312_v8 }
 0x1b5   :  { %v1305_v16 = vadd.f32 %v2159_v62, %v1304_v11  ;;  %v1330_v18 = vadd.f32 %v1329_v10, %v1325_v6 }
 0x1b6   :  { %v1314_v19 = vadd.f32 %v2163_v2, %v1313_v14  ;;  %v1339_v21 = vadd.f32 %v1338_v13, %v1326_v12  ;;  %v1410_v13 = vlaneseq }
 0x1b7   :  { %v1306_v22 = vrot.slane %v1305_v16, 4  ;;  %v1331_v23 = vadd.f32 %v1330_v18, %v1327_v17 }
 0x1b8   :  { %v1315_v24 = vrot.slane %v1314_v19, 4  ;;  %v1340_v25 = vadd.f32 %v1339_v21, %v1328_v20  ;;  %v1411_v14 = vshrl.u32 %v1410_v13, 7 }
 0x1b9   :  { %v1332_v26 = vrot.slane %v1331_v23, 4  ;;  %v1307_v27 = vadd.f32 %v1306_v22, %v1305_v16 }
 0x1ba   :  { %v1341_v28 = vrot.slane %v1340_v25, 4  ;;  %v1316_v29 = vadd.f32 %v1315_v24, %v1314_v19  ;;  %v1412_v16 = vsub.s32 0, %v1411_v14  ;;  %v1406_v19 = vld [vmem:[#allocation8] sm:$0x1] }
 0x1bb   :  { %v1308_v30 = vrot.slane %v1307_v27, 2  ;;  %v1333_v31 = vadd.f32 %v1332_v26, %v1331_v23 }
 0x1bc   :  { %v1317_v32 = vrot.slane %v1316_v29, 2  ;;  %v1342_v33 = vadd.f32 %v1341_v28, %v1340_v25 }
 0x1bd   :  { %v1309_v34 = vadd.f32 %v1308_v30, %v1307_v27  ;;  %v1334_v35 = vrot.slane %v1333_v31, 2 }
 0x1be   :  { %v1318_v36 = vadd.f32 %v1317_v32, %v1316_v29  ;;  %v1343_v37 = vrot.slane %v1342_v33, 2 }
 0x1bf   :  { %v1310_v38 = vrot.slane %v1309_v34, 1  ;;  %v1335_v39 = vadd.f32 %v1334_v35, %v1333_v31 }
 0x1c0   :  { %v1319_v40 = vrot.slane %v1318_v36, 1  ;;  %v1344_v41 = vadd.f32 %v1343_v37, %v1342_v33 }
 0x1c1   :  { %v1311_v42 = vadd.f32 %v1310_v38, %v1309_v34  ;;  %v1336_v43 = vrot.slane %v1335_v39, 1 }
 0x1c2   :  { %v1320_v44 = vadd.f32 %v1319_v40, %v1318_v36  ;;  %v1345_v45 = vrot.slane %v1344_v41, 1 }
 0x1c3   :  { %1350 = vrot.lane.b32.xlu0 %v1311_v42, %s2026_s0  ;;  %v1337_v46 = vadd.f32 %v1336_v43, %v1335_v39 }
 0x1c4   :  { %1362 = vrot.lane.b32.xlu1 %v1320_v44, %s2026_s0  ;;  %v1346_v47 = vadd.f32 %v1345_v45, %v1344_v41 }
 0x1c7   :  { %1355 = vrot.lane.b32.xlu0 %v1337_v46, %s2026_s0 }
 0x1c8   :  { %1367 = vrot.lane.b32.xlu1 %v1346_v47, %s2026_s0 }
 0x235   :  { %v1351_v48 = vpop.permute.xlu0 %1350 }
 0x236   :  { %v1353_v49 = vadd.f32 %v1351_v48, %v1311_v42  ;;  %v1363_v50 = vpop.permute.xlu1 %1362 }
 0x238   :  { %v1359_v51 = vadd.f32 %v1353_v49, %v1320_v44 }
 0x239   :  { %v1356_v55 = vpop.permute.xlu0 %1355 }
 0x23a   :  { %v1365_v56 = vadd.f32 %v1363_v50, %v1359_v51  ;;  %v1358_v59 = vadd.f32 %v1356_v55, %v1337_v46  ;;  %v1368_v0 = vpop.permute.xlu1 %1367 }
 0x23c   :  { %v1372_v60 = vadd.f32 %v1371_v52, %v1365_v56  ;;  %v1360_v63 = vadd.f32 %v1358_v59, %v1346_v47 }
 0x23e   :  { %1374 = vst.msk [vmem:[#allocation2] sm:$0x1] %vm59_vm0, %v1372_v60  ;;  %v1370_v4 = vadd.f32 %v1368_v0, %v1360_v63 }
 0x240   :  { %v1376_v5 = vadd.f32 %v1375_v3, %v1370_v4 }
 0x242   :  { %1377 = vst.msk [vmem:[#allocation3] sm:$0x1] %vm59_vm0, %v1376_v5 }
 0x245   :  { %v1395_v6 = vld [vmem:[#allocation2] sm:$0x1] }
 0x246   :  { %v1397_v7 = vmul.f32 0.0078125, %v1395_v6 }
 0x248   :  { %v1400_v10 = vmul.f32 %v1397_v7, %v1397_v7 }
 0x249   :  { %v1398_v8 = vld [vmem:[#allocation3] sm:$0x1] }
 0x24a   :  { %v1399_v9 = vmul.f32 0.0078125, %v1398_v8 }
 0x24c   :  { %v1401_v11 = vsub.f32 %v1399_v9, %v1400_v10 }
 0x24e   :  { %v1403_v12 = vadd.f32 1e-05, %v1401_v11 }
 0x250   :  { %1947 = vrsqrt.f32 %v1403_v12 }
 0x25a   :  { %v1948_v17 = vpop.eup %1947 }
 0x25b   :  { %v1405_v18 = vmul.f32 %v1948_v17, %v1402_v15 }
 0x25d   :  { %v1413_v20 = vrot.slane %v1405_v18, %v1412_v16  ;;  %v1407_v21 = vmul.f32 %v1405_v18, %v1397_v7 }
 0x25f   :  { %1414 = vrot.lane.b32.xlu0 %v1413_v20, %s2026_s0  ;;  %v1408_v22 = vsub.f32 %v1406_v19, %v1407_v21 }
 0x261   :  { %v1423_v23 = vrot.slane %v1408_v22, %v1412_v16 }
 0x263   :  { %1424 = vrot.lane.b32.xlu1 %v1423_v23, %s2026_s0 }
 0x2d1   :  { %v1415_v24 = vpop.permute.xlu0 %1414 }
 0x2d2   :  { %v1418_v25 = vsel %vm1417_vm1, %v1405_v18, %v1415_v24 }
 0x2d3   :  { %v1442_v26 = vrot.slane %v1418_v25, %v1412_v16 }
 0x2d5   :  { %v1425_v27 = vpop.permute.xlu1 %1424  ;;  %v1443_v28 = vmul.f32 %v2149_v53, %v1442_v26  ;;  %v1444_v30 = vmul.f32 %v2153_v57, %v1442_v26  ;;  %v1445_v31 = vmul.f32 %v2157_v61, %v1442_v26  ;;  %v1446_v32 = vmul.f32 %v2161_v1, %v1442_v26 }
 0x2d6   :  { %v1427_v29 = vsel %vm1417_vm1, %v1408_v22, %v1425_v27  ;;  %v1447_v34 = vmul.f32 %v2151_v54, %v1442_v26  ;;  %v1448_v35 = vmul.f32 %v2155_v58, %v1442_v26  ;;  %v1449_v36 = vmul.f32 %v2159_v62, %v1442_v26 }
 0x2d7   :  { %v1454_v33 = vrot.slane %v1427_v29, %v1412_v16  ;;  %v1450_v37 = vmul.f32 %v2163_v2, %v1442_v26 }
 0x2d9   :  { %v1455_v38 = vadd.f32 %v1454_v33, %v1443_v28  ;;  %v1456_v39 = vadd.f32 %v1454_v33, %v1444_v30  ;;  %v1457_v40 = vadd.f32 %v1454_v33, %v1445_v31  ;;  %v1458_v53 = vadd.f32 %v1454_v33, %v1446_v32 }
 0x2da   :  { %v1459_v41 = vadd.f32 %v1454_v33, %v1447_v34  ;;  %v1460_v42 = vadd.f32 %v1454_v33, %v1448_v35  ;;  %v1461_v57 = vadd.f32 %v1454_v33, %v1449_v36  ;;  %v1462_v43 = vadd.f32 %v1454_v33, %v1450_v37 }
 0x2db   :  { %v1463_v61 = vmax.f32 %v1455_v38, 0.0  ;;  %v1464_v44 = vmax.f32 %v1456_v39, 0.0  ;;  %v1465_v1 = vmax.f32 %v1457_v40, 0.0  ;;  %v1466_v45 = vmax.f32 %v1458_v53, 0.0 }
 0x2dc   :  { %v1467_v46 = vmax.f32 %v1459_v41, 0.0  ;;  %v1468_v54 = vmax.f32 %v1460_v42, 0.0  ;;  %v1469_v47 = vmax.f32 %v1461_v57, 0.0  ;;  %v1470_v58 = vmax.f32 %v1462_v43, 0.0 }
 0x2dd   :  { %1471 = vst [vmem:[%s2235_s4] sm:$0xff] %v1463_v61  ;;  %1472 = vst [vmem:[%s2235_s4 + $0x8] sm:$0xff] %v1464_v44 }
 0x2de   :  { %1473 = vst [vmem:[%s2235_s4 + $0x10] sm:$0xff] %v1465_v1  ;;  %1474 = vst [vmem:[%s2235_s4 + $0x18] sm:$0xff] %v1466_v45 }
 0x2df   :  { %1475 = vst [vmem:[%s2235_s4 + $0x20] sm:$0xff] %v1467_v46  ;;  %1476 = vst [vmem:[%s2235_s4 + $0x28] sm:$0xff] %v1468_v54 }
 0x2e0   :  { %1477 = vst [vmem:[%s2235_s4 + $0x30] sm:$0xff] %v1469_v47  ;;  %1478 = vst [vmem:[%s2235_s4 + $0x38] sm:$0xff] %v1470_v58 }
 0x2e1   :  { %1483 = vsyncpa [#allocation5], 1 }
 0x2e2   :  { %1484 = vsyncpa [#allocation7], 1 }

// kernel: generator_forward.8
= control target key start
LH: loop header
LB: loop body
LE: loop exit
PB: predicated region body
PF: predicated region fallthrough
CT: control target
= control target key end

     0   :  { %s1954_s15 = smov 0   ;;  %s2485_s0 = inlined_call_operand.vmem [shape: bf16[512,288], index: 0, kind: input, shape index: {}]   ;;  %s2486_s1 = inlined_call_operand.vmem [shape: bf16[288,64], index: 1, kind: input, shape index: {}]   ;;  %s2487_s2 = inlined_call_operand.vmem [shape: f32[1,16], index: 2, kind: input, shape index: {}]   ;;  %s2488_s3 = inlined_call_operand.vmem [shape: f32[1,16], index: 3, kind: input, shape index: {}]   ;;  %s2489_s4 = inlined_call_operand.vmem [shape: f32[512,64], index: 4, kind: output, shape index: {}]  }
   0x1 LB: > { %s1960_s16 = sadd.s32 4294967295, %s1916_s15   ;;  %p1525_p0 = scmp.ge.s32.totalorder %s1916_s15, 1  ;;  %s1916_s15 = sphi %s1954_s15, %s14_s15  }
   0x2   : > { %p159_p1 = scmp.lt.s32.totalorder %s1916_s15, 3 }
   0x4   : > { %p160_p2 = pnand %p1525_p0, %p159_p1 }
   0x5   : > { %s1526_s17 = sshll.u32 (!%p160_p2), %s1960_s16, 5  ;;  %p1528_p4 = scmp.ne.s32.totalorder (!%p160_p2), %s1960_s16, 0 }
   0x6   : > { %163 = sbr.rel (%p160_p2) target bundleno = 705 (0x2c1), region = 36  ;;  %p182_p3 = scmp.lt.s32.totalorder (!%p160_p2), %s1526_s17, 63 }
   0xd   : > { %s2491_s17 = smov (!%p182_p3, %s1526_s17), 63  ;;  %192 = sbr.rel (%p1528_p4) target bundleno = 20 (0x14), region = 40 }
   0xe   : > { %s1798_s18 = smul.u32 12, %s2491_s17  ;;  %vm193_vm0 = vcmask (!%p1528_p4), 122880   ;;  %v1922_v0 = vmov (!%p1528_p4), 0.0  }
   0xf   : > { %194 = vst.msk [vmem:[#allocation2] sm:$0x1] (!%p1528_p4), %vm193_vm0, %v1922_v0  ;;  %195 = vst.msk [vmem:[#allocation3] sm:$0x1] (!%p1528_p4), %vm193_vm0, %v1922_v0 }
  0x10   : > { %s1968_s21 = scalar_lea.vmem %s2485_s0, %s1798_s18 }
  0x14 PF: > { %v1822_v1 = vld [vmem:[%s2486_s1 + $0x40] sm:$0xff]   ;;  %v1824_v3 = vld [vmem:[%s2486_s1 + $0x48] sm:$0xff]   ;;  %v1826_v5 = vld [vmem:[%s2486_s1 + $0x50] sm:$0xff]   ;;  %vm644_vm1 = vcmask 261120   ;;  %vm1015_vm2 = vcmask 523264   ;;  %s1923_s12 = smov 96  }
  0x15   : > { %v1823_v2 = vld [vmem:[%s2486_s1] sm:$0xff]   ;;  %1616 = vmatprep.subr.bf16.mxu0 %v1822_v1  ;;  %1782 = vmatprep.subr.bf16.mxu1 %v1822_v1  ;;  %v1825_v4 = vld [vmem:[%s2486_s1 + $0x8] sm:$0xff]   ;;  %v1827_v6 = vld [vmem:[%s2486_s1 + $0x10] sm:$0xff]   ;;  %s1924_s13 = smov 112   ;;  %s1925_s14 = smov 80   ;;  %vm1216_vm3 = vcmask 122880  }
  0x16   : > { %1617 = vmatpush3.bf16.msra.mxu0 %v1823_v2  ;;  %1790 = vmatpush3.bf16.msra.mxu1 %v1823_v2  ;;  %v1828_v7 = vld [vmem:[%s2486_s1 + $0x58] sm:$0xff]   ;;  %v1830_v9 = vld [vmem:[%s2486_s1 + $0x60] sm:$0xff]   ;;  %v1832_v11 = vld [vmem:[%s2486_s1 + $0x68] sm:$0xff]   ;;  %p1612_p5 = scmp.ne.s32.totalorder %s1960_s16, 1 }
  0x17   : > { %1618 = vmatprep.subr.bf16.mxu0 %v1824_v3  ;;  %1783 = vmatprep.subr.bf16.mxu1 %v1824_v3  ;;  %v1829_v8 = vld [vmem:[%s2486_s1 + $0x18] sm:$0xff]   ;;  %v1831_v10 = vld [vmem:[%s2486_s1 + $0x20] sm:$0xff]   ;;  %v1833_v14 = vld [vmem:[%s2486_s1 + $0x28] sm:$0xff]   ;;  %s1926_s20 = smov (!%p1612_p5), 32   ;;  %s1927_s22 = smov (!%p1612_p5), 16   ;;  %vm1287_vm4 = vcmask (!%p1612_p5), 130048  }
  0x18   : > { %v1840_v12 = vld [vmem:[%s1968_s21 + $0x4] ss:$12 sps:$4 sm:$0xff]   ;;  %v1836_v17 = vld [vmem:[%s2486_s1 + $0x78] sm:$0xff]   ;;  %v1838_v20 = vld [vmem:[%s1968_s21] ss:$12 sps:$4 sm:$0xff]   ;;  %s1928_s23 = smov (!%p1612_p5), 48  }
  0x19   : > { %v1843_v13 = vld [vmem:[%s1968_s21 + $0x124] ss:$12 sps:$4 sm:$0xff]   ;;  %725 = vmatprep.mubr.bf16.mxu0 %v1840_v12  ;;  %v1837_v18 = vld [vmem:[%s2486_s1 + $0x38] sm:$0xff]   ;;  %v1841_v21 = vld [vmem:[%s1968_s21 + $0x120] ss:$12 sps:$4 sm:$0xff]   ;;  %vm1290_vm5 = vcmask (!%p1612_p5), 392192  }
  0x1a   : > { %1619 = vmatpush3.bf16.msra.mxu0 %v1825_v4  ;;  %1791 = vmatpush3.bf16.msra.mxu1 %v1825_v4  ;;  %v1834_v15 = vld [vmem:[%s2486_s1 + $0x70] sm:$0xff]   ;;  %v1850_v19 = vld [vmem:[%s2486_s1 + $0x80] sm:$0xff]   ;;  %v1844_v22 = vld [vmem:[%s1968_s21 + $0x1c] ss:$12 sps:$4 sm:$0xff]   ;;  %s2300_s24 = smov (!%p1612_p5), 0  }
  0x1b   : > { %1620 = vmatprep.subr.bf16.mxu0 %v1826_v5  ;;  %1784 = vmatprep.subr.bf16.mxu1 %v1826_v5  ;;  %v1835_v16 = vld [vmem:[%s2486_s1 + $0x30] sm:$0xff]   ;;  %v1846_v23 = vld [vmem:[%s1968_s21 + $0x13c] ss:$12 sps:$4 sm:$0xff]   ;;  %v1848_v25 = vld [vmem:[%s1968_s21 + $0x18] ss:$12 sps:$4 sm:$0xff]  }
  0x1c   : > { %821 = vmatprep.mubr.bf16.mxu1 %v1843_v13  ;;  %v1863_v24 = vld [vmem:[%s2486_s1 + $0x88] sm:$0xff]   ;;  %v1849_v26 = vld [vmem:[%s1968_s21 + $0x138] ss:$12 sps:$4 sm:$0xff]   ;;  %v1851_v27 = vld [vmem:[%s1968_s21 + $0x34] ss:$12 sps:$4 sm:$0xff]  }
  0x1d   : > { %v1853_v28 = vld [vmem:[%s1968_s21 + $0x154] ss:$12 sps:$4 sm:$0xff]   ;;  %v1855_v29 = vld [vmem:[%s1968_s21 + $0x30] ss:$12 sps:$4 sm:$0xff]   ;;  %v1857_v31 = vld [vmem:[%s1968_s21 + $0x4c] ss:$12 sps:$4 sm:$0xff]  }
  0x1e   : > { %1621 = vmatpush3.bf16.msra.mxu0 %v1827_v6  ;;  %1792 = vmatpush3.bf16.msra.mxu1 %v1827_v6  ;;  %v1856_v30 = vld [vmem:[%s1968_s21 + $0x150] ss:$12 sps:$4 sm:$0xff]   ;;  %v1859_v32 = vld [vmem:[%s1968_s21 + $0x16c] ss:$12 sps:$4 sm:$0xff]   ;;  %v1861_v33 = vld [vmem:[%s1968_s21 + $0x48] ss:$12 sps:$4 sm:$0xff]  }
  0x1f   : > { %1622 = vmatprep.subr.bf16.mxu0 %v1828_v7  ;;  %1785 = vmatprep.subr.bf16.mxu1 %v1828_v7  ;;  %v1862_v34 = vld [vmem:[%s1968_s21 + $0x168] ss:$12 sps:$4 sm:$0xff]   ;;  %v1864_v35 = vld [vmem:[%s1968_s21 + $0x64] ss:$12 sps:$4 sm:$0xff]   ;;  %v1867_v37 = vld [vmem:[%s1968_s21 + $0x60] ss:$12 sps:$4 sm:$0xff]  }
  0x20   : > { %v1866_v36 = vld [vmem:[%s1968_s21 + $0x8] ss:$12 sps:$4 sm:$0xff]   ;;  %v1868_v38 = vld [vmem:[%s1968_s21 + $0x20] ss:$12 sps:$4 sm:$0xff]   ;;  %v1871_v40 = vld [vmem:[%s1968_s21 + $0x38] ss:$12 sps:$4 sm:$0xff]  }
  0x21   : > { %v1869_v39 = vld [vmem:[%s1968_s21 + $0x7c] ss:$12 sps:$4 sm:$0xff]   ;;  %v1872_v41 = vld [vmem:[%s1968_s21 + $0x78] ss:$12 sps:$4 sm:$0xff]   ;;  %v1874_v43 = vld [vmem:[%s1968_s21 + $0x94] ss:$12 sps:$4 sm:$0xff]  }
  0x22   : > { %1623 = vmatpush3.bf16.msra.mxu0 %v1829_v8  ;;  %1793 = vmatpush3.bf16.msra.mxu1 %v1829_v8  ;;  %v1873_v42 = vld [vmem:[%s1968_s21 + $0x50] ss:$12 sps:$4 sm:$0xff]   ;;  %v1876_v44 = vld [vmem:[%s1968_s21 + $0x68] ss:$12 sps:$4 sm:$0xff]   ;;  %v1878_v46 = vld [vmem:[%s1968_s21 + $0x80] ss:$12 sps:$4 sm:$0xff]  }
  0x23   : > { %1624 = vmatprep.subr.bf16.mxu0 %v1830_v9  ;;  %1786 = vmatprep.subr.bf16.mxu1 %v1830_v9  ;;  %v1877_v45 = vld [vmem:[%s1968_s21 + $0x90] ss:$12 sps:$4 sm:$0xff]   ;;  %v1879_v47 = vld [vmem:[%s1968_s21 + $0xac] ss:$12 sps:$4 sm:$0xff]   ;;  %v1882_v49 = vld [vmem:[%s1968_s21 + $0xa8] ss:$12 sps:$4 sm:$0xff]  }
  0x24   : > { %v1881_v48 = vld [vmem:[%s1968_s21 + $0x98] ss:$12 sps:$4 sm:$0xff]   ;;  %v1883_v50 = vld [vmem:[%s1968_s21 + $0xb0] ss:$12 sps:$4 sm:$0xff]   ;;  %v1886_v52 = vld [vmem:[%s1968_s21 + $0xc8] ss:$12 sps:$4 sm:$0xff]  }
  0x25   : > { %v1884_v51 = vld [vmem:[%s1968_s21 + $0xc4] ss:$12 sps:$4 sm:$0xff]   ;;  %v1887_v53 = vld [vmem:[%s1968_s21 + $0xc0] ss:$12 sps:$4 sm:$0xff]   ;;  %v1889_v55 = vld [vmem:[%s1968_s21 + $0xdc] ss:$12 sps:$4 sm:$0xff]  }
  0x26   : > { %1625 = vmatpush3.bf16.msra.mxu0 %v1831_v10  ;;  %1794 = vmatpush3.bf16.msra.mxu1 %v1831_v10  ;;  %v1888_v54 = vld [vmem:[%s1968_s21 + $0xe0] ss:$12 sps:$4 sm:$0xff]   ;;  %v1891_v56 = vld [vmem:[%s1968_s21 + $0xf8] ss:$12 sps:$4 sm:$0xff]   ;;  %v1893_v58 = vld [vmem:[%s1968_s21 + $0x110] ss:$12 sps:$4 sm:$0xff]  }
  0x27   : > { %1626 = vmatprep.subr.bf16.mxu0 %v1832_v11  ;;  %1787 = vmatprep.subr.bf16.mxu1 %v1832_v11  ;;  %v1892_v57 = vld [vmem:[%s1968_s21 + $0xd8] ss:$12 sps:$4 sm:$0xff]   ;;  %v1894_v59 = vld [vmem:[%s1968_s21 + $0xf4] ss:$12 sps:$4 sm:$0xff]   ;;  %v1897_v61 = vld [vmem:[%s1968_s21 + $0xf0] ss:$12 sps:$4 sm:$0xff]  }
  0x28   : > { %v1896_v60 = vld [vmem:[%s1968_s21 + $0x128] ss:$12 sps:$4 sm:$0xff]   ;;  %v1898_v62 = vld [vmem:[%s1968_s21 + $0x140] ss:$12 sps:$4 sm:$0xff]   ;;  %v1901_v0 = vld [vmem:[%s1968_s21 + $0x158] ss:$12 sps:$4 sm:$0xff]  }
  0x29   : > { %v1899_v63 = vld [vmem:[%s1968_s21 + $0x10c] ss:$12 sps:$4 sm:$0xff]   ;;  %v1902_v1 = vld [vmem:[%s1968_s21 + $0x108] ss:$12 sps:$4 sm:$0xff]   ;;  %v1903_v2 = vld [vmem:[%s1968_s21 + $0x170] ss:$12 sps:$4 sm:$0xff]  }
  0x2a   : > { %1627 = vmatpush3.bf16.msra.mxu0 %v1833_v14  ;;  %1795 = vmatpush3.bf16.msra.mxu1 %v1833_v14  ;;  %s1611_s21 = sshll.u32 %s1960_s16, 8 }
  0x2b   : > { %1628 = vmatprep.subr.bf16.mxu0 %v1834_v15  ;;  %1788 = vmatprep.subr.bf16.mxu1 %v1834_v15  ;;  %s2111_s11 = scalar_lea.vmem %s2489_s4, %s1611_s21 }
  0x2e   : > { %1629 = vmatpush3.bf16.msra.mxu0 %v1835_v16  ;;  %1796 = vmatpush3.bf16.msra.mxu1 %v1835_v16 }
  0x2f   : > { %1630 = vmatprep.subr.bf16.mxu0 %v1836_v17  ;;  %1789 = vmatprep.subr.bf16.mxu1 %v1836_v17 }
  0x32   : > { %1631 = vmatpush3.bf16.msra.mxu0 %v1837_v18  ;;  %1797 = vmatpush3.bf16.msra.mxu1 %v1837_v18 }
  0x33   : > { %1746 = vmatprep.subr.bf16.mxu1 %v1850_v19 }
  0x35   : > { %726 = vmatmul.mubr.bf16.vlgmr.msra.gmra.mrb[0].mxu0 %v1838_v20  ;;  %822 = vmatmul.mubr.bf16.vlgmr.msra.gmra.mrb[0].mxu1 %v1841_v21 }
  0x36   : > { %733 = vmatprep.mubr.bf16.mxu0 %v1844_v22  ;;  %829 = vmatprep.mubr.bf16.mxu1 %v1846_v23 }
  0x37   : > { %1747 = vmatpush3.bf16.msra.mxu1 %v1850_v19 }
  0x38   : > { %1748 = vmatprep.subr.bf16.mxu1 %v1863_v24 }
  0x3b   : > { %1749 = vmatpush3.bf16.msra.mxu1 %v1863_v24 }
  0x3d   : > { %734 = vmatmul.mubr.bf16.gmra.mrb[4].mxu0 %v1848_v25  ;;  %830 = vmatmul.mubr.bf16.gmra.mrb[4].mxu1 %v1849_v26 }
  0x3e   : > { %741 = vmatprep.mubr.bf16.mxu0 %v1851_v27  ;;  %837 = vmatprep.mubr.bf16.mxu1 %v1853_v28 }
  0x45   : > { %742 = vmatmul.mubr.bf16.gmra.mrb[8].mxu0 %v1855_v29  ;;  %838 = vmatmul.mubr.bf16.gmra.mrb[8].mxu1 %v1856_v30 }
  0x46   : > { %749 = vmatprep.mubr.bf16.mxu0 %v1857_v31  ;;  %845 = vmatprep.mubr.bf16.mxu1 %v1859_v32 }
  0x4d   : > { %750 = vmatmul.mubr.bf16.gmra.mrb[12].mxu0 %v1861_v33  ;;  %846 = vmatmul.mubr.bf16.gmra.mrb[12].mxu1 %v1862_v34 }
  0x4e   : > { %757 = vmatprep.mubr.bf16.mxu0 %v1864_v35  ;;  %1750 = vmatprep.mubr.msk.bf16.mxu1 %vm644_vm1, %v1866_v36 }
  0x55   : > { %758 = vmatmul.mubr.bf16.gmra.mrb[16].mxu0 %v1867_v37  ;;  %1751 = vmatmul.mubr.msk.bf16.vlgmr.msra.gmra.mrb[16].mxu1 %vm644_vm1, %v1868_v38 }
  0x56   : > { %765 = vmatprep.mubr.bf16.mxu0 %v1869_v39  ;;  %1754 = vmatprep.mubr.msk.bf16.mxu1 %vm644_vm1, %v1871_v40 }
  0x5d   : > { %766 = vmatmul.mubr.bf16.gmra.mrb[20].mxu0 %v1872_v41  ;;  %1755 = vmatmul.mubr.msk.bf16.gmra.mrb[20].mxu1 %vm644_vm1, %v1873_v42 }
  0x5e   : > { %773 = vmatprep.mubr.bf16.mxu0 %v1874_v43  ;;  %1758 = vmatprep.mubr.msk.bf16.mxu1 %vm644_vm1, %v1876_v44 }
  0x65   : > { %774 = vmatmul.mubr.bf16.gmra.mrb[24].mxu0 %v1877_v45  ;;  %1759 = vmatmul.mubr.msk.bf16.gmra.mrb[24].mxu1 %vm644_vm1, %v1878_v46 }
  0x66   : > { %781 = vmatprep.mubr.bf16.mxu0 %v1879_v47  ;;  %1762 = vmatprep.mubr.msk.bf16.mxu1 %vm644_vm1, %v1881_v48 }
  0x6d   : > { %782 = vmatmul.mubr.bf16.gmra.mrb[28].mxu0 %v1882_v49  ;;  %1763 = vmatmul.mubr.msk.bf16.gmra.mrb[28].mxu1 %vm644_vm1, %v1883_v50 }
  0x6e   : > { %789 = vmatprep.mubr.bf16.mxu0 %v1884_v51  ;;  %1766 = vmatprep.mubr.msk.bf16.mxu1 %vm644_vm1, %v1886_v52 }
  0x75   : > { %790 = vmatmul.mubr.bf16.gmra.mrb[32].mxu0 %v1887_v53  ;;  %1767 = vmatmul.mubr.msk.bf16.gmra.mrb[32].mxu1 %vm644_vm1, %v1888_v54 }
  0x76   : > { %797 = vmatprep.mubr.bf16.mxu0 %v1889_v55  ;;  %1770 = vmatprep.mubr.msk.bf16.mxu1 %vm644_vm1, %v1891_v56 }
  0x7d   : > { %798 = vmatmul.mubr.bf16.gmra.mrb[36].mxu0 %v1892_v57  ;;  %1771 = vmatmul.mubr.msk.bf16.gmra.mrb[36].mxu1 %vm644_vm1, %v1893_v58 }
  0x7e   : > { %805 = vmatprep.mubr.bf16.mxu0 %v1894_v59  ;;  %1774 = vmatprep.mubr.msk.bf16.mxu1 %vm644_vm1, %v1896_v60 }
  0x85   : > { %806 = vmatmul.mubr.bf16.gmra.mrb[40].mxu0 %v1897_v61  ;;  %1775 = vmatmul.mubr.msk.bf16.gmra.mrb[40].mxu1 %vm644_vm1, %v1898_v62 }
  0x86   : > { %813 = vmatprep.mubr.bf16.mxu0 %v1899_v63  ;;  %1778 = vmatprep.mubr.msk.bf16.mxu1 %vm644_vm1, %v1901_v0 }
  0x8d   : > { %814 = vmatmul.mubr.bf16.gmra.mrb[44].mxu0 %v1902_v1  ;;  %1779 = vmatmul.mubr.msk.bf16.gmra.mrb[44].mxu1 %vm644_vm1, %v1903_v2 }
 0x108   : > { %v1632_v3 = vpop.f32.mrb[0].mxu0  ;;  %v1704_v4 = vpop.f32.mrb[0].mxu1 }
 0x109   : > { %v1633_v5 = vpop.f32.mrb[1].mxu0  ;;  %v1705_v6 = vpop.f32.mrb[1].mxu1 }
 0x10a   : > { %v1634_v7 = vadd.f32 %v1633_v5, %v1632_v3  ;;  %v1635_v8 = vpop.f32.mrb[2].mxu0  ;;  %v2089_v9 = vadd.f32 %v1705_v6, %v1704_v4  ;;  %v1707_v10 = vpop.f32.mrb[2].mxu1 }
 0x10b   : > { %v1636_v11 = vpop.f32.mrb[3].mxu0  ;;  %v1708_v12 = vpop.f32.mrb[3].mxu1 }
 0x10c   : > { %v1637_v13 = vadd.f32 %v1636_v11, %v1635_v8  ;;  %v2091_v14 = vadd.f32 %v1708_v12, %v1707_v10 }
 0x110   : > { %v1638_v15 = vpop.f32.mrb[4].mxu0  ;;  %v1710_v16 = vpop.f32.mrb[4].mxu1 }
 0x111   : > { %v1639_v17 = vpop.f32.mrb[5].mxu0  ;;  %v1711_v18 = vpop.f32.mrb[5].mxu1 }
 0x112   : > { %v1640_v19 = vadd.f32 %v1639_v17, %v1638_v15  ;;  %v1641_v20 = vpop.f32.mrb[6].mxu0  ;;  %v2093_v21 = vadd.f32 %v1711_v18, %v1710_v16  ;;  %v1713_v22 = vpop.f32.mrb[6].mxu1 }
 0x113   : > { %v1642_v23 = vpop.f32.mrb[7].mxu0  ;;  %v1714_v24 = vpop.f32.mrb[7].mxu1 }
 0x114   : > { %v1643_v25 = vadd.f32 %v1642_v23, %v1641_v20  ;;  %v2095_v26 = vadd.f32 %v1714_v24, %v1713_v22 }
 0x118   : > { %v1644_v27 = vpop.f32.mrb[8].mxu0  ;;  %v1716_v28 = vpop.f32.mrb[8].mxu1 }
 0x119   : > { %v1645_v29 = vpop.f32.mrb[9].mxu0  ;;  %v1717_v30 = vpop.f32.mrb[9].mxu1 }
 0x11a   : > { %v1646_v31 = vadd.f32 %v1645_v29, %v1644_v27  ;;  %v1647_v32 = vpop.f32.mrb[10].mxu0  ;;  %v2097_v33 = vadd.f32 %v1717_v30, %v1716_v28  ;;  %v1719_v34 = vpop.f32.mrb[10].mxu1 }
 0x11b   : > { %v1648_v35 = vpop.f32.mrb[11].mxu0  ;;  %v1720_v36 = vpop.f32.mrb[11].mxu1 }
 0x11c   : > { %v2099_v37 = vadd.f32 %v1648_v35, %v1647_v32  ;;  %v2101_v38 = vadd.f32 %v1720_v36, %v1719_v34 }
 0x120   : > { %v1650_v39 = vpop.f32.mrb[12].mxu0  ;;  %v1722_v40 = vpop.f32.mrb[12].mxu1 }
 0x121   : > { %v1651_v41 = vpop.f32.mrb[13].mxu0  ;;  %v1723_v42 = vpop.f32.mrb[13].mxu1 }
 0x122   : > { %v1652_v43 = vadd.f32 %v1651_v41, %v1650_v39  ;;  %v1653_v44 = vpop.f32.mrb[14].mxu0  ;;  %v2103_v45 = vadd.f32 %v1723_v42, %v1722_v40  ;;  %v1725_v46 = vpop.f32.mrb[14].mxu1 }
 0x123   : > { %v1654_v47 = vpop.f32.mrb[15].mxu0  ;;  %v1726_v48 = vpop.f32.mrb[15].mxu1 }
 0x124   : > { %v1655_v49 = vadd.f32 %v1654_v47, %v1653_v44  ;;  %v2105_v50 = vadd.f32 %v1726_v48, %v1725_v46 }
 0x128   : > { %v1656_v51 = vpop.f32.mrb[16].mxu0  ;;  %v1752_v52 = vpop.f32.mrb[16].mxu1 }
 0x129   : > { %v897_v53 = vadd.f32 %v1752_v52, %v1640_v19  ;;  %v1657_v54 = vpop.f32.mrb[17].mxu0  ;;  %v888_v55 = vpop.f32.mrb[17].mxu1 }
 0x12a   : > { %v2113_v56 = vadd.f32 %v1657_v54, %v1656_v51  ;;  %v889_v57 = vadd.f32 %v1634_v7, %v888_v55  ;;  %v1659_v58 = vpop.f32.mrb[18].mxu0  ;;  %v1753_v59 = vpop.f32.mrb[18].mxu1 }
 0x12b   : > { %1225 = vst.msk [vmem:[%s2111_s11 + $0x10] sm:$0xff] %vm1015_vm2, %v897_v53  ;;  %v900_v60 = vadd.f32 %v1753_v59, %v1643_v25  ;;  %v1660_v61 = vpop.f32.mrb[19].mxu0  ;;  %v891_v62 = vpop.f32.mrb[19].mxu1  ;;  %v1087_v2 = vmul.f32 %v897_v53, %v897_v53  ;;  %v1019_v8 = vsel %vm1015_vm2, %v897_v53, 0.0 }
 0x12c   : > { %v1085_v63 = vmul.f32 %v889_v57, %v889_v57  ;;  %1223 = vst.msk [vmem:[%s2111_s11] sm:$0xff] %vm1015_vm2, %v889_v57  ;;  %v2119_v0 = vadd.f32 %v1660_v61, %v1659_v58  ;;  %v892_v1 = vadd.f32 %v1637_v13, %v891_v62  ;;  %v1016_v3 = vsel %vm1015_vm2, %v889_v57, 0.0 }
 0x12d   : > { %1226 = vst.msk [vmem:[%s2111_s11 + $0x18] sm:$0xff] %vm1015_vm2, %v900_v60  ;;  %v1088_v6 = vmul.f32 %v900_v60, %v900_v60  ;;  %v1120_v20 = vsel %vm1015_vm2, %v1087_v2, 0.0  ;;  %v1021_v22 = vsel %vm1015_vm2, %v900_v60, 0.0 }
 0x12e   : > { %v1017_v4 = vsel %vm1015_vm2, %v892_v1, 0.0  ;;  %v1086_v5 = vmul.f32 %v892_v1, %v892_v1  ;;  %1224 = vst.msk [vmem:[%s2111_s11 + $0x8] sm:$0xff] %vm1015_vm2, %v892_v1  ;;  %v1117_v10 = vsel %vm1015_vm2, %v1085_v63, 0.0 }
 0x12f   : > { %v1018_v7 = vadd.f32 %v1017_v4, %v1016_v3  ;;  %v1122_v28 = vsel %vm1015_vm2, %v1088_v6, 0.0 }
 0x130   : > { %v1118_v11 = vsel %vm1015_vm2, %v1086_v5, 0.0  ;;  %v1662_v12 = vpop.f32.mrb[20].mxu0  ;;  %v1756_v13 = vpop.f32.mrb[20].mxu1 }
 0x131   : > { %v1020_v15 = vadd.f32 %v1019_v8, %v1018_v7  ;;  %v1119_v16 = vadd.f32 %v1118_v11, %v1117_v10  ;;  %v913_v17 = vadd.f32 %v1756_v13, %v1652_v43  ;;  %v1663_v18 = vpop.f32.mrb[21].mxu0  ;;  %v904_v19 = vpop.f32.mrb[21].mxu1 }
 0x132   : > { %v1664_v23 = vadd.f32 %v1663_v18, %v1662_v12  ;;  %v905_v24 = vadd.f32 %v1646_v31, %v904_v19  ;;  %v1665_v25 = vpop.f32.mrb[22].mxu0  ;;  %v1757_v27 = vpop.f32.mrb[22].mxu1 }
 0x133   : > { %v1121_v29 = vadd.f32 %v1120_v20, %v1119_v16  ;;  %1229 = vst.msk [vmem:[%s2111_s11 + $0x30] sm:$0xff] %vm1015_vm2, %v913_v17  ;;  %v1022_v30 = vadd.f32 %v1021_v22, %v1020_v15  ;;  %v1666_v32 = vpop.f32.mrb[23].mxu0  ;;  %v907_v34 = vpop.f32.mrb[23].mxu1  ;;  %v916_v39 = vadd.f32 %v1757_v27, %v1655_v49  ;;  %v1091_v44 = vmul.f32 %v913_v17, %v913_v17 }
 0x134   : > { %v1023_v35 = vsel %vm1015_vm2, %v905_v24, 0.0  ;;  %v1089_v36 = vmul.f32 %v905_v24, %v905_v24  ;;  %1227 = vst.msk [vmem:[%s2111_s11 + $0x20] sm:$0xff] %vm1015_vm2, %v905_v24  ;;  %v1667_v40 = vadd.f32 %v1666_v32, %v1665_v25  ;;  %v908_v42 = vadd.f32 %v2099_v37, %v907_v34 }
 0x135   : > { %v1024_v31 = vadd.f32 %v1023_v35, %v1022_v30  ;;  %v1123_v41 = vadd.f32 %v1122_v28, %v1121_v29  ;;  %1230 = vst.msk [vmem:[%s2111_s11 + $0x38] sm:$0xff] %vm1015_vm2, %v916_v39  ;;  %v1027_v53 = vsel %vm1015_vm2, %v913_v17, 0.0  ;;  %v1092_v54 = vmul.f32 %v916_v39, %v916_v39 }
 0x136   : > { %v1124_v43 = vsel %vm1015_vm2, %v1089_v36, 0.0  ;;  %v1025_v47 = vsel %vm1015_vm2, %v908_v42, 0.0  ;;  %v1090_v48 = vmul.f32 %v908_v42, %v908_v42  ;;  %1228 = vst.msk [vmem:[%s2111_s11 + $0x28] sm:$0xff] %vm1015_vm2, %v908_v42  ;;  %v1128_v2 = vsel %vm1015_vm2, %v1091_v44, 0.0 }
 0x137   : > { %v1125_v46 = vadd.f32 %v1124_v43, %v1123_v41  ;;  %v1026_v51 = vadd.f32 %v1025_v47, %v1024_v31  ;;  %v1029_v3 = vsel %vm1015_vm2, %v916_v39, 0.0 }
 0x138   : > { %v1668_v52 = vpop.f32.mrb[24].mxu0  ;;  %v1760_v49 = vpop.f32.mrb[24].mxu1  ;;  %v1126_v37 = vsel %vm1015_vm2, %v1090_v48, 0.0 }
 0x139   : > { %v929_v55 = vadd.f32 %v1760_v49, %v1664_v23  ;;  %v1669_v57 = vpop.f32.mrb[25].mxu0  ;;  %v920_v58 = vpop.f32.mrb[25].mxu1  ;;  %v1028_v59 = vadd.f32 %v1027_v53, %v1026_v51  ;;  %v1127_v60 = vadd.f32 %v1126_v37, %v1125_v46 }
 0x13a   : > { %v1670_v61 = vadd.f32 %v1669_v57, %v1668_v52  ;;  %v921_v62 = vadd.f32 %v2113_v56, %v920_v58  ;;  %v1671_v63 = vpop.f32.mrb[26].mxu0  ;;  %v1761_v1 = vpop.f32.mrb[26].mxu1  ;;  %v1130_v56 = vsel %vm1015_vm2, %v1092_v54, 0.0 }
 0x13b   : > { %1233 = vst.msk [vmem:[%s2111_s11 + $0x50] sm:$0xff] %vm1015_vm2, %v929_v55  ;;  %v932_v4 = vadd.f32 %v1761_v1, %v1667_v40  ;;  %v1672_v5 = vpop.f32.mrb[27].mxu0  ;;  %v923_v6 = vpop.f32.mrb[27].mxu1  ;;  %v1129_v7 = vadd.f32 %v1128_v2, %v1127_v60  ;;  %v1030_v8 = vadd.f32 %v1029_v3, %v1028_v59  ;;  %v1095_v18 = vmul.f32 %v929_v55, %v929_v55 }
 0x13c   : > { %v1031_v10 = vsel %vm1015_vm2, %v921_v62, 0.0  ;;  %v1093_v11 = vmul.f32 %v921_v62, %v921_v62  ;;  %1231 = vst.msk [vmem:[%s2111_s11 + $0x40] sm:$0xff] %vm1015_vm2, %v921_v62  ;;  %v1673_v12 = vadd.f32 %v1672_v5, %v1671_v63  ;;  %v924_v17 = vadd.f32 %v2119_v0, %v923_v6 }
 0x13d   : > { %1234 = vst.msk [vmem:[%s2111_s11 + $0x58] sm:$0xff] %vm1015_vm2, %v932_v4  ;;  %v1032_v13 = vadd.f32 %v1031_v10, %v1030_v8  ;;  %v1131_v15 = vadd.f32 %v1130_v56, %v1129_v7  ;;  %v1035_v25 = vsel %vm1015_vm2, %v929_v55, 0.0  ;;  %v1096_v30 = vmul.f32 %v932_v4, %v932_v4 }
 0x13e   : > { %v1132_v16 = vsel %vm1015_vm2, %v1093_v11, 0.0  ;;  %v1033_v20 = vsel %vm1015_vm2, %v924_v17, 0.0  ;;  %v1094_v22 = vmul.f32 %v924_v17, %v924_v17  ;;  %1232 = vst.msk [vmem:[%s2111_s11 + $0x48] sm:$0xff] %vm1015_vm2, %v924_v17  ;;  %v1136_v39 = vsel %vm1015_vm2, %v1095_v18, 0.0 }
 0x13f   : > { %v1133_v19 = vadd.f32 %v1132_v16, %v1131_v15  ;;  %v1034_v27 = vadd.f32 %v1033_v20, %v1032_v13  ;;  %v1037_v40 = vsel %vm1015_vm2, %v932_v4, 0.0  ;;  %v1138_v53 = vsel %vm1015_vm2, %v1096_v30, 0.0 }
 0x140   : > { %v1674_v23 = vpop.f32.mrb[28].mxu0  ;;  %v1764_v24 = vpop.f32.mrb[28].mxu1  ;;  %v1134_v32 = vsel %vm1015_vm2, %v1094_v22, 0.0 }
 0x141   : > { %v1675_v28 = vpop.f32.mrb[29].mxu0  ;;  %v936_v29 = vpop.f32.mrb[29].mxu1  ;;  %v1036_v31 = vadd.f32 %v1035_v25, %v1034_v27  ;;  %v1135_v41 = vadd.f32 %v1134_v32, %v1133_v19 }
 0x142   : > { %v1676_v34 = vadd.f32 %v1675_v28, %v1674_v23  ;;  %v937_v0 = vadd.f32 %v1670_v61, %v936_v29  ;;  %v1677_v35 = vpop.f32.mrb[30].mxu0  ;;  %v1765_v36 = vpop.f32.mrb[30].mxu1 }
 0x143   : > { %v1678_v42 = vpop.f32.mrb[31].mxu0  ;;  %v939_v43 = vpop.f32.mrb[31].mxu1  ;;  %v1137_v51 = vadd.f32 %v1136_v39, %v1135_v41  ;;  %v1038_v52 = vadd.f32 %v1037_v40, %v1036_v31 }
 0x144   : > { %v945_v44 = vadd.f32 %v1764_v24, %v1676_v34  ;;  %v1039_v46 = vsel %vm1015_vm2, %v937_v0, 0.0  ;;  %v1097_v47 = vmul.f32 %v937_v0, %v937_v0  ;;  %1235 = vst.msk [vmem:[%s2111_s11 + $0x60] sm:$0xff] %vm1015_vm2, %v937_v0  ;;  %v1679_v48 = vadd.f32 %v1678_v42, %v1677_v35 }
 0x145   : > { %v940_v49 = vadd.f32 %v1673_v12, %v939_v43  ;;  %v1040_v55 = vadd.f32 %v1039_v46, %v1038_v52  ;;  %v1139_v57 = vadd.f32 %v1138_v53, %v1137_v51 }
 0x146   : > { %1237 = vst.msk [vmem:[%s2111_s11 + $0x70] sm:$0xff] %vm1015_vm2, %v945_v44  ;;  %v1140_v54 = vsel %vm1015_vm2, %v1097_v47, 0.0  ;;  %v948_v37 = vadd.f32 %v1765_v36, %v1679_v48  ;;  %v1099_v60 = vmul.f32 %v945_v44, %v945_v44  ;;  %v1043_v5 = vsel %vm1015_vm2, %v945_v44, 0.0 }
 0x147   : > { %v1041_v58 = vsel %vm1015_vm2, %v940_v49, 0.0  ;;  %v1098_v59 = vmul.f32 %v940_v49, %v940_v49  ;;  %1236 = vst.msk [vmem:[%s2111_s11 + $0x68] sm:$0xff] %vm1015_vm2, %v940_v49  ;;  %v1141_v63 = vadd.f32 %v1140_v54, %v1139_v57 }
 0x148   : > { %1238 = vst.msk [vmem:[%s2111_s11 + $0x78] sm:$0xff] %vm1015_vm2, %v948_v37  ;;  %v1680_v61 = vpop.f32.mrb[32].mxu0  ;;  %v1768_v62 = vpop.f32.mrb[32].mxu1  ;;  %v1042_v1 = vadd.f32 %v1041_v58, %v1040_v55  ;;  %v1100_v6 = vmul.f32 %v948_v37, %v948_v37  ;;  %v1144_v15 = vsel %vm1015_vm2, %v1099_v60, 0.0  ;;  %v1045_v16 = vsel %vm1015_vm2, %v948_v37, 0.0 }
 0x149   : > { %v1142_v2 = vsel %vm1015_vm2, %v1098_v59, 0.0  ;;  %v1681_v3 = vpop.f32.mrb[33].mxu0  ;;  %v952_v4 = vpop.f32.mrb[33].mxu1 }
 0x14a   : > { %v1682_v7 = vadd.f32 %v1681_v3, %v1680_v61  ;;  %v1683_v8 = vpop.f32.mrb[34].mxu0  ;;  %v1769_v10 = vpop.f32.mrb[34].mxu1  ;;  %v1044_v11 = vadd.f32 %v1043_v5, %v1042_v1  ;;  %v1143_v56 = vadd.f32 %v1142_v2, %v1141_v63  ;;  %v1146_v22 = vsel %vm1015_vm2, %v1100_v6, 0.0 }
 0x14b   : > { %v1684_v12 = vpop.f32.mrb[35].mxu0  ;;  %v955_v13 = vpop.f32.mrb[35].mxu1 }
 0x14c   : > { %v1685_v17 = vadd.f32 %v1684_v12, %v1683_v8  ;;  %v953_v18 = vadd.f32 %v1682_v7, %v952_v4  ;;  %v1145_v19 = vadd.f32 %v1144_v15, %v1143_v56  ;;  %v1046_v20 = vadd.f32 %v1045_v16, %v1044_v11 }
 0x14e   : > { %v1047_v23 = vsel %vm1015_vm2, %v953_v18, 0.0  ;;  %v1101_v24 = vmul.f32 %v953_v18, %v953_v18  ;;  %1239 = vst.msk [vmem:[%s2111_s11 + $0x80] sm:$0xff] %vm1015_vm2, %v953_v18  ;;  %v956_v25 = vadd.f32 %v1685_v17, %v955_v13  ;;  %v1147_v28 = vadd.f32 %v1146_v22, %v1145_v19 }
 0x14f   : > { %v1048_v27 = vadd.f32 %v1047_v23, %v1046_v20 }
 0x150   : > { %v1148_v29 = vsel %vm1015_vm2, %v1101_v24, 0.0  ;;  %v1049_v30 = vsel %vm1015_vm2, %v956_v25, 0.0  ;;  %v1102_v32 = vmul.f32 %v956_v25, %v956_v25  ;;  %1240 = vst.msk [vmem:[%s2111_s11 + $0x88] sm:$0xff] %vm1015_vm2, %v956_v25  ;;  %v1686_v34 = vpop.f32.mrb[36].mxu0  ;;  %v2191_v0 = vpop.f32.mrb[36].mxu1 }
 0x151   : > { %v1149_v35 = vadd.f32 %v1148_v29, %v1147_v28  ;;  %v1050_v36 = vadd.f32 %v1049_v30, %v1048_v27  ;;  %v1687_v39 = vpop.f32.mrb[37].mxu0  ;;  %v968_v40 = vpop.f32.mrb[37].mxu1 }
 0x152   : > { %v1150_v31 = vsel %vm1015_vm2, %v1102_v32, 0.0  ;;  %v1688_v41 = vadd.f32 %v1687_v39, %v1686_v34  ;;  %v1689_v42 = vpop.f32.mrb[38].mxu0  ;;  %v2194_v43 = vpop.f32.mrb[38].mxu1 }
 0x153   : > { %v1151_v44 = vadd.f32 %v1150_v31, %v1149_v35  ;;  %v1690_v46 = vpop.f32.mrb[39].mxu0  ;;  %v971_v47 = vpop.f32.mrb[39].mxu1 }
 0x154   : > { %v961_v48 = vadd.f32 %v1768_v62, %v1688_v41  ;;  %v1691_v51 = vadd.f32 %v1690_v46, %v1689_v42 }
 0x156   : > { %v1051_v52 = vsel %vm1015_vm2, %v961_v48, 0.0  ;;  %v1103_v49 = vmul.f32 %v961_v48, %v961_v48  ;;  %1241 = vst.msk [vmem:[%s2111_s11 + $0x90] sm:$0xff] %vm1015_vm2, %v961_v48  ;;  %v964_v53 = vadd.f32 %v1769_v10, %v1691_v51 }
 0x157   : > { %v1052_v54 = vadd.f32 %v1051_v52, %v1050_v36 }
 0x158   : > { %v1152_v37 = vsel %vm1015_vm2, %v1103_v49, 0.0  ;;  %v1053_v55 = vsel %vm1015_vm2, %v964_v53, 0.0  ;;  %v1104_v57 = vmul.f32 %v964_v53, %v964_v53  ;;  %1242 = vst.msk [vmem:[%s2111_s11 + $0x98] sm:$0xff] %vm1015_vm2, %v964_v53  ;;  %v1692_v58 = vpop.f32.mrb[40].mxu0  ;;  %v1776_v59 = vpop.f32.mrb[40].mxu1 }
 0x159   : > { %v1153_v60 = vadd.f32 %v1152_v37, %v1151_v44  ;;  %v1054_v61 = vadd.f32 %v1053_v55, %v1052_v54  ;;  %v993_v62 = vadd.f32 %v1776_v59, %v2093_v21  ;;  %v1693_v63 = vpop.f32.mrb[41].mxu0  ;;  %v984_v1 = vpop.f32.mrb[41].mxu1 }
 0x15a   : > { %v1154_v2 = vsel %vm1015_vm2, %v1104_v57, 0.0  ;;  %v1694_v3 = vadd.f32 %v1693_v63, %v1692_v58  ;;  %v2206_v4 = vadd.f32 %v2089_v9, %v984_v1  ;;  %v1695_v5 = vpop.f32.mrb[42].mxu0  ;;  %v1777_v6 = vpop.f32.mrb[42].mxu1 }
 0x15b   : > { %v1155_v7 = vadd.f32 %v1154_v2, %v1153_v60  ;;  %v2209_v8 = vsel %vm1015_vm2, %v993_v62, 0.0  ;;  %v1111_v10 = vmul.f32 %v993_v62, %v993_v62  ;;  %1249 = vst.msk [vmem:[%s2111_s11 + $0xd0] sm:$0xff] %vm1015_vm2, %v993_v62  ;;  %v996_v21 = vadd.f32 %v1777_v6, %v2095_v26  ;;  %v1696_v11 = vpop.f32.mrb[43].mxu0  ;;  %v987_v56 = vpop.f32.mrb[43].mxu1 }
 0x15c   : > { %v969_v12 = vadd.f32 %v1694_v3, %v968_v40  ;;  %v1109_v9 = vmul.f32 %v2206_v4, %v2206_v4  ;;  %1247 = vst.msk [vmem:[%s2111_s11 + $0xc0] sm:$0xff] %vm1015_vm2, %v2206_v4  ;;  %v1697_v13 = vadd.f32 %v1696_v11, %v1695_v5  ;;  %v988_v26 = vadd.f32 %v2091_v14, %v987_v56 }
 0x15d   : > { %v2220_v15 = vsel %vm1015_vm2, %v1111_v10, 0.0  ;;  %v2223_v16 = vsel %vm1015_vm2, %v996_v21, 0.0  ;;  %v1112_v17 = vmul.f32 %v996_v21, %v996_v21  ;;  %1250 = vst.msk [vmem:[%s2111_s11 + $0xd8] sm:$0xff] %vm1015_vm2, %v996_v21 }
 0x15e   : > { %v1055_v18 = vsel %vm1015_vm2, %v969_v12, 0.0  ;;  %v1105_v19 = vmul.f32 %v969_v12, %v969_v12  ;;  %1243 = vst.msk [vmem:[%s2111_s11 + $0xa0] sm:$0xff] %vm1015_vm2, %v969_v12  ;;  %v2232_v20 = vsel %vm1015_vm2, %v1109_v9, 0.0  ;;  %v972_v22 = vadd.f32 %v1697_v13, %v971_v47  ;;  %1248 = vst.msk [vmem:[%s2111_s11 + $0xc8] sm:$0xff] %vm1015_vm2, %v988_v26 }
 0x15f   : > { %v1056_v23 = vadd.f32 %v1055_v18, %v1054_v61  ;;  %v2235_v24 = vsel %vm1015_vm2, %v1112_v17, 0.0  ;;  %v1065_v25 = vsel %vm1015_vm2, %v988_v26, 0.0  ;;  %v1110_v27 = vmul.f32 %v988_v26, %v988_v26 }
 0x160   : > { %v1156_v14 = vsel %vm1015_vm2, %v1105_v19, 0.0  ;;  %v1057_v28 = vsel %vm1015_vm2, %v972_v22, 0.0  ;;  %v1106_v29 = vmul.f32 %v972_v22, %v972_v22  ;;  %1244 = vst.msk [vmem:[%s2111_s11 + $0xa8] sm:$0xff] %vm1015_vm2, %v972_v22  ;;  %v1698_v30 = vpop.f32.mrb[44].mxu0  ;;  %v1780_v32 = vpop.f32.mrb[44].mxu1 }
 0x161   : > { %v1157_v34 = vadd.f32 %v1156_v14, %v1155_v7  ;;  %v1058_v35 = vadd.f32 %v1057_v28, %v1056_v23  ;;  %v1166_v36 = vsel %vm1015_vm2, %v1110_v27, 0.0  ;;  %v1009_v39 = vadd.f32 %v1780_v32, %v2103_v45  ;;  %v1699_v40 = vpop.f32.mrb[45].mxu0  ;;  %v1000_v31 = vpop.f32.mrb[45].mxu1 }
 0x162   : > { %v1158_v41 = vsel %vm1015_vm2, %v1106_v29, 0.0  ;;  %v1700_v42 = vadd.f32 %v1699_v40, %v1698_v30  ;;  %v1001_v44 = vadd.f32 %v2097_v33, %v1000_v31  ;;  %v1701_v46 = vpop.f32.mrb[46].mxu0  ;;  %v1781_v47 = vpop.f32.mrb[46].mxu1 }
 0x163   : > { %v1159_v48 = vadd.f32 %v1158_v41, %v1157_v34  ;;  %v1075_v51 = vsel %vm1015_vm2, %v1009_v39, 0.0  ;;  %v1115_v52 = vmul.f32 %v1009_v39, %v1009_v39  ;;  %1253 = vst.msk [vmem:[%s2111_s11 + $0xf0] sm:$0xff] %vm1015_vm2, %v1009_v39  ;;  %v1012_v45 = vadd.f32 %v1781_v47, %v2105_v50  ;;  %v1702_v49 = vpop.f32.mrb[47].mxu0  ;;  %v1003_v53 = vpop.f32.mrb[47].mxu1 }
 0x164   : > { %v977_v54 = vadd.f32 %v2191_v0, %v1700_v42  ;;  %v1071_v37 = vsel %vm1015_vm2, %v1001_v44, 0.0  ;;  %v1113_v55 = vmul.f32 %v1001_v44, %v1001_v44  ;;  %1251 = vst.msk [vmem:[%s2111_s11 + $0xe0] sm:$0xff] %vm1015_vm2, %v1001_v44  ;;  %v1703_v33 = vadd.f32 %v1702_v49, %v1701_v46 }
 0x165   : > { %v1176_v57 = vsel %vm1015_vm2, %v1115_v52, 0.0  ;;  %v1077_v58 = vsel %vm1015_vm2, %v1012_v45, 0.0  ;;  %v1116_v59 = vmul.f32 %v1012_v45, %v1012_v45  ;;  %1254 = vst.msk [vmem:[%s2111_s11 + $0xf8] sm:$0xff] %vm1015_vm2, %v1012_v45  ;;  %v1004_v50 = vadd.f32 %v2101_v38, %v1003_v53  ;;  %v1218_v45 = vld [vmem:[#allocation3] sm:$0x1] }
 0x166   : > { %v1059_v60 = vsel %vm1015_vm2, %v977_v54, 0.0  ;;  %v1107_v0 = vmul.f32 %v977_v54, %v977_v54  ;;  %1245 = vst.msk [vmem:[%s2111_s11 + $0xb0] sm:$0xff] %vm1015_vm2, %v977_v54  ;;  %v1172_v61 = vsel %vm1015_vm2, %v1113_v55, 0.0  ;;  %v980_v62 = vadd.f32 %v2194_v43, %v1703_v33  ;;  %v1214_v53 = vld [vmem:[#allocation2] sm:$0x1] }
 0x167   : > { %v1060_v63 = vadd.f32 %v1059_v60, %v1058_v35  ;;  %v1178_v1 = vsel %vm1015_vm2, %v1116_v59, 0.0  ;;  %v1073_v2 = vsel %vm1015_vm2, %v1004_v50, 0.0  ;;  %v1114_v3 = vmul.f32 %v1004_v50, %v1004_v50  ;;  %1252 = vst.msk [vmem:[%s2111_s11 + $0xe8] sm:$0xff] %vm1015_vm2, %v1004_v50 }
 0x168   : > { %v1160_v5 = vsel %vm1015_vm2, %v1107_v0, 0.0  ;;  %v1061_v38 = vsel %vm1015_vm2, %v980_v62, 0.0  ;;  %v1108_v6 = vmul.f32 %v980_v62, %v980_v62  ;;  %1246 = vst.msk [vmem:[%s2111_s11 + $0xb8] sm:$0xff] %vm1015_vm2, %v980_v62  ;;  %v1063_v43 = vsel %vm1015_vm2, %v2206_v4, 0.0 }
 0x169   : > { %v1161_v7 = vadd.f32 %v1160_v5, %v1159_v48  ;;  %v1062_v10 = vadd.f32 %v1061_v38, %v1060_v63  ;;  %v1174_v21 = vsel %vm1015_vm2, %v1114_v3, 0.0  ;;  %v1274_v63 = vlaneseq (!%p1612_p5) }
 0x16a   : > { %v1162_v11 = vsel %vm1015_vm2, %v1108_v6, 0.0  ;;  %v1270_v6 = vld [vmem:[%s2488_s3] sm:$0x1] (!%p1612_p5) }
 0x16b   : > { %v1064_v56 = vadd.f32 %v1063_v43, %v1062_v10  ;;  %v1163_v12 = vadd.f32 %v1162_v11, %v1161_v7 }
 0x16d   : > { %v1066_v9 = vadd.f32 %v1065_v25, %v1064_v56  ;;  %v1165_v13 = vadd.f32 %v2232_v20, %v1163_v12 }
 0x16f   : > { %v1167_v17 = vadd.f32 %v1166_v36, %v1165_v13  ;;  %v1068_v26 = vadd.f32 %v2209_v8, %v1066_v9 }
 0x171   : > { %v1070_v18 = vadd.f32 %v2223_v16, %v1068_v26  ;;  %v1169_v19 = vadd.f32 %v2220_v15, %v1167_v17 }
 0x173   : > { %v1072_v22 = vadd.f32 %v1071_v37, %v1070_v18  ;;  %v1171_v23 = vadd.f32 %v2235_v24, %v1169_v19 }
 0x175   : > { %v1074_v27 = vadd.f32 %v1073_v2, %v1072_v22  ;;  %v1173_v14 = vadd.f32 %v1172_v61, %v1171_v23  ;;  %v1266_v2 = vld [vmem:[%s2487_s2] sm:$0x1] (!%p1612_p5) }
 0x177   : > { %v1076_v4 = vadd.f32 %v1075_v51, %v1074_v27  ;;  %v1175_v28 = vadd.f32 %v1174_v21, %v1173_v14 }
 0x179   : > { %v1078_v29 = vadd.f32 %v1077_v58, %v1076_v4  ;;  %v1177_v30 = vadd.f32 %v1176_v57, %v1175_v28 }
 0x17b   : > { %v1079_v32 = vrot.slane %v1078_v29, 4  ;;  %v1179_v25 = vadd.f32 %v1178_v1, %v1177_v30  ;;  %v1275_v1 = vshrl.u32 (!%p1612_p5), %v1274_v63, 7 }
 0x17d   : > { %v1080_v34 = vadd.f32 %v1079_v32, %v1078_v29  ;;  %v1180_v20 = vrot.slane %v1179_v25, 4  ;;  %v2287_v3 = vsub.s32 (!%p1612_p5), 0, %v1275_v1 }
 0x17f   : > { %v1081_v35 = vrot.slane %v1080_v34, 2  ;;  %v1181_v36 = vadd.f32 %v1180_v20, %v1179_v25 }
 0x181   : > { %v1082_v8 = vadd.f32 %v1081_v35, %v1080_v34  ;;  %v1182_v39 = vrot.slane %v1181_v36, 2 }
 0x183   : > { %v1083_v16 = vrot.slane %v1082_v8, 1  ;;  %v1183_v40 = vadd.f32 %v1182_v39, %v1181_v36 }
 0x185   : > { %v1084_v15 = vadd.f32 %v1083_v16, %v1082_v8  ;;  %v1184_v31 = vrot.slane %v1183_v40, 1 }
 0x187   : > { %1198 = vrot.lane.b32.xlu1 %v1084_v15, %s1923_s12  ;;  %1189 = vrot.lane.b32.xlu0 %v1084_v15, %s1924_s13  ;;  %v1185_v24 = vadd.f32 %v1184_v31, %v1183_v40 }
 0x18b   : > { %1202 = vrot.lane.b32.xlu1 %v1185_v24, %s1923_s12  ;;  %1194 = vrot.lane.b32.xlu0 %v1185_v24, %s1924_s13 }
 0x18f   : > { %1210 = vrot.lane.b32.xlu1 %v1185_v24, %s1925_s14  ;;  %1206 = vrot.lane.b32.xlu0 %v1084_v15, %s1925_s14 }
 0x1f9   : > { %v1199_v41 = vpop.permute.xlu1 %1198  ;;  %v1190_v42 = vpop.permute.xlu0 %1189 }
 0x1fa   : > { %v1192_v44 = vadd.f32 %v1190_v42, %v1084_v15 }
 0x1fc   : > { %v1201_v52 = vadd.f32 %v1199_v41, %v1192_v44 }
 0x1fd   : > { %v1203_v46 = vpop.permute.xlu1 %1202  ;;  %v1195_v47 = vpop.permute.xlu0 %1194 }
 0x1fe   : > { %v1197_v48 = vadd.f32 %v1195_v47, %v1185_v24 }
 0x200   : > { %v1205_v51 = vadd.f32 %v1203_v46, %v1197_v48  ;;  %1258 = sbr.rel (%p1612_p5) target bundleno = 705 (0x2c1), region = 44 }
 0x201   : > { %v1211_v49 = vpop.permute.xlu1 %1210  ;;  %v1207_v54 = vpop.permute.xlu0 %1206 }
 0x202   : > { %v1213_v37 = vadd.f32 %v1211_v49, %v1205_v51  ;;  %v1209_v55 = vadd.f32 %v1207_v54, %v1201_v52 }
 0x204   : > { %v1219_v33 = vadd.f32 %v1218_v45, %v1213_v37  ;;  %v1215_v57 = vadd.f32 %v1214_v53, %v1209_v55 }
 0x206   : > { %1220 = vst.msk [vmem:[#allocation3] sm:$0x1] %vm1216_vm3, %v1219_v33  ;;  %1217 = vst.msk [vmem:[#allocation2] sm:$0x1] %vm1216_vm3, %v1215_v57 }
 0x20d   : > { %v1259_v58 = vld [vmem:[#allocation2] sm:$0x1]  ;;  %v1262_v59 = vld [vmem:[#allocation3] sm:$0x1] }
 0x20e   : > { %v1261_v50 = vmul.f32 0.00048828125, %v1259_v58  ;;  %v1263_v60 = vmul.f32 0.00048828125, %v1262_v59 }
 0x210   : > { %v1264_v0 = vmul.f32 %v1261_v50, %v1261_v50 }
 0x212   : > { %v1265_v61 = vsub.f32 %v1263_v60, %v1264_v0 }
 0x214   : > { %v1267_v62 = vadd.f32 1e-05, %v1265_v61 }
 0x216   : > { %1904 = vrsqrt.f32 %v1267_v62 }
 0x220   : > { %v1905_v5 = vpop.eup %1904 }
 0x221   : > { %v1269_v38 = vmul.f32 %v1905_v5, %v1266_v2 }
 0x223   : > { %v1277_v7 = vrot.slane %v1269_v38, %v2287_v3  ;;  %v1271_v10 = vmul.f32 %v1269_v38, %v1261_v50 }
 0x225   : > { %1281 = vrot.lane.b32.xlu1 %v1277_v7, %s1926_s20  ;;  %1278 = vrot.lane.b32.xlu0 %v1277_v7, %s1927_s22  ;;  %v1272_v21 = vsub.f32 %v1270_v6, %v1271_v10 }
 0x227   : > { %v1296_v43 = vrot.slane %v1272_v21, %v2287_v3 }
 0x229   : > { %1300 = vrot.lane.b32.xlu1 %v1296_v43, %s1926_s20  ;;  %1297 = vrot.lane.b32.xlu0 %v1296_v43, %s1927_s22 }
 0x22d   : > { %1303 = vrot.lane.b32.xlu1 %v1296_v43, %s1928_s23  ;;  %1284 = vrot.lane.b32.xlu0 %v1277_v7, %s1928_s23 }
 0x297   : > { %v1282_v11 = vpop.permute.xlu1 %1281  ;;  %v1279_v56 = vpop.permute.xlu0 %1278 }
 0x298   : > { %v1288_v13 = vsel %vm1287_vm4, %v1269_v38, %v1279_v56 }
 0x299   : > { %v1289_v26 = vsel %vm644_vm1, %v1288_v13, %v1282_v11 }
 0x29b   : > { %v1301_v12 = vpop.permute.xlu1 %1300  ;;  %v1298_v9 = vpop.permute.xlu0 %1297 }
 0x29c   : > { %v1306_v17 = vsel %vm1287_vm4, %v1272_v21, %v1298_v9 }
 0x29d   : > { %v1307_v18 = vsel %vm644_vm1, %v1306_v17, %v1301_v12 }
 0x29f   : > { %v1304_v19 = vpop.permute.xlu1 %1303  ;;  %v1285_v22 = vpop.permute.xlu0 %1284 }
 0x2a0   : > { %v2296_v23 = vsel %vm1290_vm5, %v1307_v18, %v1304_v19  ;;  %v2298_v27 = vsel %vm1290_vm5, %v1289_v26, %v1285_v22 }
 0x2a1 LB: >> { %v2307_v14 = vrot.slane %v2298_v27, %v2287_v3  ;;  %s1613_s25 = sshll.u32 %s1920_s24, 8  ;;  %v2317_v4 = vrot.slane %v2296_v23, %v2287_v3  ;;  %s1314_s24 = sadd.s32 1, %s1920_s24   ;;  %s1920_s24 = sphi %s2300_s24, %s1314_s24  }
 0x2a2   : >> { %s2313_s28 = scalar_lea.vmem %s2489_s4, %s1613_s25  ;;  %p1311_p6 = scmp.ge.s32.totalorder %s1314_s24, 2  }
 0x2a3   : >> { %v1317_v28 = vld [vmem:[%s2313_s28] sm:$0xff]  ;;  %v1318_v29 = vld [vmem:[%s2313_s28 + $0x8] sm:$0xff]  ;;  %v1319_v30 = vld [vmem:[%s2313_s28 + $0x10] sm:$0xff] }
 0x2a4   : >> { %v1353_v32 = vmul.f32 %v2307_v14, %v1317_v28  ;;  %v1354_v25 = vmul.f32 %v2307_v14, %v1318_v29  ;;  %v1355_v34 = vmul.f32 %v2307_v14, %v1319_v30  ;;  %v1320_v20 = vld [vmem:[%s2313_s28 + $0x18] sm:$0xff]  ;;  %v1321_v35 = vld [vmem:[%s2313_s28 + $0x20] sm:$0xff]  ;;  %v1322_v36 = vld [vmem:[%s2313_s28 + $0x28] sm:$0xff] }
 0x2a5   : >> { %v1356_v8 = vmul.f32 %v2307_v14, %v1320_v20  ;;  %v1357_v39 = vmul.f32 %v2307_v14, %v1321_v35  ;;  %v1358_v16 = vmul.f32 %v2307_v14, %v1322_v36  ;;  %v1323_v40 = vld [vmem:[%s2313_s28 + $0x30] sm:$0xff]  ;;  %v1324_v15 = vld [vmem:[%s2313_s28 + $0x38] sm:$0xff]  ;;  %v1325_v51 = vld [vmem:[%s2313_s28 + $0x40] sm:$0xff] }
 0x2a6   : >> { %v1389_v31 = vadd.f32 %v2317_v4, %v1353_v32  ;;  %v1390_v24 = vadd.f32 %v2317_v4, %v1354_v25  ;;  %v1391_v41 = vadd.f32 %v2317_v4, %v1355_v34  ;;  %v1359_v42 = vmul.f32 %v2307_v14, %v1323_v40  ;;  %v1326_v52 = vld [vmem:[%s2313_s28 + $0x48] sm:$0xff]  ;;  %v1327_v45 = vld [vmem:[%s2313_s28 + $0x50] sm:$0xff]  ;;  %v1328_v55 = vld [vmem:[%s2313_s28 + $0x58] sm:$0xff] }
 0x2a7   : >> { %v1392_v44 = vadd.f32 %v2317_v4, %v1356_v8  ;;  %v1393_v46 = vadd.f32 %v2317_v4, %v1357_v39  ;;  %v1394_v47 = vadd.f32 %v2317_v4, %v1358_v16  ;;  %v1360_v48 = vmul.f32 %v2307_v14, %v1324_v15  ;;  %v1329_v33 = vld [vmem:[%s2313_s28 + $0x60] sm:$0xff]  ;;  %v1330_v57 = vld [vmem:[%s2313_s28 + $0x68] sm:$0xff]  ;;  %v1331_v0 = vld [vmem:[%s2313_s28 + $0x70] sm:$0xff] }
 0x2a8   : >> { %v1421_v49 = vmax.f32 %v1389_v31, 0.0  ;;  %v1422_v53 = vmax.f32 %v1390_v24, 0.0  ;;  %v1423_v54 = vmax.f32 %v1391_v41, 0.0  ;;  %v1395_v37 = vadd.f32 %v2317_v4, %v1359_v42  ;;  %v1332_v2 = vld [vmem:[%s2313_s28 + $0x78] sm:$0xff]  ;;  %v1333_v17 = vld [vmem:[%s2313_s28 + $0x80] sm:$0xff]  ;;  %v1334_v26 = vld [vmem:[%s2313_s28 + $0x88] sm:$0xff] }
 0x2a9   : >> { %v1424_v58 = vmax.f32 %v1392_v44, 0.0  ;;  %v1425_v59 = vmax.f32 %v1393_v46, 0.0  ;;  %v1426_v50 = vmax.f32 %v1394_v47, 0.0  ;;  %v1396_v60 = vadd.f32 %v2317_v4, %v1360_v48  ;;  %v1335_v18 = vld [vmem:[%s2313_s28 + $0x90] sm:$0xff]  ;;  %v1336_v30 = vld [vmem:[%s2313_s28 + $0x98] sm:$0xff]  ;;  %v1337_v32 = vld [vmem:[%s2313_s28 + $0xa0] sm:$0xff] }
 0x2aa   : >> { %1453 = vst.msk [vmem:[%s2313_s28] sm:$0xff] %vm1015_vm2, %v1421_v49  ;;  %1454 = vst.msk [vmem:[%s2313_s28 + $0x8] sm:$0xff] %vm1015_vm2, %v1422_v53  ;;  %v1427_v61 = vmax.f32 %v1395_v37, 0.0  ;;  %v1361_v62 = vmul.f32 %v2307_v14, %v1325_v51  ;;  %v1362_v63 = vmul.f32 %v2307_v14, %v1326_v52  ;;  %v1363_v1 = vmul.f32 %v2307_v14, %v1327_v45  ;;  %v1338_v25 = vld [vmem:[%s2313_s28 + $0xa8] sm:$0xff]  ;;  %v1339_v8 = vld [vmem:[%s2313_s28 + $0xb0] sm:$0xff] }
 0x2ab   : >> { %1455 = vst.msk [vmem:[%s2313_s28 + $0x10] sm:$0xff] %vm1015_vm2, %v1423_v54  ;;  %1456 = vst.msk [vmem:[%s2313_s28 + $0x18] sm:$0xff] %vm1015_vm2, %v1424_v58  ;;  %v1428_v5 = vmax.f32 %v1396_v60, 0.0  ;;  %v1364_v38 = vmul.f32 %v2307_v14, %v1328_v55  ;;  %v1365_v6 = vmul.f32 %v2307_v14, %v1329_v33  ;;  %v1366_v7 = vmul.f32 %v2307_v14, %v1330_v57  ;;  %v1340_v31 = vld [vmem:[%s2313_s28 + $0xb8] sm:$0xff]  ;;  %v1341_v54 = vld [vmem:[%s2313_s28 + $0xc0] sm:$0xff] }
 0x2ac   : >> { %1457 = vst.msk [vmem:[%s2313_s28 + $0x20] sm:$0xff] %vm1015_vm2, %v1425_v59  ;;  %1458 = vst.msk [vmem:[%s2313_s28 + $0x28] sm:$0xff] %vm1015_vm2, %v1426_v50  ;;  %v1397_v10 = vadd.f32 %v2317_v4, %v1361_v62  ;;  %v1398_v21 = vadd.f32 %v2317_v4, %v1362_v63  ;;  %v1399_v43 = vadd.f32 %v2317_v4, %v1363_v1  ;;  %v1342_v37 = vld [vmem:[%s2313_s28 + $0xc8] sm:$0xff]  ;;  %v1343_v55 = vld [vmem:[%s2313_s28 + $0xd0] sm:$0xff] }
 0x2ad   : >> { %1459 = vst.msk [vmem:[%s2313_s28 + $0x30] sm:$0xff] %vm1015_vm2, %v1427_v61  ;;  %v1367_v11 = vmul.f32 %v2307_v14, %v1331_v0  ;;  %1460 = vst.msk [vmem:[%s2313_s28 + $0x38] sm:$0xff] %vm1015_vm2, %v1428_v5  ;;  %v1400_v56 = vadd.f32 %v2317_v4, %v1364_v38  ;;  %v1401_v12 = vadd.f32 %v2317_v4, %v1365_v6  ;;  %v1344_v50 = vld [vmem:[%s2313_s28 + $0xd8] sm:$0xff]  ;;  %v1345_v60 = vld [vmem:[%s2313_s28 + $0xe0] sm:$0xff] }
 0x2ae   : >> { %v1402_v9 = vadd.f32 %v2317_v4, %v1366_v7  ;;  %v1368_v13 = vmul.f32 %v2307_v14, %v1332_v2  ;;  %v1429_v19 = vmax.f32 %v1397_v10, 0.0  ;;  %v1430_v22 = vmax.f32 %v1398_v21, 0.0  ;;  %v1346_v0 = vld [vmem:[%s2313_s28 + $0xe8] sm:$0xff]  ;;  %v1347_v2 = vld [vmem:[%s2313_s28 + $0xf0] sm:$0xff]  ;;  %v1348_v10 = vld [vmem:[%s2313_s28 + $0xf8] sm:$0xff] }
 0x2af   : >> { %v1431_v28 = vmax.f32 %v1399_v43, 0.0  ;;  %v1403_v29 = vadd.f32 %v2317_v4, %v1367_v11  ;;  %v1432_v34 = vmax.f32 %v1400_v56, 0.0  ;;  %v1433_v20 = vmax.f32 %v1401_v12, 0.0 }
 0x2b0   : >> { %v1434_v35 = vmax.f32 %v1402_v9, 0.0  ;;  %v1404_v36 = vadd.f32 %v2317_v4, %v1368_v13  ;;  %1461 = vst.msk [vmem:[%s2313_s28 + $0x40] sm:$0xff] %vm1015_vm2, %v1429_v19  ;;  %1462 = vst.msk [vmem:[%s2313_s28 + $0x48] sm:$0xff] %vm1015_vm2, %v1430_v22  ;;  %v1369_v16 = vmul.f32 %v2307_v14, %v1333_v17  ;;  %v1370_v40 = vmul.f32 %v2307_v14, %v1334_v26 }
 0x2b1   : >> { %1463 = vst.msk [vmem:[%s2313_s28 + $0x50] sm:$0xff] %vm1015_vm2, %v1431_v28  ;;  %v1435_v39 = vmax.f32 %v1403_v29, 0.0  ;;  %v1371_v15 = vmul.f32 %v2307_v14, %v1335_v18  ;;  %1464 = vst.msk [vmem:[%s2313_s28 + $0x58] sm:$0xff] %vm1015_vm2, %v1432_v34  ;;  %v1372_v41 = vmul.f32 %v2307_v14, %v1336_v30  ;;  %v1373_v42 = vmul.f32 %v2307_v14, %v1337_v32 }
 0x2b2   : >> { %1465 = vst.msk [vmem:[%s2313_s28 + $0x60] sm:$0xff] %vm1015_vm2, %v1433_v20  ;;  %1466 = vst.msk [vmem:[%s2313_s28 + $0x68] sm:$0xff] %vm1015_vm2, %v1434_v35  ;;  %v1436_v24 = vmax.f32 %v1404_v36, 0.0  ;;  %v1374_v44 = vmul.f32 %v2307_v14, %v1338_v25  ;;  %v1405_v46 = vadd.f32 %v2317_v4, %v1369_v16  ;;  %v1406_v47 = vadd.f32 %v2317_v4, %v1370_v40 }
 0x2b3   : >> { %1467 = vst.msk [vmem:[%s2313_s28 + $0x70] sm:$0xff] %vm1015_vm2, %v1435_v39  ;;  %v1407_v48 = vadd.f32 %v2317_v4, %v1371_v15  ;;  %v1375_v51 = vmul.f32 %v2307_v14, %v1339_v8  ;;  %v1408_v52 = vadd.f32 %v2317_v4, %v1372_v41  ;;  %v1409_v45 = vadd.f32 %v2317_v4, %v1373_v42 }
 0x2b4   : >> { %1468 = vst.msk [vmem:[%s2313_s28 + $0x78] sm:$0xff] %vm1015_vm2, %v1436_v24  ;;  %v1410_v49 = vadd.f32 %v2317_v4, %v1374_v44  ;;  %v1376_v53 = vmul.f32 %v2307_v14, %v1340_v31  ;;  %v1437_v33 = vmax.f32 %v1405_v46, 0.0  ;;  %v1438_v57 = vmax.f32 %v1406_v47, 0.0 }
 0x2b5   : >> { %v1439_v58 = vmax.f32 %v1407_v48, 0.0  ;;  %v1411_v59 = vadd.f32 %v2317_v4, %v1375_v51  ;;  %v1440_v61 = vmax.f32 %v1408_v52, 0.0  ;;  %v1441_v62 = vmax.f32 %v1409_v45, 0.0 }
 0x2b6   : >> { %v1442_v63 = vmax.f32 %v1410_v49, 0.0  ;;  %v1412_v1 = vadd.f32 %v2317_v4, %v1376_v53  ;;  %1469 = vst.msk [vmem:[%s2313_s28 + $0x80] sm:$0xff] %vm1015_vm2, %v1437_v33  ;;  %1470 = vst.msk [vmem:[%s2313_s28 + $0x88] sm:$0xff] %vm1015_vm2, %v1438_v57  ;;  %v1377_v38 = vmul.f32 %v2307_v14, %v1341_v54  ;;  %v1378_v6 = vmul.f32 %v2307_v14, %v1342_v37 }
 0x2b7   : >> { %1471 = vst.msk [vmem:[%s2313_s28 + $0x90] sm:$0xff] %vm1015_vm2, %v1439_v58  ;;  %v1443_v5 = vmax.f32 %v1411_v59, 0.0  ;;  %v1379_v7 = vmul.f32 %v2307_v14, %v1343_v55  ;;  %1472 = vst.msk [vmem:[%s2313_s28 + $0x98] sm:$0xff] %vm1015_vm2, %v1440_v61  ;;  %v1380_v43 = vmul.f32 %v2307_v14, %v1344_v50  ;;  %v1381_v11 = vmul.f32 %v2307_v14, %v1345_v60 }
 0x2b8   : >> { %1473 = vst.msk [vmem:[%s2313_s28 + $0xa0] sm:$0xff] %vm1015_vm2, %v1441_v62  ;;  %1474 = vst.msk [vmem:[%s2313_s28 + $0xa8] sm:$0xff] %vm1015_vm2, %v1442_v63  ;;  %v1444_v21 = vmax.f32 %v1412_v1, 0.0  ;;  %v1382_v56 = vmul.f32 %v2307_v14, %v1346_v0  ;;  %v1413_v12 = vadd.f32 %v2317_v4, %v1377_v38  ;;  %v1414_v9 = vadd.f32 %v2317_v4, %v1378_v6 }
 0x2b9   : >> { %1475 = vst.msk [vmem:[%s2313_s28 + $0xb0] sm:$0xff] %vm1015_vm2, %v1443_v5  ;;  %v1415_v13 = vadd.f32 %v2317_v4, %v1379_v7  ;;  %v1383_v17 = vmul.f32 %v2307_v14, %v1347_v2  ;;  %v1416_v26 = vadd.f32 %v2317_v4, %v1380_v43  ;;  %v1417_v18 = vadd.f32 %v2317_v4, %v1381_v11 }
 0x2ba   : >> { %1476 = vst.msk [vmem:[%s2313_s28 + $0xb8] sm:$0xff] %vm1015_vm2, %v1444_v21  ;;  %v1418_v19 = vadd.f32 %v2317_v4, %v1382_v56  ;;  %v1384_v22 = vmul.f32 %v2307_v14, %v1348_v10  ;;  %v1445_v28 = vmax.f32 %v1413_v12, 0.0  ;;  %v1446_v29 = vmax.f32 %v1414_v9, 0.0  ;;  %1313 = sbr.rel (!%p1311_p6) target bundleno = 673 (0x2a1), region = 79 }
 0x2bb   : >> { %v1447_v30 = vmax.f32 %v1415_v13, 0.0  ;;  %v1419_v32 = vadd.f32 %v2317_v4, %v1383_v17  ;;  %v1448_v25 = vmax.f32 %v1416_v26, 0.0  ;;  %v1449_v34 = vmax.f32 %v1417_v18, 0.0 }
 0x2bc   : >> { %v1450_v20 = vmax.f32 %v1418_v19, 0.0  ;;  %v1420_v35 = vadd.f32 %v2317_v4, %v1384_v22  ;;  %1477 = vst.msk [vmem:[%s2313_s28 + $0xc0] sm:$0xff] %vm1015_vm2, %v1445_v28  ;;  %1478 = vst.msk [vmem:[%s2313_s28 + $0xc8] sm:$0xff] %vm1015_vm2, %v1446_v29 }
 0x2bd   : >> { %1479 = vst.msk [vmem:[%s2313_s28 + $0xd0] sm:$0xff] %vm1015_vm2, %v1447_v30  ;;  %v1451_v36 = vmax.f32 %v1419_v32, 0.0  ;;  %1480 = vst.msk [vmem:[%s2313_s28 + $0xd8] sm:$0xff] %vm1015_vm2, %v1448_v25 }
 0x2be   : >> { %1481 = vst.msk [vmem:[%s2313_s28 + $0xe0] sm:$0xff] %vm1015_vm2, %v1449_v34  ;;  %1482 = vst.msk [vmem:[%s2313_s28 + $0xe8] sm:$0xff] %vm1015_vm2, %v1450_v20  ;;  %v1452_v14 = vmax.f32 %v1420_v35, 0.0 }
 0x2bf   : >> { %1483 = vst.msk [vmem:[%s2313_s28 + $0xf0] sm:$0xff] %vm1015_vm2, %v1451_v36 }
 0x2c0   : >> { %1484 = vst.msk [vmem:[%s2313_s28 + $0xf8] sm:$0xff] %vm1015_vm2, %v1452_v14 }
 0x2c1 PF: > { %s14_s15 = sadd.s32 1, %s1916_s15  }
 0x2c2   : > { %p11_p7 = scmp.ge.s32.totalorder %s14_s15, 4  }
 0x2c4   :  { %13 = sbr.rel (!%p11_p7) target bundleno = 1 (0x1), region = 90 }

// kernel: generator_forward.9
= control target key start
LH: loop header
LB: loop body
LE: loop exit
PB: predicated region body
PF: predicated region fallthrough
CT: control target
= control target key end

     0   :  { %s652_s12 = smov 0   ;;  %s654_s13 = smov 0   ;;  %s750_s0 = inlined_call_operand.vmem [shape: bf16[4,144], index: 0, kind: input, shape index: {}]   ;;  %s751_s1 = inlined_call_operand.vmem [shape: bf16[144,2048], index: 1, kind: input, shape index: {}]   ;;  %s752_s2 = inlined_call_operand.vmem [shape: f32[4,1], index: 2, kind: input, shape index: {}]   ;;  %s753_s3 = inlined_call_operand.vmem [shape: f32[4,2048], index: 3, kind: output, shape index: {}]  }
   0x1   :  { %s656_s14 = smov 0  }
   0x2 LB: > { %s516_s15 = sadd.s32 4294967295, %s629_s14   ;;  %s669_s16 = sadd.s32 1, %s629_s14   ;;  %s629_s14 = sphi %s656_s14, %s756_s14   ;;  %s625_s13 = sphi %s654_s13, %s755_s13   ;;  %s621_s12 = sphi %s652_s12, %s754_s12  }
   0x3   : > { %s38_s17 = ssub.s32 %s629_s14, %s669_s16  ;;  %s41_s18 = sadd.s32 1, %s625_s13 }
   0x4   : > { %p39_p0 = scmp.eq.s32.totalorder %s38_s17, 0  ;;  %p48_p1 = scmp.ne.s32.totalorder %s625_s13, %s621_s12 }
   0x5   : > { %p49_p2 = scmp.eq.s32.totalorder %s629_s14, 0  ;;  %p519_p4 = scmp.ge.s32.totalorder %s629_s14, 8 }
   0x6   : > { %s678_s19 = scalar_select %p39_p0, %s625_s13, %s41_s18  }
   0x7   : > { %p50_p3 = por %p49_p2, %p48_p1  ;;  %127 = sbr.rel (%p519_p4) target bundleno = 36 (0x24), region = 24 }
   0xe   : > { %130 = sbr.rel (!%p50_p3) target bundleno = 36 (0x24), region = 28  ;;  %s132_s20 = sand.u32 (%p50_p3), 1, %s625_s13  }
   0xf   : > { %s547_s21 = sshll.u32 (%p50_p3), %s629_s14, 3  ;;  %s548_s22 = smul.u32 (%p50_p3), 144, %s132_s20 }
  0x10   : > { %s686_s25 = scalar_lea.vmem (%p50_p3), %s751_s1, %s547_s21 }
  0x11   : > { %v199_v0 = vld [vmem:[%s686_s25] sm:$0xff] (%p50_p3)  ;;  %s134_s26 = scalar_lea.vmem (%p50_p3), [#allocation2], %s548_s22 }
  0x12   : > { %v201_v1 = vld [vmem:[%s686_s25 + $0x40] sm:$0xff] (%p50_p3)  ;;  %200 = vst [vmem:[%s134_s26] sm:$0xff] (%p50_p3), %v199_v0 }
  0x13   : > { %v203_v2 = vld [vmem:[%s686_s25 + $0x80] sm:$0xff] (%p50_p3)  ;;  %202 = vst [vmem:[%s134_s26 + $0x8] sm:$0xff] (%p50_p3), %v201_v1 }
  0x14   : > { %v205_v3 = vld [vmem:[%s686_s25 + $0xc0] sm:$0xff] (%p50_p3)  ;;  %204 = vst [vmem:[%s134_s26 + $0x10] sm:$0xff] (%p50_p3), %v203_v2 }
  0x15   : > { %v207_v4 = vld [vmem:[%s686_s25 + $0x100] sm:$0xff]  ;;  %206 = vst [vmem:[%s134_s26 + $0x18] sm:$0xff] %v205_v3 }
  0x16   : > { %v209_v5 = vld [vmem:[%s686_s25 + $0x140] sm:$0xff]  ;;  %208 = vst [vmem:[%s134_s26 + $0x20] sm:$0xff] %v207_v4 }
  0x17   : > { %210 = vst [vmem:[%s134_s26 + $0x28] sm:$0xff] %v209_v5  ;;  %v211_v6 = vld [vmem:[%s686_s25 + $0x180] sm:$0xff] }
  0x18   : > { %v213_v7 = vld [vmem:[%s686_s25 + $0x1c0] sm:$0xff]  ;;  %212 = vst [vmem:[%s134_s26 + $0x30] sm:$0xff] %v211_v6 }
  0x19   : > { %v215_v8 = vld [vmem:[%s686_s25 + $0x200] sm:$0xff]  ;;  %214 = vst [vmem:[%s134_s26 + $0x38] sm:$0xff] %v213_v7 }
  0x1a   : > { %216 = vst [vmem:[%s134_s26 + $0x40] sm:$0xff] %v215_v8  ;;  %v217_v9 = vld [vmem:[%s686_s25 + $0x240] sm:$0xff] }
  0x1b   : > { %v219_v10 = vld [vmem:[%s686_s25 + $0x280] sm:$0xff]  ;;  %218 = vst [vmem:[%s134_s26 + $0x48] sm:$0xff] %v217_v9 }
  0x1c   : > { %v221_v11 = vld [vmem:[%s686_s25 + $0x2c0] sm:$0xff]  ;;  %220 = vst [vmem:[%s134_s26 + $0x50] sm:$0xff] %v219_v10 }
  0x1d   : > { %222 = vst [vmem:[%s134_s26 + $0x58] sm:$0xff] %v221_v11  ;;  %v223_v12 = vld [vmem:[%s686_s25 + $0x300] sm:$0xff] }
  0x1e   : > { %v225_v13 = vld [vmem:[%s686_s25 + $0x340] sm:$0xff]  ;;  %224 = vst [vmem:[%s134_s26 + $0x60] sm:$0xff] %v223_v12 }
  0x1f   : > { %v227_v14 = vld [vmem:[%s686_s25 + $0x380] sm:$0xff]  ;;  %226 = vst [vmem:[%s134_s26 + $0x68] sm:$0xff] %v225_v13 }
  0x20   : > { %228 = vst [vmem:[%s134_s26 + $0x70] sm:$0xff] %v227_v14  ;;  %v229_v15 = vld [vmem:[%s686_s25 + $0x3c0] sm:$0xff] }
  0x21   : > { %v231_v16 = vld [vmem:[%s686_s25 + $0x400] sm:$0xff]  ;;  %230 = vst [vmem:[%s134_s26 + $0x78] sm:$0xff] %v229_v15 }
  0x22   : > { %v233_v17 = vld [vmem:[%s686_s25 + $0x440] sm:$0xff]  ;;  %232 = vst [vmem:[%s134_s26 + $0x80] sm:$0xff] %v231_v16 }
  0x23   : > { %234 = vst [vmem:[%s134_s26 + $0x88] sm:$0xff] %v233_v17 }
  0x24 PF: > { %p522_p5 = scmp.ge.s32.totalorder %s629_s14, 1  ;;  %p239_p6 = scmp.lt.s32.totalorder %s629_s14, 9 }
  0x26   : > { %p240_p7 = pnand %p522_p5, %p239_p6 }
  0x27   : > { %s246_s27 = sand.u32 (!%p240_p7), 1, %s621_s12   ;;  %v525_v18 = vld.sshfl [vmem:[%s750_s0] sm:$0x33 pattern:$0x76325410] (!%p240_p7)  ;;  %vm402_vm0 = vcmask (!%p240_p7), 130048  }
  0x28   : > { %243 = sbr.rel (%p240_p7) target bundleno = 310 (0x136), region = 66  ;;  %v310_v19 = vcombine.high (!%p240_p7), %v525_v18, %v525_v18  ;;  %v296_v20 = vld [vmem:[%s752_s2] sm:$0xf] (!%p240_p7)  ;;  %v631_v21 = vmov (!%p240_p7), 0   ;;  %s523_s7 = sshll.u32 (!%p240_p7), %s516_s15, 1 }
  0x29   : > { %s549_s30 = smul.u32 (!%p240_p7), 144, %s246_s27  ;;  %575 = vset.pattern.permute.xlu0 (!%p240_p7), %v631_v21  ;;  %p271_p8 = scmp.lt.s32.totalorder (!%p240_p7), %s523_s7, 15 }
  0x2a   : > { %544 = vmatprep.mubr.msk.bf16.mxu0 (!%p240_p7), %vm402_vm0, %v310_v19  ;;  %299 = vperm.xlu0 (!%p240_p7), %575, %v296_v20  }
  0x2b   : > { %s715_s6 = scalar_lea.vmem (!%p240_p7), [#allocation2], %s549_s30 }
  0x2c   : > { %v576_v22 = vld [vmem:[%s715_s6 + $0x4] ss:$8 sps:$4 sm:$0xff] (!%p240_p7)   ;;  %v578_v23 = vld [vmem:[%s715_s6] ss:$8 sps:$4 sm:$0xff] (!%p240_p7)   ;;  %v579_v24 = vld [vmem:[%s715_s6 + $0x14] ss:$8 sps:$4 sm:$0xff] (!%p240_p7)  }
  0x2d   : > { %406 = vmatprep.subr.bf16.mxu0 (!%p240_p7), %v576_v22  ;;  %v581_v25 = vld [vmem:[%s715_s6 + $0x10] ss:$8 sps:$4 sm:$0xff] (!%p240_p7)   ;;  %v582_v26 = vld [vmem:[%s715_s6 + $0x24] ss:$8 sps:$4 sm:$0xff] (!%p240_p7)   ;;  %v584_v27 = vld [vmem:[%s715_s6 + $0x20] ss:$8 sps:$4 sm:$0xff] (!%p240_p7)  }
  0x2e   : > { %407 = vmatpush1.bf16.msra.mxu0 (!%p240_p7), %v578_v23  ;;  %v585_v28 = vld [vmem:[%s715_s6 + $0x34] ss:$8 sps:$4 sm:$0xff] (!%p240_p7)   ;;  %v587_v29 = vld [vmem:[%s715_s6 + $0x30] ss:$8 sps:$4 sm:$0xff] (!%p240_p7)   ;;  %v588_v30 = vld [vmem:[%s715_s6 + $0x44] ss:$8 sps:$4 sm:$0xff] (!%p240_p7)  }
  0x2f   : > { %408 = vmatprep.subr.bf16.mxu0 %v579_v24  ;;  %v590_v31 = vld [vmem:[%s715_s6 + $0x40] ss:$8 sps:$4 sm:$0xff]   ;;  %v591_v32 = vld [vmem:[%s715_s6 + $0x54] ss:$8 sps:$4 sm:$0xff]   ;;  %v593_v33 = vld [vmem:[%s715_s6 + $0x50] ss:$8 sps:$4 sm:$0xff]  }
  0x30   : > { %v594_v34 = vld [vmem:[%s715_s6 + $0x64] ss:$8 sps:$4 sm:$0xff]   ;;  %v596_v35 = vld [vmem:[%s715_s6 + $0x60] ss:$8 sps:$4 sm:$0xff]   ;;  %v597_v36 = vld [vmem:[%s715_s6 + $0x74] ss:$8 sps:$4 sm:$0xff]  }
  0x31   : > { %v599_v37 = vld [vmem:[%s715_s6 + $0x70] ss:$8 sps:$4 sm:$0xff]   ;;  %v600_v38 = vld [vmem:[%s715_s6 + $0x84] ss:$8 sps:$4 sm:$0xff]   ;;  %v602_v39 = vld [vmem:[%s715_s6 + $0x80] ss:$8 sps:$4 sm:$0xff]  }
  0x32   : > { %409 = vmatpush1.bf16.msra.mxu0 %v581_v25  ;;  %s758_s7 = smov (!%p271_p8, %s523_s7), 15 }
  0x33   : > { %410 = vmatprep.subr.bf16.mxu0 %v582_v26  ;;  %s524_s8 = sshll.u32 %s758_s7, 2 }
  0x34   : > { %s274_s11 = scalar_lea.vmem %s753_s3, %s524_s8 }
  0x36   : > { %411 = vmatpush1.bf16.msra.mxu0 %v584_v27 }
  0x37   : > { %412 = vmatprep.subr.bf16.mxu0 %v585_v28 }
  0x3a   : > { %413 = vmatpush1.bf16.msra.mxu0 %v587_v29 }
  0x3b   : > { %414 = vmatprep.subr.bf16.mxu0 %v588_v30 }
  0x3e   : > { %415 = vmatpush1.bf16.msra.mxu0 %v590_v31 }
  0x3f   : > { %416 = vmatprep.subr.bf16.mxu0 %v591_v32 }
  0x42   : > { %417 = vmatpush1.bf16.msra.mxu0 %v593_v33 }
  0x43   : > { %418 = vmatprep.subr.bf16.mxu0 %v594_v34 }
  0x46   : > { %419 = vmatpush1.bf16.msra.mxu0 %v596_v35 }
  0x47   : > { %420 = vmatprep.subr.bf16.mxu0 %v597_v36 }
  0x4a   : > { %421 = vmatpush1.bf16.msra.mxu0 %v599_v37 }
  0x4b   : > { %422 = vmatprep.subr.bf16.mxu0 %v600_v38 }
  0x4e   : > { %423 = vmatpush1.bf16.msra.mxu0 %v602_v39 }
  0x51   : > { %439 = vmatmul.mubr.bf16.vlgmr.msra.gmra.mrb[0].mxu0 %v525_v18 }
  0xa9   : > { %v300_v40 = vpop.permute.xlu0 %299 }
 0x124   : > { %v440_v41 = vpop.f32.mrb[0].mxu0 }
 0x125   : > { %v441_v42 = vadd.f32 %v440_v41, %v300_v40  ;;  %v442_v43 = vpop.f32.mrb[1].mxu0 }
 0x126   : > { %v443_v44 = vadd.f32 %v442_v43, %v300_v40  ;;  %v444_v45 = vpop.f32.mrb[2].mxu0 }
 0x127   : > { %603 = vtanh.f32 %v441_v42  ;;  %v445_v46 = vpop.f32.mrb[3].mxu0 }
 0x128   : > { %605 = vtanh.f32 %v443_v44 }
 0x131   : > { %v604_v47 = vpop.eup %603 }
 0x132   : > { %v606_v48 = vpop.eup %605 }
 0x133   : > { %v451_v49 = vcombine.low %v604_v47, %v606_v48 }
 0x135   : > { %453 = vst [vmem:[%s274_s11] sm:$0xff] %v451_v49 }
 0x136 PF: > { %p10_p9 = scmp.ge.s32.totalorder %s669_s16, 10   ;;  %s754_s12 = smov %s625_s13 }
 0x137   : > { %s755_s13 = smov %s678_s19  ;;  %s756_s14 = smov %s669_s16 }
 0x138   :  { %12 = sbr.rel (!%p10_p9) target bundleno = 2 (0x2), region = 105 }

</bundles_post_ra>
